<compile_context>
chip_gen: v6e
topology: v6e:2x2x1
jax: 0.10.0
libtpu: 0.0.40
codegen_flags: <defaults>
</compile_context>

<pallas_src>
import functools

import jax
import jax.numpy as jnp
from jax import lax
from jax.experimental import pallas as pl
from jax.experimental.pallas import tpu as pltpu

INPUT_DIM = 4
HIDDEN = 32
BOTTLENECK = 16
N_BLOCKS = 2
VQ_DIM = 8
VQ_CODES = 16
BETA = 0.25

PARAM_DTYPE = jnp.bfloat16   # MXU operand dtype (accumulation stays f32)
SLAB_LANES = 128             # lane width of the packed parameter slab
ROW_ALIGN = 16               # bf16 sublane tile -> every slab entry tile-aligned
LOSS_LANES = 128             # lane-dense per-step loss slab


# ----------------------------------------------------------------------------
# In-kernel building blocks. Activations are VALUES (vreg/VMEM resident),
# layout (C, L): channels on sublanes, time on lanes.
# ----------------------------------------------------------------------------
def _dense_slab(h, slab_ref, ent, relu):
    """Pointwise (1x1) conv: W(Cout,Cin) @ h(Cin,L) + b, f32 accumulation.

    Slab row block: columns [0:Cin] = W, column [Cin] = bias.
    """
    r0, cout, cin = ent
    wb = slab_ref[r0:r0 + cout, :]                           # (Cout, 128) bf16
    w = wb[:, :cin]
    b = wb[:, cin:cin + 1].astype(jnp.float32)               # (Cout, 1)
    y = jnp.dot(w, h.astype(PARAM_DTYPE),
                preferred_element_type=jnp.float32) + b      # (Cout, L)
    if relu:
        y = jnp.maximum(y, 0.0)
    return y


def _conv3_slab(h, slab_ref, ent, relu):
    """k=3 'same' temporal conv, stride 1, time on lanes.

    Taps stored as slab columns [0:Cin]=t-1, [Cin:2Cin]=t, [2Cin:3Cin]=t+1,
    bias at column 3*Cin. Three accumulating MXU dots — no runtime concat.
    """
    r0, cout, cin = ent
    L = h.shape[1]
    lidx = lax.broadcasted_iota(jnp.int32, h.shape, 1)
    # Negative shifts are rejected; roll by L-1 == circular shift -1, wrapped
    # column masked to zero at the edge ('same' zero padding).
    h_prev = jnp.where(lidx == 0, 0.0, pltpu.roll(h, shift=1, axis=1))
    h_next = jnp.where(lidx == L - 1, 0.0, pltpu.roll(h, shift=L - 1, axis=1))

    wb = slab_ref[r0:r0 + cout, :]                           # (Cout, 128) bf16
    w_m1 = wb[:, 0:cin]
    w_00 = wb[:, cin:2 * cin]
    w_p1 = wb[:, 2 * cin:3 * cin]
    b = wb[:, 3 * cin:3 * cin + 1].astype(jnp.float32)

    y = (jnp.dot(w_m1, h_prev.astype(PARAM_DTYPE),
                 preferred_element_type=jnp.float32)
         + jnp.dot(w_00, h.astype(PARAM_DTYPE),
                   preferred_element_type=jnp.float32)
         + jnp.dot(w_p1, h_next.astype(PARAM_DTYPE),
                   preferred_element_type=jnp.float32)
         + b)
    if relu:
        y = jnp.maximum(y, 0.0)
    return y


def _resnet_slab(h, slab_ref, layout):
    """Stride-1 BottleNeckResNet on a (Cin, L) activation."""
    in_proj, blocks, out_proj = layout
    h = _dense_slab(h, slab_ref, in_proj, relu=False)
    for down, conv, up in blocks:
        r = _dense_slab(h, slab_ref, down, relu=True)
        r = _conv3_slab(r, slab_ref, conv, relu=True)
        r = _dense_slab(r, slab_ref, up, relu=False)
        h = h + r                                            # residual
    return _dense_slab(h, slab_ref, out_proj, relu=False)


def _vector_quantize(z, cb, cbt, cb2):
    """Nearest-code search as ONE (K,L) distance matmul + a single min-reduce.

    z: (D, L) f32, cb: (K, D) f32, cbt: (D, K) f32, cb2: (K, 1) f32.
    Returns (quantized (D, L), sum over elements of (z - q)^2).
    """
    n_codes = cb.shape[0]
    cross = jnp.dot(cb, z, preferred_element_type=jnp.float32)       # (K, L)
    z2 = jnp.sum(z * z, axis=0, keepdims=True)                       # (1, L)
    d = z2 - 2.0 * cross + cb2                                       # (K, L)
    min_d = jnp.min(d, axis=0, keepdims=True)                        # (1, L)
    kidx = lax.broadcasted_iota(jnp.int32, d.shape, 0).astype(jnp.float32)
    # First-argmin tie-break (PyTorch semantics): smallest k among the minima.
    best_k = jnp.min(jnp.where(d <= min_d, kidx, float(n_codes)),
                     axis=0, keepdims=True)                          # (1, L)
    onehot = (kidx == best_k).astype(jnp.float32)                    # (K, L)
    q = jnp.dot(cbt, onehot, preferred_element_type=jnp.float32)     # (D, L)
    diff = z - q
    return q, jnp.sum(diff * diff)


# ----------------------------------------------------------------------------
# Fused kernel: one program per batch tile (TB batches, statically unrolled).
# ----------------------------------------------------------------------------
def _soundstream_kernel(x_ref, slab_ref, cb_ref, cbt_ref, rec_ref, loss_ref, *,
                        enc_layout, dec_layout, batch_tile, beta):
    cb = cb_ref[...]                                         # (K, D) f32
    cbt = cbt_ref[...]                                       # (D, K) f32
    cb2 = jnp.sum(cb * cb, axis=1, keepdims=True)            # (K, 1), once/step

    loss_sum = jnp.float32(0.0)
    n_el = 0
    for b in range(batch_tile):                              # static unroll
        h = x_ref[b].astype(jnp.float32)                     # (Cin, L)
        z = _resnet_slab(h, slab_ref, enc_layout)            # (D, L) f32
        q, sq = _vector_quantize(z, cb, cbt, cb2)
        loss_sum = loss_sum + sq
        n_el += z.shape[0] * z.shape[1]
        rec = _resnet_slab(q, slab_ref, dec_layout)          # (Cout, L)
        rec_ref[b] = rec.astype(rec_ref.dtype)               # lane-dense store

    # Forward value: codebook loss + beta*commitment loss == (1+beta)*mse(z,q).
    # TODO(synk): forward-only; no straight-through / stop-gradient split.
    loss_val = (1.0 + beta) * loss_sum / float(n_el)
    loss_ref[...] = jnp.zeros(loss_ref.shape, jnp.float32) + loss_val


# ----------------------------------------------------------------------------
# Parameter init (PyTorch Conv1d-style layouts) and slab packing.
# ----------------------------------------------------------------------------
def _init_dense(key, cin, cout):
    w = jax.random.normal(key, (cout, cin), jnp.float32) / jnp.sqrt(float(cin))
    return w, jnp.zeros((cout,), jnp.float32)


def _init_conv3(key, cin, cout):
    # PyTorch Conv1d weight layout (out, in, k); k=0 is the x[t-1] tap.
    w = (jax.random.normal(key, (cout, cin, 3), jnp.float32)
         / jnp.sqrt(float(3 * cin)))
    return w, jnp.zeros((cout,), jnp.float32)


def init_bottleneck_resnet(key, cin, hidden, bottleneck, n_blocks, cout):
    keys = jax.random.split(key, 2 + 3 * n_blocks)
    params = {"in_proj": _init_dense(keys[0], cin, hidden), "blocks": []}
    for i in range(n_blocks):
        k0, k1, k2 = keys[1 + 3 * i: 4 + 3 * i]
        params["blocks"].append({
            "down": _init_dense(k0, hidden, bottleneck),
            "conv": _init_conv3(k1, bottleneck, bottleneck),
            "up": _init_dense(k2, bottleneck, hidden),
        })
    params["out_proj"] = _init_dense(keys[-1], hidden, cout)
    return params


def init_soundstream(key):
    ke, kq, kd = jax.random.split(key, 3)
    return {
        "encoder": init_bottleneck_resnet(ke, INPUT_DIM, HIDDEN, BOTTLENECK,
                                          N_BLOCKS, VQ_DIM),
        "codebook": jax.random.normal(kq, (VQ_CODES, VQ_DIM), jnp.float32),
        "decoder": init_bottleneck_resnet(kd, VQ_DIM, HIDDEN, BOTTLENECK,
                                          N_BLOCKS, INPUT_DIM),
    }


def _round_up(x, m):
    return (x + m - 1) // m * m


def _pack_params(params):
    """Pack all encoder/decoder weights+biases into one (R,128) bf16 slab.

    Returns (slab, enc_layout, dec_layout); layouts hold static (row, cout, cin)
    tuples used as ref slice offsets in-kernel.
    """
    blocks = []
    off = 0

    def add_dense(wb):
        nonlocal off
        w, b = wb
        cout, cin = w.shape
        rows = _round_up(cout, ROW_ALIGN)
        blk = jnp.zeros((rows, SLAB_LANES), PARAM_DTYPE)
        blk = blk.at[:cout, :cin].set(w.astype(PARAM_DTYPE))
        blk = blk.at[:cout, cin].set(b.astype(PARAM_DTYPE))
        ent = (off, cout, cin)
        blocks.append(blk)
        off += rows
        return ent

    def add_conv(wb):
        nonlocal off
        w, b = wb                                  # w: (cout, cin, 3)
        cout, cin, _ = w.shape
        rows = _round_up(cout, ROW_ALIGN)
        blk = jnp.zeros((rows, SLAB_LANES), PARAM_DTYPE)
        for k in range(3):
            blk = blk.at[:cout, k * cin:(k + 1) * cin].set(
                w[:, :, k].astype(PARAM_DTYPE))
        blk = blk.at[:cout, 3 * cin].set(b.astype(PARAM_DTYPE))
        ent = (off, cout, cin)
        blocks.append(blk)
        off += rows
        return ent

    def add_resnet(p):
        in_ent = add_dense(p["in_proj"])
        blk_ents = []
        for blk_p in p["blocks"]:
            blk_ents.append((add_dense(blk_p["down"]),
                             add_conv(blk_p["conv"]),
                             add_dense(blk_p["up"])))
        out_ent = add_dense(p["out_proj"])
        return (in_ent, tuple(blk_ents), out_ent)

    enc_layout = add_resnet(params["encoder"])
    dec_layout = add_resnet(params["decoder"])
    slab = jnp.concatenate(blocks, axis=0)
    return slab, enc_layout, dec_layout


# ----------------------------------------------------------------------------
# Forward: single fused pallas_call
# ----------------------------------------------------------------------------
def soundstream_forward(params, x_ncl, *, batch_tile=None):
    """x_ncl: (B, C, L) PyTorch Conv1d layout (consumed natively, no transpose).

    Returns dict like the nn.Module: {'reconstruction': (B,C,L), 'aux_loss': ()}.
    """
    x = x_ncl.astype(jnp.float32)
    B, Cin, L = x.shape
    assert Cin == INPUT_DIM

    slab, enc_layout, dec_layout = _pack_params(params)
    cb = params["codebook"].astype(jnp.float32)              # (K, D)
    cbt = jnp.transpose(cb)                                  # (D, K)

    if batch_tile is None:
        # Fold batches per grid step, but keep >= 2 parallel steps when we can
        # so both v7x TensorCores get work.
        batch_tile = B // 2 if (B % 2 == 0 and B >= 2) else 1
    assert B % batch_tile == 0
    n_steps = B // batch_tile

    kernel = functools.partial(_soundstream_kernel,
                               enc_layout=enc_layout,
                               dec_layout=dec_layout,
                               batch_tile=batch_tile,
                               beta=BETA)

    out_shape = (
        jax.ShapeDtypeStruct((B, INPUT_DIM, L), jnp.float32),
        jax.ShapeDtypeStruct((n_steps, 8, LOSS_LANES), jnp.float32),
    )
    out_specs = (
        pl.BlockSpec((batch_tile, INPUT_DIM, L), lambda g: (g, 0, 0)),
        pl.BlockSpec((1, 8, LOSS_LANES), lambda g: (g, 0, 0)),
    )
    in_specs = [
        pl.BlockSpec((batch_tile, Cin, L), lambda g: (g, 0, 0)),
        # Params: constant block index -> DMA'd once, VMEM-resident across grid.
        pl.BlockSpec(slab.shape, lambda g: (0, 0)),
        pl.BlockSpec(cb.shape, lambda g: (0, 0)),
        pl.BlockSpec(cbt.shape, lambda g: (0, 0)),
    ]

    rec, loss = pl.pallas_call(
        kernel,
        out_shape=out_shape,
        grid=(n_steps,),
        in_specs=in_specs,
        out_specs=out_specs,
        compiler_params=pltpu.CompilerParams(
            dimension_semantics=("parallel",)),   # batch tiles shard across TCs
    )(x, slab, cb, cbt)

    aux_loss = jnp.mean(loss[:, 0, 0])           # equal-size per-step means
    return {"reconstruction": rec, "aux_loss": aux_loss}


if __name__ == "__main__":
    key = jax.random.PRNGKey(0)
    kp, kx = jax.random.split(key)
    params = init_soundstream(kp)

    # Small but lane-dense demo: B=4 (2 batches folded per grid step, 2 steps),
    # C=4 channels, L=128 so time fills the 128 lanes.
    B, C, L = 4, INPUT_DIM, 128
    x = jax.random.normal(kx, (B, C, L), jnp.float32)        # PyTorch (N, C, L)

    fwd = jax.jit(soundstream_forward)
    out = fwd(params, x)
    jax.block_until_ready(out)

    assert out["reconstruction"].shape == (B, C, L)
    assert out["aux_loss"].shape == ()
    print("KERNEL_OK")
</pallas_src>

<mosaic_0001>
module attributes {stable_mosaic.version = 11 : i64} {
  func.func @_soundstream_kernel(%arg0: i32, %arg1: memref<2x4x128xf32, #tpu.memory_space<vmem>>, %arg2: memref<352x128xbf16, #tpu.memory_space<vmem>>, %arg3: memref<16x8xf32, #tpu.memory_space<vmem>>, %arg4: memref<8x16xf32, #tpu.memory_space<vmem>>, %arg5: memref<2x4x128xf32, #tpu.memory_space<vmem>>, %arg6: memref<1x8x128xf32, #tpu.memory_space<vmem>>) attributes {dimension_semantics = [#tpu.dimension_semantics<parallel>], iteration_bounds = array<i64: 2>, scalar_prefetch = 0 : i64, scratch_operands = 0 : i64, tpu.core_type = #tpu.core_type<tc>, window_params = [{transform_indices = @transform_0, window_bounds = array<i64: 2, 4, 128>}, {pipeline_mode = #tpu.pipeline_mode<synchronous>, transform_indices = @transform_1, window_bounds = array<i64: 352, 128>}, {pipeline_mode = #tpu.pipeline_mode<synchronous>, transform_indices = @transform_2, window_bounds = array<i64: 16, 8>}, {pipeline_mode = #tpu.pipeline_mode<synchronous>, transform_indices = @transform_3, window_bounds = array<i64: 8, 16>}, {transform_indices = @transform_4, window_bounds = array<i64: 2, 4, 128>}, {transform_indices = @transform_5, window_bounds = array<i64: 1, 8, 128>}]} {
    %c0 = arith.constant 0 : index
    %c0_0 = arith.constant 0 : index
    %0 = vector.load %arg3[%c0, %c0_0] : memref<16x8xf32, #tpu.memory_space<vmem>>, vector<16x8xf32>
    %c0_1 = arith.constant 0 : index
    %c0_2 = arith.constant 0 : index
    %1 = vector.load %arg4[%c0_1, %c0_2] : memref<8x16xf32, #tpu.memory_space<vmem>>, vector<8x16xf32>
    %2 = arith.mulf %0, %0 : vector<16x8xf32>
    %cst = arith.constant dense<0.000000e+00> : vector<16xf32>
    %3 = vector.multi_reduction <add>, %2, %cst [1] : vector<16x8xf32> to vector<16xf32>
    %4 = vector.shape_cast %3 : vector<16xf32> to vector<16x1xf32>
    %c0_3 = arith.constant 0 : index
    %c0_4 = arith.constant 0 : index
    %c0_5 = arith.constant 0 : index
    %5 = vector.load %arg1[%c0_3, %c0_4, %c0_5] : memref<2x4x128xf32, #tpu.memory_space<vmem>>, vector<1x4x128xf32>
    %6 = vector.shape_cast %5 : vector<1x4x128xf32> to vector<4x128xf32>
    %c0_6 = arith.constant 0 : index
    %c0_7 = arith.constant 0 : index
    %7 = vector.load %arg2[%c0_6, %c0_7] : memref<352x128xbf16, #tpu.memory_space<vmem>>, vector<32x128xbf16>
    %8 = vector.extract_strided_slice %7 {offsets = [0, 0], sizes = [32, 4], strides = [1, 1]} : vector<32x128xbf16> to vector<32x4xbf16>
    %9 = vector.extract_strided_slice %7 {offsets = [0, 4], sizes = [32, 1], strides = [1, 1]} : vector<32x128xbf16> to vector<32x1xbf16>
    %10 = arith.extf %9 : vector<32x1xbf16> to vector<32x1xf32>
    %11 = arith.truncf %6 : vector<4x128xf32> to vector<4x128xbf16>
    %cst_8 = arith.constant dense<0.000000e+00> : vector<32x128xf32>
    %12 = tpu.matmul %8, %11, %cst_8 {dimension_numbers = #tpu.dot_dimension_numbers<[1], [0], [0], [1], [0, 0, 1, 1], [], []>} : vector<32x4xbf16>, vector<4x128xbf16>, vector<32x128xf32> -> vector<32x128xf32>
    %13 = vector.broadcast %10 : vector<32x1xf32> to vector<32x128xf32>
    %14 = arith.addf %12, %13 : vector<32x128xf32>
    %c32 = arith.constant 32 : index
    %c0_9 = arith.constant 0 : index
    %15 = vector.load %arg2[%c32, %c0_9] : memref<352x128xbf16, #tpu.memory_space<vmem>>, vector<16x128xbf16>
    %16 = vector.extract_strided_slice %15 {offsets = [0, 0], sizes = [16, 32], strides = [1, 1]} : vector<16x128xbf16> to vector<16x32xbf16>
    %17 = vector.extract_strided_slice %15 {offsets = [0, 32], sizes = [16, 1], strides = [1, 1]} : vector<16x128xbf16> to vector<16x1xbf16>
    %18 = arith.extf %17 : vector<16x1xbf16> to vector<16x1xf32>
    %19 = arith.truncf %14 : vector<32x128xf32> to vector<32x128xbf16>
    %cst_10 = arith.constant dense<0.000000e+00> : vector<16x128xf32>
    %20 = tpu.matmul %16, %19, %cst_10 {dimension_numbers = #tpu.dot_dimension_numbers<[1], [0], [0], [1], [0, 0, 1, 1], [], []>} : vector<16x32xbf16>, vector<32x128xbf16>, vector<16x128xf32> -> vector<16x128xf32>
    %21 = vector.broadcast %18 : vector<16x1xf32> to vector<16x128xf32>
    %22 = arith.addf %20, %21 : vector<16x128xf32>
    %cst_11 = arith.constant 0.000000e+00 : f32
    %23 = vector.broadcast %cst_11 : f32 to vector<16x128xf32>
    %24 = arith.maximumf %22, %23 : vector<16x128xf32>
    %25 = tpu.iota {dimensions = array<i32: 1>} : vector<16x128xi32>
    %c0_i32 = arith.constant 0 : i32
    %26 = vector.broadcast %c0_i32 : i32 to vector<16x128xi32>
    %27 = arith.cmpi eq, %25, %26 : vector<16x128xi32>
    %c1_i32 = arith.constant 1 : i32
    %28 = tpu.dynamic_rotate %24 by %c1_i32 dim 1 : vector<16x128xf32>, i32 -> vector<16x128xf32>
    %cst_12 = arith.constant 0.000000e+00 : f32
    %29 = vector.broadcast %cst_12 : f32 to vector<16x128xf32>
    %30 = arith.select %27, %29, %28 : vector<16x128xi1>, vector<16x128xf32>
    %c127_i32 = arith.constant 127 : i32
    %31 = vector.broadcast %c127_i32 : i32 to vector<16x128xi32>
    %32 = arith.cmpi eq, %25, %31 : vector<16x128xi32>
    %c127_i32_13 = arith.constant 127 : i32
    %33 = tpu.dynamic_rotate %24 by %c127_i32_13 dim 1 : vector<16x128xf32>, i32 -> vector<16x128xf32>
    %cst_14 = arith.constant 0.000000e+00 : f32
    %34 = vector.broadcast %cst_14 : f32 to vector<16x128xf32>
    %35 = arith.select %32, %34, %33 : vector<16x128xi1>, vector<16x128xf32>
    %c48 = arith.constant 48 : index
    %c0_15 = arith.constant 0 : index
    %36 = vector.load %arg2[%c48, %c0_15] : memref<352x128xbf16, #tpu.memory_space<vmem>>, vector<16x128xbf16>
    %37 = vector.extract_strided_slice %36 {offsets = [0, 0], sizes = [16, 16], strides = [1, 1]} : vector<16x128xbf16> to vector<16x16xbf16>
    %38 = vector.extract_strided_slice %36 {offsets = [0, 16], sizes = [16, 16], strides = [1, 1]} : vector<16x128xbf16> to vector<16x16xbf16>
    %39 = vector.extract_strided_slice %36 {offsets = [0, 32], sizes = [16, 16], strides = [1, 1]} : vector<16x128xbf16> to vector<16x16xbf16>
    %40 = vector.extract_strided_slice %36 {offsets = [0, 48], sizes = [16, 1], strides = [1, 1]} : vector<16x128xbf16> to vector<16x1xbf16>
    %41 = arith.extf %40 : vector<16x1xbf16> to vector<16x1xf32>
    %42 = arith.truncf %30 : vector<16x128xf32> to vector<16x128xbf16>
    %cst_16 = arith.constant dense<0.000000e+00> : vector<16x128xf32>
    %43 = tpu.matmul %37, %42, %cst_16 {dimension_numbers = #tpu.dot_dimension_numbers<[1], [0], [0], [1], [0, 0, 1, 1], [], []>} : vector<16x16xbf16>, vector<16x128xbf16>, vector<16x128xf32> -> vector<16x128xf32>
    %44 = arith.truncf %24 : vector<16x128xf32> to vector<16x128xbf16>
    %cst_17 = arith.constant dense<0.000000e+00> : vector<16x128xf32>
    %45 = tpu.matmul %38, %44, %cst_17 {dimension_numbers = #tpu.dot_dimension_numbers<[1], [0], [0], [1], [0, 0, 1, 1], [], []>} : vector<16x16xbf16>, vector<16x128xbf16>, vector<16x128xf32> -> vector<16x128xf32>
    %46 = arith.addf %43, %45 : vector<16x128xf32>
    %47 = arith.truncf %35 : vector<16x128xf32> to vector<16x128xbf16>
    %cst_18 = arith.constant dense<0.000000e+00> : vector<16x128xf32>
    %48 = tpu.matmul %39, %47, %cst_18 {dimension_numbers = #tpu.dot_dimension_numbers<[1], [0], [0], [1], [0, 0, 1, 1], [], []>} : vector<16x16xbf16>, vector<16x128xbf16>, vector<16x128xf32> -> vector<16x128xf32>
    %49 = arith.addf %46, %48 : vector<16x128xf32>
    %50 = vector.broadcast %41 : vector<16x1xf32> to vector<16x128xf32>
    %51 = arith.addf %49, %50 : vector<16x128xf32>
    %cst_19 = arith.constant 0.000000e+00 : f32
    %52 = vector.broadcast %cst_19 : f32 to vector<16x128xf32>
    %53 = arith.maximumf %51, %52 : vector<16x128xf32>
    %c64 = arith.constant 64 : index
    %c0_20 = arith.constant 0 : index
    %54 = vector.load %arg2[%c64, %c0_20] : memref<352x128xbf16, #tpu.memory_space<vmem>>, vector<32x128xbf16>
    %55 = vector.extract_strided_slice %54 {offsets = [0, 0], sizes = [32, 16], strides = [1, 1]} : vector<32x128xbf16> to vector<32x16xbf16>
    %56 = vector.extract_strided_slice %54 {offsets = [0, 16], sizes = [32, 1], strides = [1, 1]} : vector<32x128xbf16> to vector<32x1xbf16>
    %57 = arith.extf %56 : vector<32x1xbf16> to vector<32x1xf32>
    %58 = arith.truncf %53 : vector<16x128xf32> to vector<16x128xbf16>
    %cst_21 = arith.constant dense<0.000000e+00> : vector<32x128xf32>
    %59 = tpu.matmul %55, %58, %cst_21 {dimension_numbers = #tpu.dot_dimension_numbers<[1], [0], [0], [1], [0, 0, 1, 1], [], []>} : vector<32x16xbf16>, vector<16x128xbf16>, vector<32x128xf32> -> vector<32x128xf32>
    %60 = vector.broadcast %57 : vector<32x1xf32> to vector<32x128xf32>
    %61 = arith.addf %59, %60 : vector<32x128xf32>
    %62 = arith.addf %14, %61 : vector<32x128xf32>
    %c96 = arith.constant 96 : index
    %c0_22 = arith.constant 0 : index
    %63 = vector.load %arg2[%c96, %c0_22] : memref<352x128xbf16, #tpu.memory_space<vmem>>, vector<16x128xbf16>
    %64 = vector.extract_strided_slice %63 {offsets = [0, 0], sizes = [16, 32], strides = [1, 1]} : vector<16x128xbf16> to vector<16x32xbf16>
    %65 = vector.extract_strided_slice %63 {offsets = [0, 32], sizes = [16, 1], strides = [1, 1]} : vector<16x128xbf16> to vector<16x1xbf16>
    %66 = arith.extf %65 : vector<16x1xbf16> to vector<16x1xf32>
    %67 = arith.truncf %62 : vector<32x128xf32> to vector<32x128xbf16>
    %cst_23 = arith.constant dense<0.000000e+00> : vector<16x128xf32>
    %68 = tpu.matmul %64, %67, %cst_23 {dimension_numbers = #tpu.dot_dimension_numbers<[1], [0], [0], [1], [0, 0, 1, 1], [], []>} : vector<16x32xbf16>, vector<32x128xbf16>, vector<16x128xf32> -> vector<16x128xf32>
    %69 = vector.broadcast %66 : vector<16x1xf32> to vector<16x128xf32>
    %70 = arith.addf %68, %69 : vector<16x128xf32>
    %cst_24 = arith.constant 0.000000e+00 : f32
    %71 = vector.broadcast %cst_24 : f32 to vector<16x128xf32>
    %72 = arith.maximumf %70, %71 : vector<16x128xf32>
    %73 = tpu.iota {dimensions = array<i32: 1>} : vector<16x128xi32>
    %c0_i32_25 = arith.constant 0 : i32
    %74 = vector.broadcast %c0_i32_25 : i32 to vector<16x128xi32>
    %75 = arith.cmpi eq, %73, %74 : vector<16x128xi32>
    %c1_i32_26 = arith.constant 1 : i32
    %76 = tpu.dynamic_rotate %72 by %c1_i32_26 dim 1 : vector<16x128xf32>, i32 -> vector<16x128xf32>
    %cst_27 = arith.constant 0.000000e+00 : f32
    %77 = vector.broadcast %cst_27 : f32 to vector<16x128xf32>
    %78 = arith.select %75, %77, %76 : vector<16x128xi1>, vector<16x128xf32>
    %c127_i32_28 = arith.constant 127 : i32
    %79 = vector.broadcast %c127_i32_28 : i32 to vector<16x128xi32>
    %80 = arith.cmpi eq, %73, %79 : vector<16x128xi32>
    %c127_i32_29 = arith.constant 127 : i32
    %81 = tpu.dynamic_rotate %72 by %c127_i32_29 dim 1 : vector<16x128xf32>, i32 -> vector<16x128xf32>
    %cst_30 = arith.constant 0.000000e+00 : f32
    %82 = vector.broadcast %cst_30 : f32 to vector<16x128xf32>
    %83 = arith.select %80, %82, %81 : vector<16x128xi1>, vector<16x128xf32>
    %c112 = arith.constant 112 : index
    %c0_31 = arith.constant 0 : index
    %84 = vector.load %arg2[%c112, %c0_31] : memref<352x128xbf16, #tpu.memory_space<vmem>>, vector<16x128xbf16>
    %85 = vector.extract_strided_slice %84 {offsets = [0, 0], sizes = [16, 16], strides = [1, 1]} : vector<16x128xbf16> to vector<16x16xbf16>
    %86 = vector.extract_strided_slice %84 {offsets = [0, 16], sizes = [16, 16], strides = [1, 1]} : vector<16x128xbf16> to vector<16x16xbf16>
    %87 = vector.extract_strided_slice %84 {offsets = [0, 32], sizes = [16, 16], strides = [1, 1]} : vector<16x128xbf16> to vector<16x16xbf16>
    %88 = vector.extract_strided_slice %84 {offsets = [0, 48], sizes = [16, 1], strides = [1, 1]} : vector<16x128xbf16> to vector<16x1xbf16>
    %89 = arith.extf %88 : vector<16x1xbf16> to vector<16x1xf32>
    %90 = arith.truncf %78 : vector<16x128xf32> to vector<16x128xbf16>
    %cst_32 = arith.constant dense<0.000000e+00> : vector<16x128xf32>
    %91 = tpu.matmul %85, %90, %cst_32 {dimension_numbers = #tpu.dot_dimension_numbers<[1], [0], [0], [1], [0, 0, 1, 1], [], []>} : vector<16x16xbf16>, vector<16x128xbf16>, vector<16x128xf32> -> vector<16x128xf32>
    %92 = arith.truncf %72 : vector<16x128xf32> to vector<16x128xbf16>
    %cst_33 = arith.constant dense<0.000000e+00> : vector<16x128xf32>
    %93 = tpu.matmul %86, %92, %cst_33 {dimension_numbers = #tpu.dot_dimension_numbers<[1], [0], [0], [1], [0, 0, 1, 1], [], []>} : vector<16x16xbf16>, vector<16x128xbf16>, vector<16x128xf32> -> vector<16x128xf32>
    %94 = arith.addf %91, %93 : vector<16x128xf32>
    %95 = arith.truncf %83 : vector<16x128xf32> to vector<16x128xbf16>
    %cst_34 = arith.constant dense<0.000000e+00> : vector<16x128xf32>
    %96 = tpu.matmul %87, %95, %cst_34 {dimension_numbers = #tpu.dot_dimension_numbers<[1], [0], [0], [1], [0, 0, 1, 1], [], []>} : vector<16x16xbf16>, vector<16x128xbf16>, vector<16x128xf32> -> vector<16x128xf32>
    %97 = arith.addf %94, %96 : vector<16x128xf32>
    %98 = vector.broadcast %89 : vector<16x1xf32> to vector<16x128xf32>
    %99 = arith.addf %97, %98 : vector<16x128xf32>
    %cst_35 = arith.constant 0.000000e+00 : f32
    %100 = vector.broadcast %cst_35 : f32 to vector<16x128xf32>
    %101 = arith.maximumf %99, %100 : vector<16x128xf32>
    %c128 = arith.constant 128 : index
    %c0_36 = arith.constant 0 : index
    %102 = vector.load %arg2[%c128, %c0_36] : memref<352x128xbf16, #tpu.memory_space<vmem>>, vector<32x128xbf16>
    %103 = vector.extract_strided_slice %102 {offsets = [0, 0], sizes = [32, 16], strides = [1, 1]} : vector<32x128xbf16> to vector<32x16xbf16>
    %104 = vector.extract_strided_slice %102 {offsets = [0, 16], sizes = [32, 1], strides = [1, 1]} : vector<32x128xbf16> to vector<32x1xbf16>
    %105 = arith.extf %104 : vector<32x1xbf16> to vector<32x1xf32>
    %106 = arith.truncf %101 : vector<16x128xf32> to vector<16x128xbf16>
    %cst_37 = arith.constant dense<0.000000e+00> : vector<32x128xf32>
    %107 = tpu.matmul %103, %106, %cst_37 {dimension_numbers = #tpu.dot_dimension_numbers<[1], [0], [0], [1], [0, 0, 1, 1], [], []>} : vector<32x16xbf16>, vector<16x128xbf16>, vector<32x128xf32> -> vector<32x128xf32>
    %108 = vector.broadcast %105 : vector<32x1xf32> to vector<32x128xf32>
    %109 = arith.addf %107, %108 : vector<32x128xf32>
    %110 = arith.addf %62, %109 : vector<32x128xf32>
    %c160 = arith.constant 160 : index
    %c0_38 = arith.constant 0 : index
    %111 = vector.load %arg2[%c160, %c0_38] : memref<352x128xbf16, #tpu.memory_space<vmem>>, vector<8x128xbf16>
    %112 = vector.extract_strided_slice %111 {offsets = [0, 0], sizes = [8, 32], strides = [1, 1]} : vector<8x128xbf16> to vector<8x32xbf16>
    %113 = vector.extract_strided_slice %111 {offsets = [0, 32], sizes = [8, 1], strides = [1, 1]} : vector<8x128xbf16> to vector<8x1xbf16>
    %114 = arith.extf %113 : vector<8x1xbf16> to vector<8x1xf32>
    %115 = arith.truncf %110 : vector<32x128xf32> to vector<32x128xbf16>
    %cst_39 = arith.constant dense<0.000000e+00> : vector<8x128xf32>
    %116 = tpu.matmul %112, %115, %cst_39 {dimension_numbers = #tpu.dot_dimension_numbers<[1], [0], [0], [1], [0, 0, 1, 1], [], []>} : vector<8x32xbf16>, vector<32x128xbf16>, vector<8x128xf32> -> vector<8x128xf32>
    %117 = vector.broadcast %114 : vector<8x1xf32> to vector<8x128xf32>
    %118 = arith.addf %116, %117 : vector<8x128xf32>
    %cst_40 = arith.constant dense<0.000000e+00> : vector<16x128xf32>
    %119 = tpu.matmul %0, %118, %cst_40 {dimension_numbers = #tpu.dot_dimension_numbers<[1], [0], [0], [1], [0, 0, 1, 1], [], []>} : vector<16x8xf32>, vector<8x128xf32>, vector<16x128xf32> -> vector<16x128xf32>
    %120 = arith.mulf %118, %118 : vector<8x128xf32>
    %cst_41 = arith.constant dense<0.000000e+00> : vector<128xf32>
    %121 = vector.multi_reduction <add>, %120, %cst_41 [0] : vector<8x128xf32> to vector<128xf32>
    %122 = vector.shape_cast %121 : vector<128xf32> to vector<1x128xf32>
    %cst_42 = arith.constant 2.000000e+00 : f32
    %123 = vector.broadcast %cst_42 : f32 to vector<16x128xf32>
    %124 = arith.mulf %123, %119 : vector<16x128xf32>
    %125 = vector.broadcast %122 : vector<1x128xf32> to vector<16x128xf32>
    %126 = arith.subf %125, %124 : vector<16x128xf32>
    %127 = vector.broadcast %4 : vector<16x1xf32> to vector<16x128xf32>
    %128 = arith.addf %126, %127 : vector<16x128xf32>
    %cst_43 = arith.constant dense<0x7F800000> : vector<128xf32>
    %129 = vector.multi_reduction <minimumf>, %128, %cst_43 [0] : vector<16x128xf32> to vector<128xf32>
    %130 = vector.shape_cast %129 : vector<128xf32> to vector<1x128xf32>
    %131 = tpu.iota {dimensions = array<i32: 0>} : vector<16x128xi32>
    %132 = arith.sitofp %131 : vector<16x128xi32> to vector<16x128xf32>
    %133 = vector.broadcast %130 : vector<1x128xf32> to vector<16x128xf32>
    %134 = arith.cmpf ole, %128, %133 : vector<16x128xf32>
    %cst_44 = arith.constant 1.600000e+01 : f32
    %135 = vector.broadcast %cst_44 : f32 to vector<16x128xf32>
    %136 = arith.select %134, %132, %135 : vector<16x128xi1>, vector<16x128xf32>
    %cst_45 = arith.constant dense<0x7F800000> : vector<128xf32>
    %137 = vector.multi_reduction <minimumf>, %136, %cst_45 [0] : vector<16x128xf32> to vector<128xf32>
    %138 = vector.shape_cast %137 : vector<128xf32> to vector<1x128xf32>
    %139 = vector.broadcast %138 : vector<1x128xf32> to vector<16x128xf32>
    %140 = arith.cmpf oeq, %132, %139 : vector<16x128xf32>
    %141 = arith.extui %140 : vector<16x128xi1> to vector<16x128xi32>
    %142 = arith.sitofp %141 : vector<16x128xi32> to vector<16x128xf32>
    %cst_46 = arith.constant dense<0.000000e+00> : vector<8x128xf32>
    %143 = tpu.matmul %1, %142, %cst_46 {dimension_numbers = #tpu.dot_dimension_numbers<[1], [0], [0], [1], [0, 0, 1, 1], [], []>} : vector<8x16xf32>, vector<16x128xf32>, vector<8x128xf32> -> vector<8x128xf32>
    %144 = arith.subf %118, %143 : vector<8x128xf32>
    %145 = arith.mulf %144, %144 : vector<8x128xf32>
    %146 = vector.shape_cast %145 : vector<8x128xf32> to vector<1x8x128xf32>
    %cst_47 = arith.constant dense<0.000000e+00> : vector<1xf32>
    %147 = vector.multi_reduction <add>, %146, %cst_47 [1, 2] : vector<1x8x128xf32> to vector<1xf32>
    %148 = vector.shape_cast %147 : vector<1xf32> to vector<1x1x1xf32>
    %149 = vector.extract %148[0, 0, 0] : f32 from vector<1x1x1xf32>
    %cst_48 = arith.constant 0.000000e+00 : f32
    %150 = arith.addf %cst_48, %149 : f32
    %c176 = arith.constant 176 : index
    %c0_49 = arith.constant 0 : index
    %151 = vector.load %arg2[%c176, %c0_49] : memref<352x128xbf16, #tpu.memory_space<vmem>>, vector<32x128xbf16>
    %152 = vector.extract_strided_slice %151 {offsets = [0, 0], sizes = [32, 8], strides = [1, 1]} : vector<32x128xbf16> to vector<32x8xbf16>
    %153 = vector.extract_strided_slice %151 {offsets = [0, 8], sizes = [32, 1], strides = [1, 1]} : vector<32x128xbf16> to vector<32x1xbf16>
    %154 = arith.extf %153 : vector<32x1xbf16> to vector<32x1xf32>
    %155 = arith.truncf %143 : vector<8x128xf32> to vector<8x128xbf16>
    %cst_50 = arith.constant dense<0.000000e+00> : vector<32x128xf32>
    %156 = tpu.matmul %152, %155, %cst_50 {dimension_numbers = #tpu.dot_dimension_numbers<[1], [0], [0], [1], [0, 0, 1, 1], [], []>} : vector<32x8xbf16>, vector<8x128xbf16>, vector<32x128xf32> -> vector<32x128xf32>
    %157 = vector.broadcast %154 : vector<32x1xf32> to vector<32x128xf32>
    %158 = arith.addf %156, %157 : vector<32x128xf32>
    %c208 = arith.constant 208 : index
    %c0_51 = arith.constant 0 : index
    %159 = vector.load %arg2[%c208, %c0_51] : memref<352x128xbf16, #tpu.memory_space<vmem>>, vector<16x128xbf16>
    %160 = vector.extract_strided_slice %159 {offsets = [0, 0], sizes = [16, 32], strides = [1, 1]} : vector<16x128xbf16> to vector<16x32xbf16>
    %161 = vector.extract_strided_slice %159 {offsets = [0, 32], sizes = [16, 1], strides = [1, 1]} : vector<16x128xbf16> to vector<16x1xbf16>
    %162 = arith.extf %161 : vector<16x1xbf16> to vector<16x1xf32>
    %163 = arith.truncf %158 : vector<32x128xf32> to vector<32x128xbf16>
    %cst_52 = arith.constant dense<0.000000e+00> : vector<16x128xf32>
    %164 = tpu.matmul %160, %163, %cst_52 {dimension_numbers = #tpu.dot_dimension_numbers<[1], [0], [0], [1], [0, 0, 1, 1], [], []>} : vector<16x32xbf16>, vector<32x128xbf16>, vector<16x128xf32> -> vector<16x128xf32>
    %165 = vector.broadcast %162 : vector<16x1xf32> to vector<16x128xf32>
    %166 = arith.addf %164, %165 : vector<16x128xf32>
    %cst_53 = arith.constant 0.000000e+00 : f32
    %167 = vector.broadcast %cst_53 : f32 to vector<16x128xf32>
    %168 = arith.maximumf %166, %167 : vector<16x128xf32>
    %169 = tpu.iota {dimensions = array<i32: 1>} : vector<16x128xi32>
    %c0_i32_54 = arith.constant 0 : i32
    %170 = vector.broadcast %c0_i32_54 : i32 to vector<16x128xi32>
    %171 = arith.cmpi eq, %169, %170 : vector<16x128xi32>
    %c1_i32_55 = arith.constant 1 : i32
    %172 = tpu.dynamic_rotate %168 by %c1_i32_55 dim 1 : vector<16x128xf32>, i32 -> vector<16x128xf32>
    %cst_56 = arith.constant 0.000000e+00 : f32
    %173 = vector.broadcast %cst_56 : f32 to vector<16x128xf32>
    %174 = arith.select %171, %173, %172 : vector<16x128xi1>, vector<16x128xf32>
    %c127_i32_57 = arith.constant 127 : i32
    %175 = vector.broadcast %c127_i32_57 : i32 to vector<16x128xi32>
    %176 = arith.cmpi eq, %169, %175 : vector<16x128xi32>
    %c127_i32_58 = arith.constant 127 : i32
    %177 = tpu.dynamic_rotate %168 by %c127_i32_58 dim 1 : vector<16x128xf32>, i32 -> vector<16x128xf32>
    %cst_59 = arith.constant 0.000000e+00 : f32
    %178 = vector.broadcast %cst_59 : f32 to vector<16x128xf32>
    %179 = arith.select %176, %178, %177 : vector<16x128xi1>, vector<16x128xf32>
    %c224 = arith.constant 224 : index
    %c0_60 = arith.constant 0 : index
    %180 = vector.load %arg2[%c224, %c0_60] : memref<352x128xbf16, #tpu.memory_space<vmem>>, vector<16x128xbf16>
    %181 = vector.extract_strided_slice %180 {offsets = [0, 0], sizes = [16, 16], strides = [1, 1]} : vector<16x128xbf16> to vector<16x16xbf16>
    %182 = vector.extract_strided_slice %180 {offsets = [0, 16], sizes = [16, 16], strides = [1, 1]} : vector<16x128xbf16> to vector<16x16xbf16>
    %183 = vector.extract_strided_slice %180 {offsets = [0, 32], sizes = [16, 16], strides = [1, 1]} : vector<16x128xbf16> to vector<16x16xbf16>
    %184 = vector.extract_strided_slice %180 {offsets = [0, 48], sizes = [16, 1], strides = [1, 1]} : vector<16x128xbf16> to vector<16x1xbf16>
    %185 = arith.extf %184 : vector<16x1xbf16> to vector<16x1xf32>
    %186 = arith.truncf %174 : vector<16x128xf32> to vector<16x128xbf16>
    %cst_61 = arith.constant dense<0.000000e+00> : vector<16x128xf32>
    %187 = tpu.matmul %181, %186, %cst_61 {dimension_numbers = #tpu.dot_dimension_numbers<[1], [0], [0], [1], [0, 0, 1, 1], [], []>} : vector<16x16xbf16>, vector<16x128xbf16>, vector<16x128xf32> -> vector<16x128xf32>
    %188 = arith.truncf %168 : vector<16x128xf32> to vector<16x128xbf16>
    %cst_62 = arith.constant dense<0.000000e+00> : vector<16x128xf32>
    %189 = tpu.matmul %182, %188, %cst_62 {dimension_numbers = #tpu.dot_dimension_numbers<[1], [0], [0], [1], [0, 0, 1, 1], [], []>} : vector<16x16xbf16>, vector<16x128xbf16>, vector<16x128xf32> -> vector<16x128xf32>
    %190 = arith.addf %187, %189 : vector<16x128xf32>
    %191 = arith.truncf %179 : vector<16x128xf32> to vector<16x128xbf16>
    %cst_63 = arith.constant dense<0.000000e+00> : vector<16x128xf32>
    %192 = tpu.matmul %183, %191, %cst_63 {dimension_numbers = #tpu.dot_dimension_numbers<[1], [0], [0], [1], [0, 0, 1, 1], [], []>} : vector<16x16xbf16>, vector<16x128xbf16>, vector<16x128xf32> -> vector<16x128xf32>
    %193 = arith.addf %190, %192 : vector<16x128xf32>
    %194 = vector.broadcast %185 : vector<16x1xf32> to vector<16x128xf32>
    %195 = arith.addf %193, %194 : vector<16x128xf32>
    %cst_64 = arith.constant 0.000000e+00 : f32
    %196 = vector.broadcast %cst_64 : f32 to vector<16x128xf32>
    %197 = arith.maximumf %195, %196 : vector<16x128xf32>
    %c240 = arith.constant 240 : index
    %c0_65 = arith.constant 0 : index
    %198 = vector.load %arg2[%c240, %c0_65] : memref<352x128xbf16, #tpu.memory_space<vmem>>, vector<32x128xbf16>
    %199 = vector.extract_strided_slice %198 {offsets = [0, 0], sizes = [32, 16], strides = [1, 1]} : vector<32x128xbf16> to vector<32x16xbf16>
    %200 = vector.extract_strided_slice %198 {offsets = [0, 16], sizes = [32, 1], strides = [1, 1]} : vector<32x128xbf16> to vector<32x1xbf16>
    %201 = arith.extf %200 : vector<32x1xbf16> to vector<32x1xf32>
    %202 = arith.truncf %197 : vector<16x128xf32> to vector<16x128xbf16>
    %cst_66 = arith.constant dense<0.000000e+00> : vector<32x128xf32>
    %203 = tpu.matmul %199, %202, %cst_66 {dimension_numbers = #tpu.dot_dimension_numbers<[1], [0], [0], [1], [0, 0, 1, 1], [], []>} : vector<32x16xbf16>, vector<16x128xbf16>, vector<32x128xf32> -> vector<32x128xf32>
    %204 = vector.broadcast %201 : vector<32x1xf32> to vector<32x128xf32>
    %205 = arith.addf %203, %204 : vector<32x128xf32>
    %206 = arith.addf %158, %205 : vector<32x128xf32>
    %c272 = arith.constant 272 : index
    %c0_67 = arith.constant 0 : index
    %207 = vector.load %arg2[%c272, %c0_67] : memref<352x128xbf16, #tpu.memory_space<vmem>>, vector<16x128xbf16>
    %208 = vector.extract_strided_slice %207 {offsets = [0, 0], sizes = [16, 32], strides = [1, 1]} : vector<16x128xbf16> to vector<16x32xbf16>
    %209 = vector.extract_strided_slice %207 {offsets = [0, 32], sizes = [16, 1], strides = [1, 1]} : vector<16x128xbf16> to vector<16x1xbf16>
    %210 = arith.extf %209 : vector<16x1xbf16> to vector<16x1xf32>
    %211 = arith.truncf %206 : vector<32x128xf32> to vector<32x128xbf16>
    %cst_68 = arith.constant dense<0.000000e+00> : vector<16x128xf32>
    %212 = tpu.matmul %208, %211, %cst_68 {dimension_numbers = #tpu.dot_dimension_numbers<[1], [0], [0], [1], [0, 0, 1, 1], [], []>} : vector<16x32xbf16>, vector<32x128xbf16>, vector<16x128xf32> -> vector<16x128xf32>
    %213 = vector.broadcast %210 : vector<16x1xf32> to vector<16x128xf32>
    %214 = arith.addf %212, %213 : vector<16x128xf32>
    %cst_69 = arith.constant 0.000000e+00 : f32
    %215 = vector.broadcast %cst_69 : f32 to vector<16x128xf32>
    %216 = arith.maximumf %214, %215 : vector<16x128xf32>
    %217 = tpu.iota {dimensions = array<i32: 1>} : vector<16x128xi32>
    %c0_i32_70 = arith.constant 0 : i32
    %218 = vector.broadcast %c0_i32_70 : i32 to vector<16x128xi32>
    %219 = arith.cmpi eq, %217, %218 : vector<16x128xi32>
    %c1_i32_71 = arith.constant 1 : i32
    %220 = tpu.dynamic_rotate %216 by %c1_i32_71 dim 1 : vector<16x128xf32>, i32 -> vector<16x128xf32>
    %cst_72 = arith.constant 0.000000e+00 : f32
    %221 = vector.broadcast %cst_72 : f32 to vector<16x128xf32>
    %222 = arith.select %219, %221, %220 : vector<16x128xi1>, vector<16x128xf32>
    %c127_i32_73 = arith.constant 127 : i32
    %223 = vector.broadcast %c127_i32_73 : i32 to vector<16x128xi32>
    %224 = arith.cmpi eq, %217, %223 : vector<16x128xi32>
    %c127_i32_74 = arith.constant 127 : i32
    %225 = tpu.dynamic_rotate %216 by %c127_i32_74 dim 1 : vector<16x128xf32>, i32 -> vector<16x128xf32>
    %cst_75 = arith.constant 0.000000e+00 : f32
    %226 = vector.broadcast %cst_75 : f32 to vector<16x128xf32>
    %227 = arith.select %224, %226, %225 : vector<16x128xi1>, vector<16x128xf32>
    %c288 = arith.constant 288 : index
    %c0_76 = arith.constant 0 : index
    %228 = vector.load %arg2[%c288, %c0_76] : memref<352x128xbf16, #tpu.memory_space<vmem>>, vector<16x128xbf16>
    %229 = vector.extract_strided_slice %228 {offsets = [0, 0], sizes = [16, 16], strides = [1, 1]} : vector<16x128xbf16> to vector<16x16xbf16>
    %230 = vector.extract_strided_slice %228 {offsets = [0, 16], sizes = [16, 16], strides = [1, 1]} : vector<16x128xbf16> to vector<16x16xbf16>
    %231 = vector.extract_strided_slice %228 {offsets = [0, 32], sizes = [16, 16], strides = [1, 1]} : vector<16x128xbf16> to vector<16x16xbf16>
    %232 = vector.extract_strided_slice %228 {offsets = [0, 48], sizes = [16, 1], strides = [1, 1]} : vector<16x128xbf16> to vector<16x1xbf16>
    %233 = arith.extf %232 : vector<16x1xbf16> to vector<16x1xf32>
    %234 = arith.truncf %222 : vector<16x128xf32> to vector<16x128xbf16>
    %cst_77 = arith.constant dense<0.000000e+00> : vector<16x128xf32>
    %235 = tpu.matmul %229, %234, %cst_77 {dimension_numbers = #tpu.dot_dimension_numbers<[1], [0], [0], [1], [0, 0, 1, 1], [], []>} : vector<16x16xbf16>, vector<16x128xbf16>, vector<16x128xf32> -> vector<16x128xf32>
    %236 = arith.truncf %216 : vector<16x128xf32> to vector<16x128xbf16>
    %cst_78 = arith.constant dense<0.000000e+00> : vector<16x128xf32>
    %237 = tpu.matmul %230, %236, %cst_78 {dimension_numbers = #tpu.dot_dimension_numbers<[1], [0], [0], [1], [0, 0, 1, 1], [], []>} : vector<16x16xbf16>, vector<16x128xbf16>, vector<16x128xf32> -> vector<16x128xf32>
    %238 = arith.addf %235, %237 : vector<16x128xf32>
    %239 = arith.truncf %227 : vector<16x128xf32> to vector<16x128xbf16>
    %cst_79 = arith.constant dense<0.000000e+00> : vector<16x128xf32>
    %240 = tpu.matmul %231, %239, %cst_79 {dimension_numbers = #tpu.dot_dimension_numbers<[1], [0], [0], [1], [0, 0, 1, 1], [], []>} : vector<16x16xbf16>, vector<16x128xbf16>, vector<16x128xf32> -> vector<16x128xf32>
    %241 = arith.addf %238, %240 : vector<16x128xf32>
    %242 = vector.broadcast %233 : vector<16x1xf32> to vector<16x128xf32>
    %243 = arith.addf %241, %242 : vector<16x128xf32>
    %cst_80 = arith.constant 0.000000e+00 : f32
    %244 = vector.broadcast %cst_80 : f32 to vector<16x128xf32>
    %245 = arith.maximumf %243, %244 : vector<16x128xf32>
    %c304 = arith.constant 304 : index
    %c0_81 = arith.constant 0 : index
    %246 = vector.load %arg2[%c304, %c0_81] : memref<352x128xbf16, #tpu.memory_space<vmem>>, vector<32x128xbf16>
    %247 = vector.extract_strided_slice %246 {offsets = [0, 0], sizes = [32, 16], strides = [1, 1]} : vector<32x128xbf16> to vector<32x16xbf16>
    %248 = vector.extract_strided_slice %246 {offsets = [0, 16], sizes = [32, 1], strides = [1, 1]} : vector<32x128xbf16> to vector<32x1xbf16>
    %249 = arith.extf %248 : vector<32x1xbf16> to vector<32x1xf32>
    %250 = arith.truncf %245 : vector<16x128xf32> to vector<16x128xbf16>
    %cst_82 = arith.constant dense<0.000000e+00> : vector<32x128xf32>
    %251 = tpu.matmul %247, %250, %cst_82 {dimension_numbers = #tpu.dot_dimension_numbers<[1], [0], [0], [1], [0, 0, 1, 1], [], []>} : vector<32x16xbf16>, vector<16x128xbf16>, vector<32x128xf32> -> vector<32x128xf32>
    %252 = vector.broadcast %249 : vector<32x1xf32> to vector<32x128xf32>
    %253 = arith.addf %251, %252 : vector<32x128xf32>
    %254 = arith.addf %206, %253 : vector<32x128xf32>
    %c336 = arith.constant 336 : index
    %c0_83 = arith.constant 0 : index
    %255 = vector.load %arg2[%c336, %c0_83] : memref<352x128xbf16, #tpu.memory_space<vmem>>, vector<4x128xbf16>
    %256 = vector.extract_strided_slice %255 {offsets = [0, 0], sizes = [4, 32], strides = [1, 1]} : vector<4x128xbf16> to vector<4x32xbf16>
    %257 = vector.extract_strided_slice %255 {offsets = [0, 32], sizes = [4, 1], strides = [1, 1]} : vector<4x128xbf16> to vector<4x1xbf16>
    %258 = arith.extf %257 : vector<4x1xbf16> to vector<4x1xf32>
    %259 = arith.truncf %254 : vector<32x128xf32> to vector<32x128xbf16>
    %cst_84 = arith.constant dense<0.000000e+00> : vector<4x128xf32>
    %260 = tpu.matmul %256, %259, %cst_84 {dimension_numbers = #tpu.dot_dimension_numbers<[1], [0], [0], [1], [0, 0, 1, 1], [], []>} : vector<4x32xbf16>, vector<32x128xbf16>, vector<4x128xf32> -> vector<4x128xf32>
    %261 = vector.broadcast %258 : vector<4x1xf32> to vector<4x128xf32>
    %262 = arith.addf %260, %261 : vector<4x128xf32>
    %c0_85 = arith.constant 0 : index
    %c0_86 = arith.constant 0 : index
    %c0_87 = arith.constant 0 : index
    %263 = vector.load %arg5[%c0_85, %c0_86, %c0_87] : memref<2x4x128xf32, #tpu.memory_space<vmem>>, vector<1x4x128xf32>
    %264 = vector.shape_cast %263 : vector<1x4x128xf32> to vector<4x128xf32>
    %265 = vector.shape_cast %262 : vector<4x128xf32> to vector<1x4x128xf32>
    tpu.vector_store %arg5[%c0_85, %c0_86, %c0_87], %265 {strides = array<i32>} : memref<2x4x128xf32, #tpu.memory_space<vmem>>, vector<1x4x128xf32>,
    %c1 = arith.constant 1 : index
    %c0_88 = arith.constant 0 : index
    %c0_89 = arith.constant 0 : index
    %266 = vector.load %arg1[%c1, %c0_88, %c0_89] : memref<2x4x128xf32, #tpu.memory_space<vmem>>, vector<1x4x128xf32>
    %267 = vector.shape_cast %266 : vector<1x4x128xf32> to vector<4x128xf32>
    %c0_90 = arith.constant 0 : index
    %c0_91 = arith.constant 0 : index
    %268 = vector.load %arg2[%c0_90, %c0_91] : memref<352x128xbf16, #tpu.memory_space<vmem>>, vector<32x128xbf16>
    %269 = vector.extract_strided_slice %268 {offsets = [0, 0], sizes = [32, 4], strides = [1, 1]} : vector<32x128xbf16> to vector<32x4xbf16>
    %270 = vector.extract_strided_slice %268 {offsets = [0, 4], sizes = [32, 1], strides = [1, 1]} : vector<32x128xbf16> to vector<32x1xbf16>
    %271 = arith.extf %270 : vector<32x1xbf16> to vector<32x1xf32>
    %272 = arith.truncf %267 : vector<4x128xf32> to vector<4x128xbf16>
    %cst_92 = arith.constant dense<0.000000e+00> : vector<32x128xf32>
    %273 = tpu.matmul %269, %272, %cst_92 {dimension_numbers = #tpu.dot_dimension_numbers<[1], [0], [0], [1], [0, 0, 1, 1], [], []>} : vector<32x4xbf16>, vector<4x128xbf16>, vector<32x128xf32> -> vector<32x128xf32>
    %274 = vector.broadcast %271 : vector<32x1xf32> to vector<32x128xf32>
    %275 = arith.addf %273, %274 : vector<32x128xf32>
    %c32_93 = arith.constant 32 : index
    %c0_94 = arith.constant 0 : index
    %276 = vector.load %arg2[%c32_93, %c0_94] : memref<352x128xbf16, #tpu.memory_space<vmem>>, vector<16x128xbf16>
    %277 = vector.extract_strided_slice %276 {offsets = [0, 0], sizes = [16, 32], strides = [1, 1]} : vector<16x128xbf16> to vector<16x32xbf16>
    %278 = vector.extract_strided_slice %276 {offsets = [0, 32], sizes = [16, 1], strides = [1, 1]} : vector<16x128xbf16> to vector<16x1xbf16>
    %279 = arith.extf %278 : vector<16x1xbf16> to vector<16x1xf32>
    %280 = arith.truncf %275 : vector<32x128xf32> to vector<32x128xbf16>
    %cst_95 = arith.constant dense<0.000000e+00> : vector<16x128xf32>
    %281 = tpu.matmul %277, %280, %cst_95 {dimension_numbers = #tpu.dot_dimension_numbers<[1], [0], [0], [1], [0, 0, 1, 1], [], []>} : vector<16x32xbf16>, vector<32x128xbf16>, vector<16x128xf32> -> vector<16x128xf32>
    %282 = vector.broadcast %279 : vector<16x1xf32> to vector<16x128xf32>
    %283 = arith.addf %281, %282 : vector<16x128xf32>
    %cst_96 = arith.constant 0.000000e+00 : f32
    %284 = vector.broadcast %cst_96 : f32 to vector<16x128xf32>
    %285 = arith.maximumf %283, %284 : vector<16x128xf32>
    %286 = tpu.iota {dimensions = array<i32: 1>} : vector<16x128xi32>
    %c0_i32_97 = arith.constant 0 : i32
    %287 = vector.broadcast %c0_i32_97 : i32 to vector<16x128xi32>
    %288 = arith.cmpi eq, %286, %287 : vector<16x128xi32>
    %c1_i32_98 = arith.constant 1 : i32
    %289 = tpu.dynamic_rotate %285 by %c1_i32_98 dim 1 : vector<16x128xf32>, i32 -> vector<16x128xf32>
    %cst_99 = arith.constant 0.000000e+00 : f32
    %290 = vector.broadcast %cst_99 : f32 to vector<16x128xf32>
    %291 = arith.select %288, %290, %289 : vector<16x128xi1>, vector<16x128xf32>
    %c127_i32_100 = arith.constant 127 : i32
    %292 = vector.broadcast %c127_i32_100 : i32 to vector<16x128xi32>
    %293 = arith.cmpi eq, %286, %292 : vector<16x128xi32>
    %c127_i32_101 = arith.constant 127 : i32
    %294 = tpu.dynamic_rotate %285 by %c127_i32_101 dim 1 : vector<16x128xf32>, i32 -> vector<16x128xf32>
    %cst_102 = arith.constant 0.000000e+00 : f32
    %295 = vector.broadcast %cst_102 : f32 to vector<16x128xf32>
    %296 = arith.select %293, %295, %294 : vector<16x128xi1>, vector<16x128xf32>
    %c48_103 = arith.constant 48 : index
    %c0_104 = arith.constant 0 : index
    %297 = vector.load %arg2[%c48_103, %c0_104] : memref<352x128xbf16, #tpu.memory_space<vmem>>, vector<16x128xbf16>
    %298 = vector.extract_strided_slice %297 {offsets = [0, 0], sizes = [16, 16], strides = [1, 1]} : vector<16x128xbf16> to vector<16x16xbf16>
    %299 = vector.extract_strided_slice %297 {offsets = [0, 16], sizes = [16, 16], strides = [1, 1]} : vector<16x128xbf16> to vector<16x16xbf16>
    %300 = vector.extract_strided_slice %297 {offsets = [0, 32], sizes = [16, 16], strides = [1, 1]} : vector<16x128xbf16> to vector<16x16xbf16>
    %301 = vector.extract_strided_slice %297 {offsets = [0, 48], sizes = [16, 1], strides = [1, 1]} : vector<16x128xbf16> to vector<16x1xbf16>
    %302 = arith.extf %301 : vector<16x1xbf16> to vector<16x1xf32>
    %303 = arith.truncf %291 : vector<16x128xf32> to vector<16x128xbf16>
    %cst_105 = arith.constant dense<0.000000e+00> : vector<16x128xf32>
    %304 = tpu.matmul %298, %303, %cst_105 {dimension_numbers = #tpu.dot_dimension_numbers<[1], [0], [0], [1], [0, 0, 1, 1], [], []>} : vector<16x16xbf16>, vector<16x128xbf16>, vector<16x128xf32> -> vector<16x128xf32>
    %305 = arith.truncf %285 : vector<16x128xf32> to vector<16x128xbf16>
    %cst_106 = arith.constant dense<0.000000e+00> : vector<16x128xf32>
    %306 = tpu.matmul %299, %305, %cst_106 {dimension_numbers = #tpu.dot_dimension_numbers<[1], [0], [0], [1], [0, 0, 1, 1], [], []>} : vector<16x16xbf16>, vector<16x128xbf16>, vector<16x128xf32> -> vector<16x128xf32>
    %307 = arith.addf %304, %306 : vector<16x128xf32>
    %308 = arith.truncf %296 : vector<16x128xf32> to vector<16x128xbf16>
    %cst_107 = arith.constant dense<0.000000e+00> : vector<16x128xf32>
    %309 = tpu.matmul %300, %308, %cst_107 {dimension_numbers = #tpu.dot_dimension_numbers<[1], [0], [0], [1], [0, 0, 1, 1], [], []>} : vector<16x16xbf16>, vector<16x128xbf16>, vector<16x128xf32> -> vector<16x128xf32>
    %310 = arith.addf %307, %309 : vector<16x128xf32>
    %311 = vector.broadcast %302 : vector<16x1xf32> to vector<16x128xf32>
    %312 = arith.addf %310, %311 : vector<16x128xf32>
    %cst_108 = arith.constant 0.000000e+00 : f32
    %313 = vector.broadcast %cst_108 : f32 to vector<16x128xf32>
    %314 = arith.maximumf %312, %313 : vector<16x128xf32>
    %c64_109 = arith.constant 64 : index
    %c0_110 = arith.constant 0 : index
    %315 = vector.load %arg2[%c64_109, %c0_110] : memref<352x128xbf16, #tpu.memory_space<vmem>>, vector<32x128xbf16>
    %316 = vector.extract_strided_slice %315 {offsets = [0, 0], sizes = [32, 16], strides = [1, 1]} : vector<32x128xbf16> to vector<32x16xbf16>
    %317 = vector.extract_strided_slice %315 {offsets = [0, 16], sizes = [32, 1], strides = [1, 1]} : vector<32x128xbf16> to vector<32x1xbf16>
    %318 = arith.extf %317 : vector<32x1xbf16> to vector<32x1xf32>
    %319 = arith.truncf %314 : vector<16x128xf32> to vector<16x128xbf16>
    %cst_111 = arith.constant dense<0.000000e+00> : vector<32x128xf32>
    %320 = tpu.matmul %316, %319, %cst_111 {dimension_numbers = #tpu.dot_dimension_numbers<[1], [0], [0], [1], [0, 0, 1, 1], [], []>} : vector<32x16xbf16>, vector<16x128xbf16>, vector<32x128xf32> -> vector<32x128xf32>
    %321 = vector.broadcast %318 : vector<32x1xf32> to vector<32x128xf32>
    %322 = arith.addf %320, %321 : vector<32x128xf32>
    %323 = arith.addf %275, %322 : vector<32x128xf32>
    %c96_112 = arith.constant 96 : index
    %c0_113 = arith.constant 0 : index
    %324 = vector.load %arg2[%c96_112, %c0_113] : memref<352x128xbf16, #tpu.memory_space<vmem>>, vector<16x128xbf16>
    %325 = vector.extract_strided_slice %324 {offsets = [0, 0], sizes = [16, 32], strides = [1, 1]} : vector<16x128xbf16> to vector<16x32xbf16>
    %326 = vector.extract_strided_slice %324 {offsets = [0, 32], sizes = [16, 1], strides = [1, 1]} : vector<16x128xbf16> to vector<16x1xbf16>
    %327 = arith.extf %326 : vector<16x1xbf16> to vector<16x1xf32>
    %328 = arith.truncf %323 : vector<32x128xf32> to vector<32x128xbf16>
    %cst_114 = arith.constant dense<0.000000e+00> : vector<16x128xf32>
    %329 = tpu.matmul %325, %328, %cst_114 {dimension_numbers = #tpu.dot_dimension_numbers<[1], [0], [0], [1], [0, 0, 1, 1], [], []>} : vector<16x32xbf16>, vector<32x128xbf16>, vector<16x128xf32> -> vector<16x128xf32>
    %330 = vector.broadcast %327 : vector<16x1xf32> to vector<16x128xf32>
    %331 = arith.addf %329, %330 : vector<16x128xf32>
    %cst_115 = arith.constant 0.000000e+00 : f32
    %332 = vector.broadcast %cst_115 : f32 to vector<16x128xf32>
    %333 = arith.maximumf %331, %332 : vector<16x128xf32>
    %334 = tpu.iota {dimensions = array<i32: 1>} : vector<16x128xi32>
    %c0_i32_116 = arith.constant 0 : i32
    %335 = vector.broadcast %c0_i32_116 : i32 to vector<16x128xi32>
    %336 = arith.cmpi eq, %334, %335 : vector<16x128xi32>
    %c1_i32_117 = arith.constant 1 : i32
    %337 = tpu.dynamic_rotate %333 by %c1_i32_117 dim 1 : vector<16x128xf32>, i32 -> vector<16x128xf32>
    %cst_118 = arith.constant 0.000000e+00 : f32
    %338 = vector.broadcast %cst_118 : f32 to vector<16x128xf32>
    %339 = arith.select %336, %338, %337 : vector<16x128xi1>, vector<16x128xf32>
    %c127_i32_119 = arith.constant 127 : i32
    %340 = vector.broadcast %c127_i32_119 : i32 to vector<16x128xi32>
    %341 = arith.cmpi eq, %334, %340 : vector<16x128xi32>
    %c127_i32_120 = arith.constant 127 : i32
    %342 = tpu.dynamic_rotate %333 by %c127_i32_120 dim 1 : vector<16x128xf32>, i32 -> vector<16x128xf32>
    %cst_121 = arith.constant 0.000000e+00 : f32
    %343 = vector.broadcast %cst_121 : f32 to vector<16x128xf32>
    %344 = arith.select %341, %343, %342 : vector<16x128xi1>, vector<16x128xf32>
    %c112_122 = arith.constant 112 : index
    %c0_123 = arith.constant 0 : index
    %345 = vector.load %arg2[%c112_122, %c0_123] : memref<352x128xbf16, #tpu.memory_space<vmem>>, vector<16x128xbf16>
    %346 = vector.extract_strided_slice %345 {offsets = [0, 0], sizes = [16, 16], strides = [1, 1]} : vector<16x128xbf16> to vector<16x16xbf16>
    %347 = vector.extract_strided_slice %345 {offsets = [0, 16], sizes = [16, 16], strides = [1, 1]} : vector<16x128xbf16> to vector<16x16xbf16>
    %348 = vector.extract_strided_slice %345 {offsets = [0, 32], sizes = [16, 16], strides = [1, 1]} : vector<16x128xbf16> to vector<16x16xbf16>
    %349 = vector.extract_strided_slice %345 {offsets = [0, 48], sizes = [16, 1], strides = [1, 1]} : vector<16x128xbf16> to vector<16x1xbf16>
    %350 = arith.extf %349 : vector<16x1xbf16> to vector<16x1xf32>
    %351 = arith.truncf %339 : vector<16x128xf32> to vector<16x128xbf16>
    %cst_124 = arith.constant dense<0.000000e+00> : vector<16x128xf32>
    %352 = tpu.matmul %346, %351, %cst_124 {dimension_numbers = #tpu.dot_dimension_numbers<[1], [0], [0], [1], [0, 0, 1, 1], [], []>} : vector<16x16xbf16>, vector<16x128xbf16>, vector<16x128xf32> -> vector<16x128xf32>
    %353 = arith.truncf %333 : vector<16x128xf32> to vector<16x128xbf16>
    %cst_125 = arith.constant dense<0.000000e+00> : vector<16x128xf32>
    %354 = tpu.matmul %347, %353, %cst_125 {dimension_numbers = #tpu.dot_dimension_numbers<[1], [0], [0], [1], [0, 0, 1, 1], [], []>} : vector<16x16xbf16>, vector<16x128xbf16>, vector<16x128xf32> -> vector<16x128xf32>
    %355 = arith.addf %352, %354 : vector<16x128xf32>
    %356 = arith.truncf %344 : vector<16x128xf32> to vector<16x128xbf16>
    %cst_126 = arith.constant dense<0.000000e+00> : vector<16x128xf32>
    %357 = tpu.matmul %348, %356, %cst_126 {dimension_numbers = #tpu.dot_dimension_numbers<[1], [0], [0], [1], [0, 0, 1, 1], [], []>} : vector<16x16xbf16>, vector<16x128xbf16>, vector<16x128xf32> -> vector<16x128xf32>
    %358 = arith.addf %355, %357 : vector<16x128xf32>
    %359 = vector.broadcast %350 : vector<16x1xf32> to vector<16x128xf32>
    %360 = arith.addf %358, %359 : vector<16x128xf32>
    %cst_127 = arith.constant 0.000000e+00 : f32
    %361 = vector.broadcast %cst_127 : f32 to vector<16x128xf32>
    %362 = arith.maximumf %360, %361 : vector<16x128xf32>
    %c128_128 = arith.constant 128 : index
    %c0_129 = arith.constant 0 : index
    %363 = vector.load %arg2[%c128_128, %c0_129] : memref<352x128xbf16, #tpu.memory_space<vmem>>, vector<32x128xbf16>
    %364 = vector.extract_strided_slice %363 {offsets = [0, 0], sizes = [32, 16], strides = [1, 1]} : vector<32x128xbf16> to vector<32x16xbf16>
    %365 = vector.extract_strided_slice %363 {offsets = [0, 16], sizes = [32, 1], strides = [1, 1]} : vector<32x128xbf16> to vector<32x1xbf16>
    %366 = arith.extf %365 : vector<32x1xbf16> to vector<32x1xf32>
    %367 = arith.truncf %362 : vector<16x128xf32> to vector<16x128xbf16>
    %cst_130 = arith.constant dense<0.000000e+00> : vector<32x128xf32>
    %368 = tpu.matmul %364, %367, %cst_130 {dimension_numbers = #tpu.dot_dimension_numbers<[1], [0], [0], [1], [0, 0, 1, 1], [], []>} : vector<32x16xbf16>, vector<16x128xbf16>, vector<32x128xf32> -> vector<32x128xf32>
    %369 = vector.broadcast %366 : vector<32x1xf32> to vector<32x128xf32>
    %370 = arith.addf %368, %369 : vector<32x128xf32>
    %371 = arith.addf %323, %370 : vector<32x128xf32>
    %c160_131 = arith.constant 160 : index
    %c0_132 = arith.constant 0 : index
    %372 = vector.load %arg2[%c160_131, %c0_132] : memref<352x128xbf16, #tpu.memory_space<vmem>>, vector<8x128xbf16>
    %373 = vector.extract_strided_slice %372 {offsets = [0, 0], sizes = [8, 32], strides = [1, 1]} : vector<8x128xbf16> to vector<8x32xbf16>
    %374 = vector.extract_strided_slice %372 {offsets = [0, 32], sizes = [8, 1], strides = [1, 1]} : vector<8x128xbf16> to vector<8x1xbf16>
    %375 = arith.extf %374 : vector<8x1xbf16> to vector<8x1xf32>
    %376 = arith.truncf %371 : vector<32x128xf32> to vector<32x128xbf16>
    %cst_133 = arith.constant dense<0.000000e+00> : vector<8x128xf32>
    %377 = tpu.matmul %373, %376, %cst_133 {dimension_numbers = #tpu.dot_dimension_numbers<[1], [0], [0], [1], [0, 0, 1, 1], [], []>} : vector<8x32xbf16>, vector<32x128xbf16>, vector<8x128xf32> -> vector<8x128xf32>
    %378 = vector.broadcast %375 : vector<8x1xf32> to vector<8x128xf32>
    %379 = arith.addf %377, %378 : vector<8x128xf32>
    %cst_134 = arith.constant dense<0.000000e+00> : vector<16x128xf32>
    %380 = tpu.matmul %0, %379, %cst_134 {dimension_numbers = #tpu.dot_dimension_numbers<[1], [0], [0], [1], [0, 0, 1, 1], [], []>} : vector<16x8xf32>, vector<8x128xf32>, vector<16x128xf32> -> vector<16x128xf32>
    %381 = arith.mulf %379, %379 : vector<8x128xf32>
    %cst_135 = arith.constant dense<0.000000e+00> : vector<128xf32>
    %382 = vector.multi_reduction <add>, %381, %cst_135 [0] : vector<8x128xf32> to vector<128xf32>
    %383 = vector.shape_cast %382 : vector<128xf32> to vector<1x128xf32>
    %cst_136 = arith.constant 2.000000e+00 : f32
    %384 = vector.broadcast %cst_136 : f32 to vector<16x128xf32>
    %385 = arith.mulf %384, %380 : vector<16x128xf32>
    %386 = vector.broadcast %383 : vector<1x128xf32> to vector<16x128xf32>
    %387 = arith.subf %386, %385 : vector<16x128xf32>
    %388 = vector.broadcast %4 : vector<16x1xf32> to vector<16x128xf32>
    %389 = arith.addf %387, %388 : vector<16x128xf32>
    %cst_137 = arith.constant dense<0x7F800000> : vector<128xf32>
    %390 = vector.multi_reduction <minimumf>, %389, %cst_137 [0] : vector<16x128xf32> to vector<128xf32>
    %391 = vector.shape_cast %390 : vector<128xf32> to vector<1x128xf32>
    %392 = tpu.iota {dimensions = array<i32: 0>} : vector<16x128xi32>
    %393 = arith.sitofp %392 : vector<16x128xi32> to vector<16x128xf32>
    %394 = vector.broadcast %391 : vector<1x128xf32> to vector<16x128xf32>
    %395 = arith.cmpf ole, %389, %394 : vector<16x128xf32>
    %cst_138 = arith.constant 1.600000e+01 : f32
    %396 = vector.broadcast %cst_138 : f32 to vector<16x128xf32>
    %397 = arith.select %395, %393, %396 : vector<16x128xi1>, vector<16x128xf32>
    %cst_139 = arith.constant dense<0x7F800000> : vector<128xf32>
    %398 = vector.multi_reduction <minimumf>, %397, %cst_139 [0] : vector<16x128xf32> to vector<128xf32>
    %399 = vector.shape_cast %398 : vector<128xf32> to vector<1x128xf32>
    %400 = vector.broadcast %399 : vector<1x128xf32> to vector<16x128xf32>
    %401 = arith.cmpf oeq, %393, %400 : vector<16x128xf32>
    %402 = arith.extui %401 : vector<16x128xi1> to vector<16x128xi32>
    %403 = arith.sitofp %402 : vector<16x128xi32> to vector<16x128xf32>
    %cst_140 = arith.constant dense<0.000000e+00> : vector<8x128xf32>
    %404 = tpu.matmul %1, %403, %cst_140 {dimension_numbers = #tpu.dot_dimension_numbers<[1], [0], [0], [1], [0, 0, 1, 1], [], []>} : vector<8x16xf32>, vector<16x128xf32>, vector<8x128xf32> -> vector<8x128xf32>
    %405 = arith.subf %379, %404 : vector<8x128xf32>
    %406 = arith.mulf %405, %405 : vector<8x128xf32>
    %407 = vector.shape_cast %406 : vector<8x128xf32> to vector<1x8x128xf32>
    %cst_141 = arith.constant dense<0.000000e+00> : vector<1xf32>
    %408 = vector.multi_reduction <add>, %407, %cst_141 [1, 2] : vector<1x8x128xf32> to vector<1xf32>
    %409 = vector.shape_cast %408 : vector<1xf32> to vector<1x1x1xf32>
    %410 = vector.extract %409[0, 0, 0] : f32 from vector<1x1x1xf32>
    %411 = arith.addf %150, %410 : f32
    %c176_142 = arith.constant 176 : index
    %c0_143 = arith.constant 0 : index
    %412 = vector.load %arg2[%c176_142, %c0_143] : memref<352x128xbf16, #tpu.memory_space<vmem>>, vector<32x128xbf16>
    %413 = vector.extract_strided_slice %412 {offsets = [0, 0], sizes = [32, 8], strides = [1, 1]} : vector<32x128xbf16> to vector<32x8xbf16>
    %414 = vector.extract_strided_slice %412 {offsets = [0, 8], sizes = [32, 1], strides = [1, 1]} : vector<32x128xbf16> to vector<32x1xbf16>
    %415 = arith.extf %414 : vector<32x1xbf16> to vector<32x1xf32>
    %416 = arith.truncf %404 : vector<8x128xf32> to vector<8x128xbf16>
    %cst_144 = arith.constant dense<0.000000e+00> : vector<32x128xf32>
    %417 = tpu.matmul %413, %416, %cst_144 {dimension_numbers = #tpu.dot_dimension_numbers<[1], [0], [0], [1], [0, 0, 1, 1], [], []>} : vector<32x8xbf16>, vector<8x128xbf16>, vector<32x128xf32> -> vector<32x128xf32>
    %418 = vector.broadcast %415 : vector<32x1xf32> to vector<32x128xf32>
    %419 = arith.addf %417, %418 : vector<32x128xf32>
    %c208_145 = arith.constant 208 : index
    %c0_146 = arith.constant 0 : index
    %420 = vector.load %arg2[%c208_145, %c0_146] : memref<352x128xbf16, #tpu.memory_space<vmem>>, vector<16x128xbf16>
    %421 = vector.extract_strided_slice %420 {offsets = [0, 0], sizes = [16, 32], strides = [1, 1]} : vector<16x128xbf16> to vector<16x32xbf16>
    %422 = vector.extract_strided_slice %420 {offsets = [0, 32], sizes = [16, 1], strides = [1, 1]} : vector<16x128xbf16> to vector<16x1xbf16>
    %423 = arith.extf %422 : vector<16x1xbf16> to vector<16x1xf32>
    %424 = arith.truncf %419 : vector<32x128xf32> to vector<32x128xbf16>
    %cst_147 = arith.constant dense<0.000000e+00> : vector<16x128xf32>
    %425 = tpu.matmul %421, %424, %cst_147 {dimension_numbers = #tpu.dot_dimension_numbers<[1], [0], [0], [1], [0, 0, 1, 1], [], []>} : vector<16x32xbf16>, vector<32x128xbf16>, vector<16x128xf32> -> vector<16x128xf32>
    %426 = vector.broadcast %423 : vector<16x1xf32> to vector<16x128xf32>
    %427 = arith.addf %425, %426 : vector<16x128xf32>
    %cst_148 = arith.constant 0.000000e+00 : f32
    %428 = vector.broadcast %cst_148 : f32 to vector<16x128xf32>
    %429 = arith.maximumf %427, %428 : vector<16x128xf32>
    %430 = tpu.iota {dimensions = array<i32: 1>} : vector<16x128xi32>
    %c0_i32_149 = arith.constant 0 : i32
    %431 = vector.broadcast %c0_i32_149 : i32 to vector<16x128xi32>
    %432 = arith.cmpi eq, %430, %431 : vector<16x128xi32>
    %c1_i32_150 = arith.constant 1 : i32
    %433 = tpu.dynamic_rotate %429 by %c1_i32_150 dim 1 : vector<16x128xf32>, i32 -> vector<16x128xf32>
    %cst_151 = arith.constant 0.000000e+00 : f32
    %434 = vector.broadcast %cst_151 : f32 to vector<16x128xf32>
    %435 = arith.select %432, %434, %433 : vector<16x128xi1>, vector<16x128xf32>
    %c127_i32_152 = arith.constant 127 : i32
    %436 = vector.broadcast %c127_i32_152 : i32 to vector<16x128xi32>
    %437 = arith.cmpi eq, %430, %436 : vector<16x128xi32>
    %c127_i32_153 = arith.constant 127 : i32
    %438 = tpu.dynamic_rotate %429 by %c127_i32_153 dim 1 : vector<16x128xf32>, i32 -> vector<16x128xf32>
    %cst_154 = arith.constant 0.000000e+00 : f32
    %439 = vector.broadcast %cst_154 : f32 to vector<16x128xf32>
    %440 = arith.select %437, %439, %438 : vector<16x128xi1>, vector<16x128xf32>
    %c224_155 = arith.constant 224 : index
    %c0_156 = arith.constant 0 : index
    %441 = vector.load %arg2[%c224_155, %c0_156] : memref<352x128xbf16, #tpu.memory_space<vmem>>, vector<16x128xbf16>
    %442 = vector.extract_strided_slice %441 {offsets = [0, 0], sizes = [16, 16], strides = [1, 1]} : vector<16x128xbf16> to vector<16x16xbf16>
    %443 = vector.extract_strided_slice %441 {offsets = [0, 16], sizes = [16, 16], strides = [1, 1]} : vector<16x128xbf16> to vector<16x16xbf16>
    %444 = vector.extract_strided_slice %441 {offsets = [0, 32], sizes = [16, 16], strides = [1, 1]} : vector<16x128xbf16> to vector<16x16xbf16>
    %445 = vector.extract_strided_slice %441 {offsets = [0, 48], sizes = [16, 1], strides = [1, 1]} : vector<16x128xbf16> to vector<16x1xbf16>
    %446 = arith.extf %445 : vector<16x1xbf16> to vector<16x1xf32>
    %447 = arith.truncf %435 : vector<16x128xf32> to vector<16x128xbf16>
    %cst_157 = arith.constant dense<0.000000e+00> : vector<16x128xf32>
    %448 = tpu.matmul %442, %447, %cst_157 {dimension_numbers = #tpu.dot_dimension_numbers<[1], [0], [0], [1], [0, 0, 1, 1], [], []>} : vector<16x16xbf16>, vector<16x128xbf16>, vector<16x128xf32> -> vector<16x128xf32>
    %449 = arith.truncf %429 : vector<16x128xf32> to vector<16x128xbf16>
    %cst_158 = arith.constant dense<0.000000e+00> : vector<16x128xf32>
    %450 = tpu.matmul %443, %449, %cst_158 {dimension_numbers = #tpu.dot_dimension_numbers<[1], [0], [0], [1], [0, 0, 1, 1], [], []>} : vector<16x16xbf16>, vector<16x128xbf16>, vector<16x128xf32> -> vector<16x128xf32>
    %451 = arith.addf %448, %450 : vector<16x128xf32>
    %452 = arith.truncf %440 : vector<16x128xf32> to vector<16x128xbf16>
    %cst_159 = arith.constant dense<0.000000e+00> : vector<16x128xf32>
    %453 = tpu.matmul %444, %452, %cst_159 {dimension_numbers = #tpu.dot_dimension_numbers<[1], [0], [0], [1], [0, 0, 1, 1], [], []>} : vector<16x16xbf16>, vector<16x128xbf16>, vector<16x128xf32> -> vector<16x128xf32>
    %454 = arith.addf %451, %453 : vector<16x128xf32>
    %455 = vector.broadcast %446 : vector<16x1xf32> to vector<16x128xf32>
    %456 = arith.addf %454, %455 : vector<16x128xf32>
    %cst_160 = arith.constant 0.000000e+00 : f32
    %457 = vector.broadcast %cst_160 : f32 to vector<16x128xf32>
    %458 = arith.maximumf %456, %457 : vector<16x128xf32>
    %c240_161 = arith.constant 240 : index
    %c0_162 = arith.constant 0 : index
    %459 = vector.load %arg2[%c240_161, %c0_162] : memref<352x128xbf16, #tpu.memory_space<vmem>>, vector<32x128xbf16>
    %460 = vector.extract_strided_slice %459 {offsets = [0, 0], sizes = [32, 16], strides = [1, 1]} : vector<32x128xbf16> to vector<32x16xbf16>
    %461 = vector.extract_strided_slice %459 {offsets = [0, 16], sizes = [32, 1], strides = [1, 1]} : vector<32x128xbf16> to vector<32x1xbf16>
    %462 = arith.extf %461 : vector<32x1xbf16> to vector<32x1xf32>
    %463 = arith.truncf %458 : vector<16x128xf32> to vector<16x128xbf16>
    %cst_163 = arith.constant dense<0.000000e+00> : vector<32x128xf32>
    %464 = tpu.matmul %460, %463, %cst_163 {dimension_numbers = #tpu.dot_dimension_numbers<[1], [0], [0], [1], [0, 0, 1, 1], [], []>} : vector<32x16xbf16>, vector<16x128xbf16>, vector<32x128xf32> -> vector<32x128xf32>
    %465 = vector.broadcast %462 : vector<32x1xf32> to vector<32x128xf32>
    %466 = arith.addf %464, %465 : vector<32x128xf32>
    %467 = arith.addf %419, %466 : vector<32x128xf32>
    %c272_164 = arith.constant 272 : index
    %c0_165 = arith.constant 0 : index
    %468 = vector.load %arg2[%c272_164, %c0_165] : memref<352x128xbf16, #tpu.memory_space<vmem>>, vector<16x128xbf16>
    %469 = vector.extract_strided_slice %468 {offsets = [0, 0], sizes = [16, 32], strides = [1, 1]} : vector<16x128xbf16> to vector<16x32xbf16>
    %470 = vector.extract_strided_slice %468 {offsets = [0, 32], sizes = [16, 1], strides = [1, 1]} : vector<16x128xbf16> to vector<16x1xbf16>
    %471 = arith.extf %470 : vector<16x1xbf16> to vector<16x1xf32>
    %472 = arith.truncf %467 : vector<32x128xf32> to vector<32x128xbf16>
    %cst_166 = arith.constant dense<0.000000e+00> : vector<16x128xf32>
    %473 = tpu.matmul %469, %472, %cst_166 {dimension_numbers = #tpu.dot_dimension_numbers<[1], [0], [0], [1], [0, 0, 1, 1], [], []>} : vector<16x32xbf16>, vector<32x128xbf16>, vector<16x128xf32> -> vector<16x128xf32>
    %474 = vector.broadcast %471 : vector<16x1xf32> to vector<16x128xf32>
    %475 = arith.addf %473, %474 : vector<16x128xf32>
    %cst_167 = arith.constant 0.000000e+00 : f32
    %476 = vector.broadcast %cst_167 : f32 to vector<16x128xf32>
    %477 = arith.maximumf %475, %476 : vector<16x128xf32>
    %478 = tpu.iota {dimensions = array<i32: 1>} : vector<16x128xi32>
    %c0_i32_168 = arith.constant 0 : i32
    %479 = vector.broadcast %c0_i32_168 : i32 to vector<16x128xi32>
    %480 = arith.cmpi eq, %478, %479 : vector<16x128xi32>
    %c1_i32_169 = arith.constant 1 : i32
    %481 = tpu.dynamic_rotate %477 by %c1_i32_169 dim 1 : vector<16x128xf32>, i32 -> vector<16x128xf32>
    %cst_170 = arith.constant 0.000000e+00 : f32
    %482 = vector.broadcast %cst_170 : f32 to vector<16x128xf32>
    %483 = arith.select %480, %482, %481 : vector<16x128xi1>, vector<16x128xf32>
    %c127_i32_171 = arith.constant 127 : i32
    %484 = vector.broadcast %c127_i32_171 : i32 to vector<16x128xi32>
    %485 = arith.cmpi eq, %478, %484 : vector<16x128xi32>
    %c127_i32_172 = arith.constant 127 : i32
    %486 = tpu.dynamic_rotate %477 by %c127_i32_172 dim 1 : vector<16x128xf32>, i32 -> vector<16x128xf32>
    %cst_173 = arith.constant 0.000000e+00 : f32
    %487 = vector.broadcast %cst_173 : f32 to vector<16x128xf32>
    %488 = arith.select %485, %487, %486 : vector<16x128xi1>, vector<16x128xf32>
    %c288_174 = arith.constant 288 : index
    %c0_175 = arith.constant 0 : index
    %489 = vector.load %arg2[%c288_174, %c0_175] : memref<352x128xbf16, #tpu.memory_space<vmem>>, vector<16x128xbf16>
    %490 = vector.extract_strided_slice %489 {offsets = [0, 0], sizes = [16, 16], strides = [1, 1]} : vector<16x128xbf16> to vector<16x16xbf16>
    %491 = vector.extract_strided_slice %489 {offsets = [0, 16], sizes = [16, 16], strides = [1, 1]} : vector<16x128xbf16> to vector<16x16xbf16>
    %492 = vector.extract_strided_slice %489 {offsets = [0, 32], sizes = [16, 16], strides = [1, 1]} : vector<16x128xbf16> to vector<16x16xbf16>
    %493 = vector.extract_strided_slice %489 {offsets = [0, 48], sizes = [16, 1], strides = [1, 1]} : vector<16x128xbf16> to vector<16x1xbf16>
    %494 = arith.extf %493 : vector<16x1xbf16> to vector<16x1xf32>
    %495 = arith.truncf %483 : vector<16x128xf32> to vector<16x128xbf16>
    %cst_176 = arith.constant dense<0.000000e+00> : vector<16x128xf32>
    %496 = tpu.matmul %490, %495, %cst_176 {dimension_numbers = #tpu.dot_dimension_numbers<[1], [0], [0], [1], [0, 0, 1, 1], [], []>} : vector<16x16xbf16>, vector<16x128xbf16>, vector<16x128xf32> -> vector<16x128xf32>
    %497 = arith.truncf %477 : vector<16x128xf32> to vector<16x128xbf16>
    %cst_177 = arith.constant dense<0.000000e+00> : vector<16x128xf32>
    %498 = tpu.matmul %491, %497, %cst_177 {dimension_numbers = #tpu.dot_dimension_numbers<[1], [0], [0], [1], [0, 0, 1, 1], [], []>} : vector<16x16xbf16>, vector<16x128xbf16>, vector<16x128xf32> -> vector<16x128xf32>
    %499 = arith.addf %496, %498 : vector<16x128xf32>
    %500 = arith.truncf %488 : vector<16x128xf32> to vector<16x128xbf16>
    %cst_178 = arith.constant dense<0.000000e+00> : vector<16x128xf32>
    %501 = tpu.matmul %492, %500, %cst_178 {dimension_numbers = #tpu.dot_dimension_numbers<[1], [0], [0], [1], [0, 0, 1, 1], [], []>} : vector<16x16xbf16>, vector<16x128xbf16>, vector<16x128xf32> -> vector<16x128xf32>
    %502 = arith.addf %499, %501 : vector<16x128xf32>
    %503 = vector.broadcast %494 : vector<16x1xf32> to vector<16x128xf32>
    %504 = arith.addf %502, %503 : vector<16x128xf32>
    %cst_179 = arith.constant 0.000000e+00 : f32
    %505 = vector.broadcast %cst_179 : f32 to vector<16x128xf32>
    %506 = arith.maximumf %504, %505 : vector<16x128xf32>
    %c304_180 = arith.constant 304 : index
    %c0_181 = arith.constant 0 : index
    %507 = vector.load %arg2[%c304_180, %c0_181] : memref<352x128xbf16, #tpu.memory_space<vmem>>, vector<32x128xbf16>
    %508 = vector.extract_strided_slice %507 {offsets = [0, 0], sizes = [32, 16], strides = [1, 1]} : vector<32x128xbf16> to vector<32x16xbf16>
    %509 = vector.extract_strided_slice %507 {offsets = [0, 16], sizes = [32, 1], strides = [1, 1]} : vector<32x128xbf16> to vector<32x1xbf16>
    %510 = arith.extf %509 : vector<32x1xbf16> to vector<32x1xf32>
    %511 = arith.truncf %506 : vector<16x128xf32> to vector<16x128xbf16>
    %cst_182 = arith.constant dense<0.000000e+00> : vector<32x128xf32>
    %512 = tpu.matmul %508, %511, %cst_182 {dimension_numbers = #tpu.dot_dimension_numbers<[1], [0], [0], [1], [0, 0, 1, 1], [], []>} : vector<32x16xbf16>, vector<16x128xbf16>, vector<32x128xf32> -> vector<32x128xf32>
    %513 = vector.broadcast %510 : vector<32x1xf32> to vector<32x128xf32>
    %514 = arith.addf %512, %513 : vector<32x128xf32>
    %515 = arith.addf %467, %514 : vector<32x128xf32>
    %c336_183 = arith.constant 336 : index
    %c0_184 = arith.constant 0 : index
    %516 = vector.load %arg2[%c336_183, %c0_184] : memref<352x128xbf16, #tpu.memory_space<vmem>>, vector<4x128xbf16>
    %517 = vector.extract_strided_slice %516 {offsets = [0, 0], sizes = [4, 32], strides = [1, 1]} : vector<4x128xbf16> to vector<4x32xbf16>
    %518 = vector.extract_strided_slice %516 {offsets = [0, 32], sizes = [4, 1], strides = [1, 1]} : vector<4x128xbf16> to vector<4x1xbf16>
    %519 = arith.extf %518 : vector<4x1xbf16> to vector<4x1xf32>
    %520 = arith.truncf %515 : vector<32x128xf32> to vector<32x128xbf16>
    %cst_185 = arith.constant dense<0.000000e+00> : vector<4x128xf32>
    %521 = tpu.matmul %517, %520, %cst_185 {dimension_numbers = #tpu.dot_dimension_numbers<[1], [0], [0], [1], [0, 0, 1, 1], [], []>} : vector<4x32xbf16>, vector<32x128xbf16>, vector<4x128xf32> -> vector<4x128xf32>
    %522 = vector.broadcast %519 : vector<4x1xf32> to vector<4x128xf32>
    %523 = arith.addf %521, %522 : vector<4x128xf32>
    %c1_186 = arith.constant 1 : index
    %c0_187 = arith.constant 0 : index
    %c0_188 = arith.constant 0 : index
    %524 = vector.load %arg5[%c1_186, %c0_187, %c0_188] : memref<2x4x128xf32, #tpu.memory_space<vmem>>, vector<1x4x128xf32>
    %525 = vector.shape_cast %524 : vector<1x4x128xf32> to vector<4x128xf32>
    %526 = vector.shape_cast %523 : vector<4x128xf32> to vector<1x4x128xf32>
    tpu.vector_store %arg5[%c1_186, %c0_187, %c0_188], %526 {strides = array<i32>} : memref<2x4x128xf32, #tpu.memory_space<vmem>>, vector<1x4x128xf32>,
    %cst_189 = arith.constant 1.250000e+00 : f32
    %527 = arith.mulf %cst_189, %411 : f32
    %cst_190 = arith.constant 2.048000e+03 : f32
    %528 = arith.divf %527, %cst_190 : f32
    %cst_191 = arith.constant 0.000000e+00 : f32
    %529 = vector.broadcast %cst_191 : f32 to vector<1x8x128xf32>
    %530 = vector.broadcast %528 : f32 to vector<1x8x128xf32>
    %531 = arith.addf %529, %530 : vector<1x8x128xf32>
    %c0_192 = arith.constant 0 : index
    %c0_193 = arith.constant 0 : index
    %c0_194 = arith.constant 0 : index
    %532 = vector.load %arg6[%c0_192, %c0_193, %c0_194] : memref<1x8x128xf32, #tpu.memory_space<vmem>>, vector<1x8x128xf32>
    tpu.vector_store %arg6[%c0_192, %c0_193, %c0_194], %531 {strides = array<i32>} : memref<1x8x128xf32, #tpu.memory_space<vmem>>, vector<1x8x128xf32>,
    return
  }
  func.func @transform_0(%arg0: i32) -> (i32, i32, i32) {
    %c0_i32 = arith.constant 0 : i32
    %c0_i32_0 = arith.constant 0 : i32
    %c0_i32_1 = arith.constant 0 : i32
    return %arg0, %c0_i32, %c0_i32_0 : i32, i32, i32
  }
  func.func @transform_1(%arg0: i32) -> (i32, i32) {
    %c0_i32 = arith.constant 0 : i32
    %c0_i32_0 = arith.constant 0 : i32
    %c0_i32_1 = arith.constant 0 : i32
    return %c0_i32, %c0_i32_0 : i32, i32
  }
  func.func @transform_2(%arg0: i32) -> (i32, i32) {
    %c0_i32 = arith.constant 0 : i32
    %c0_i32_0 = arith.constant 0 : i32
    %c0_i32_1 = arith.constant 0 : i32
    return %c0_i32, %c0_i32_0 : i32, i32
  }
  func.func @transform_3(%arg0: i32) -> (i32, i32) {
    %c0_i32 = arith.constant 0 : i32
    %c0_i32_0 = arith.constant 0 : i32
    %c0_i32_1 = arith.constant 0 : i32
    return %c0_i32, %c0_i32_0 : i32, i32
  }
  func.func @transform_4(%arg0: i32) -> (i32, i32, i32) {
    %c0_i32 = arith.constant 0 : i32
    %c0_i32_0 = arith.constant 0 : i32
    %c0_i32_1 = arith.constant 0 : i32
    return %arg0, %c0_i32, %c0_i32_0 : i32, i32, i32
  }
  func.func @transform_5(%arg0: i32) -> (i32, i32, i32) {
    %c0_i32 = arith.constant 0 : i32
    %c0_i32_0 = arith.constant 0 : i32
    %c0_i32_1 = arith.constant 0 : i32
    return %arg0, %c0_i32, %c0_i32_0 : i32, i32, i32
  }
}

</mosaic_0001>

<bundles_post_ra>
// kernel: soundstream_forward.1
= control target key start
LH: loop header
LB: loop body
LE: loop exit
PB: predicated region body
PF: predicated region fallthrough
CT: control target
= control target key end

     0   :  { %11 = vsyncpa [#allocation3], 0  ;;  %s6238_s0 = inlined_call_operand.vmem [shape: f32[4,4,128], index: 0, kind: input, shape index: {}]   ;;  %s6239_s1 = inlined_call_operand.vmem [shape: bf16[352,128], index: 1, kind: input, shape index: {}]   ;;  %s6240_s2 = inlined_call_operand.vmem [shape: f32[16,8], index: 2, kind: input, shape index: {}]   ;;  %s6241_s3 = inlined_call_operand.vmem [shape: f32[8,16], index: 3, kind: input, shape index: {}]   ;;  %s6242_s4 = inlined_call_operand.hbm [shape: f32[4,4,128], index: 4, kind: output, shape index: {0}]   ;;  %s6243_s5 = inlined_call_operand.vmem [shape: f32[2,8,128], index: 5, kind: output, shape index: {1}]  }
   0x1   :  { %13 = vsyncpa [#allocation3 + $0x1], 0  ;;  %s5436_s18 = smov 0   ;;  %s5438_s19 = smov 0  }
   0x2   :  { %s5440_s20 = smov 0   ;;  %s5442_s21 = smov 0  }
   0x3 LB: > { %s5457_s22 = sadd.s32 4294967295, %s5389_s21   ;;  %s4105_s23 = sadd.s32 4294967294, %s5389_s21   ;;  %s5389_s21 = sphi %s5442_s21, %s6253_s21   ;;  %s5385_s20 = sphi %s5440_s20, %s6252_s20   ;;  %s5381_s19 = sphi %s5438_s19, %s6251_s19   ;;  %s5377_s18 = sphi %s5436_s18, %s6250_s18  }
   0x4   : > { %s5461_s24 = sadd.s32 1, %s5389_s21   ;;  %s115_s25 = sadd.s32 1, %s5385_s20 }
   0x5   : > { %s112_s26 = ssub.s32 %s5389_s21, %s5461_s24  ;;  %p125_p0 = scmp.ne.s32.totalorder %s5385_s20, %s5381_s19 }
   0x6   : > { %p113_p1 = scmp.eq.s32.totalorder %s112_s26, 0  ;;  %p126_p2 = scmp.eq.s32.totalorder %s5457_s22, 1 }
   0x7   : > { %p131_p3 = scmp.ne.s32.totalorder %s5381_s19, %s5377_s18  ;;  %p132_p4 = scmp.eq.s32.totalorder %s4105_s23, 1 }
   0x8   : > { %s5472_s27 = scalar_select %p113_p1, %s5385_s20, %s115_s25  }
   0x9   : > { %p5474_p5 = por %p126_p2, %p125_p0  ;;  %p5478_p6 = por %p132_p4, %p131_p3 }
   0xa   : > { %p4108_p7 = scmp.ge.s32.totalorder %s5389_s21, 1  ;;  %p194_p8 = scmp.lt.s32.totalorder %s5389_s21, 3 }
   0xc   : > { %p195_p9 = pnand %p4108_p7, %p194_p8 }
   0xd   : > { %s4110_s30 = sshll.u32 (!%p195_p9), %s5457_s22, 1  ;;  %s5395_s23 = smov (!%p195_p9), 112  }
   0xe   : > { %198 = sbr.rel (%p195_p9) target bundleno = 8103 (0x1fa7), region = 36  ;;  %p227_p10 = scmp.lt.s32.totalorder (!%p195_p9), %s4110_s30, 3 }
   0xf   : > { %s5397_s25 = smov (!%p195_p9), 127   ;;  %s5398_s26 = smov (!%p195_p9), 1  }
  0x10   : > { %s217_s16 = sand.u32 (!%p195_p9), 1, %s5381_s19   ;;  %p233_p11 = scmp.lt.s32.totalorder (!%p195_p9), %s5457_s22, 1 }
  0x11   : > { %s4109_s17 = sshll.u32 (!%p195_p9), %s217_s16, 3 }
  0x13   : > { %v251_v0 = vld [vmem:[%s6239_s1] sm:$0xff]   ;;  %vm290_vm0 = vcmask 31744   ;;  %v253_v1 = vld [vmem:[%s6239_s1 + $0x8] sm:$0xff]   ;;  %v5391_v2 = vmov 4   ;;  %s6255_s30 = smov (!%p227_p10, %s4110_s30), 3  ;;  %vm297_vm1 = vcmask 1041408   ;;  %v418_v47 = vlaneseq }
  0x14   : > { %4846 = vset.pattern.permute.xlu0 %v5391_v2  ;;  %v255_v3 = vunpack.c.l.bf16 %v251_v0  ;;  %v256_v4 = vunpack.c.h.bf16 %v251_v0  ;;  %v257_v5 = vunpack.c.l.bf16 %v253_v1  ;;  %v258_v6 = vunpack.c.h.bf16 %v253_v1  ;;  %4451 = vmatprep.mubr.msk.bf16.mxu0 %vm290_vm0, %v251_v0  ;;  %s4111_s10 = sshll.u32 %s6255_s30, 2  ;;  %v350_v13 = vld [vmem:[%s6239_s1 + $0x10] sm:$0xff]   ;;  %v434_v30 = vld [vmem:[%s6239_s1 + $0x18] sm:$0xff]   ;;  %s5399_s30 = smov 96   ;;  %v599_v0 = vld [vmem:[%s6239_s1 + $0x20] sm:$0xff]  }
  0x15   : > { %s5496_s13 = scalar_lea.vmem %s6238_s0, %s4111_s10  ;;  %v5392_v12 = vmov 0.0   ;;  %vm5393_vm2 = vmmov 0   ;;  %v352_v14 = vunpack.c.l.bf16 %v350_v13  ;;  %v353_v15 = vunpack.c.h.bf16 %v350_v13 }
  0x16   : > { %v4847_v7 = vpack.i.bf16 %v258_v6, %v257_v5  ;;  %v4852_v8 = vpack.i.bf16 %v256_v4, %v255_v3  ;;  %v250_v9 = vld [vmem:[%s5496_s13] sm:$0xf]  ;;  %4455 = vmatprep.subr.bf16.mxu1 %v5392_v12  ;;  %4459 = vmatprep.mubr.msk.bf16.mxu1 %vm5393_vm2, %v5392_v12  ;;  %v5394_v16 = vmov 32   ;;  %vm371_vm3 = vcmask 261120   ;;  %s234_s6 = scalar_select %p233_p11, %s5457_s22, 1 }
  0x17   : > { %v259_v10 = vpack.c.bf16 %v250_v9, %v250_v9  ;;  %4857 = vset.pattern.permute.xlu1 %v5394_v16  ;;  %v4858_v17 = vpack.i.bf16 %v353_v15, %v352_v14  ;;  %v5396_v38 = vmov 48   ;;  %v436_v41 = vunpack.c.l.bf16 %v434_v30 }
  0x18   : > { %4848 = vperm.xlu0 %4846, %v4847_v7   ;;  %v437_v42 = vunpack.c.h.bf16 %v434_v30  ;;  %vm447_vm4 = vcmask 130048   ;;  %v419_v48 = vand.u32 127, %v418_v47  ;;  %v603_v5 = vunpack.c.l.bf16 %v599_v0  ;;  %s4112_s10 = sshll.u32 %s234_s6, 3 }
  0x19   : > { %4785 = vmatprep.subr.msk.bf16.mxu0 %vm297_vm1, %v259_v10  ;;  %v299_v11 = vsel %vm297_vm1, %v259_v10, 0  ;;  %4859 = vperm.xlu1 %4857, %v4858_v17   ;;  %v5400_v6 = vmov 16   ;;  %v604_v7 = vunpack.c.h.bf16 %v599_v0  ;;  %vm243_vm9 = vcmask 64512   ;;  %s236_s14 = scalar_lea.vmem %s6243_s5, %s4112_s10 }
  0x1a   : > { %4450 = vmatpush3.bf16.msra.mxu0 %v299_v11  ;;  %v4874_v46 = vpack.i.bf16 %v437_v42, %v436_v41  ;;  %vm4315_vm5 = vcmp.ne.s32.totalorder %v419_v48, 0  ;;  %vm4316_vm6 = vcmp.ne.s32.totalorder %v419_v48, 127  ;;  %vm1343_vm14 = vcmask 1043456  }
  0x1b   : > { %4463 = vmatprep.subr.bf16.mxu0 %v5392_v12  ;;  %vm5542_vm7 = vmpackc.low %vm4315_vm5, %vm4315_vm5  ;;  %v4886_v9 = vpack.i.bf16 %v604_v7, %v603_v5 }
  0x1c   : > { %4853 = vperm.xlu0 %4846, %v4852_v8   ;;  %vm5546_vm8 = vmpackc.low %vm4316_vm6, %vm4316_vm6 }
  0x1d   : > { %4452 = vmatmul.mubr.msk.bf16.vlgmr.msra.gmra.mxu0 %vm290_vm0, %v253_v1  ;;  %445 = vrot.lane.b32.xlu1 %v434_v30, %s5395_s23  ;;  %v601_v1 = vld [vmem:[%s6239_s1 + $0x28] sm:$0xff]  }
  0x1e   : > { %4465 = vmatprep.mubr.msk.bf16.mxu0 %vm5393_vm2, %v5392_v12  ;;  %4873 = vset.pattern.permute.xlu1 %v5396_v38  ;;  %v605_v3 = vunpack.c.l.bf16 %v601_v1  ;;  %v606_v4 = vunpack.c.h.bf16 %v601_v1 }
  0x20   : > { %4879 = vset.pattern.permute.xlu0 %v5400_v6  ;;  %v4880_v8 = vpack.i.bf16 %v606_v4, %v605_v3 }
  0x93   : > { %v4849_v18 = vpop.permute.xlu0 %4848 }
  0x94   : > { %v4860_v31 = vpop.permute.xlu1 %4859 }
  0x97   : > { %v4854_v20 = vpop.permute.xlu0 %4853 }
  0x98   : > { %v446_v45 = vpop.permute.xlu1 %445 }
  0xdd   : > { %v4453_v19 = vpop.f32.mrf.mxu0 }
  0xde   : > { %v5512_v23 = vadd.low.f32.bf16 %v4453_v19, %v4849_v18 }
  0xdf   : > { %v335_v21 = vpop.f32.mrf.mxu0 }
  0xe0   : > { %v5520_v28 = vadd.low.f32.bf16 %v335_v21, %v4854_v20 }
  0xe1   : > { %v4454_v22 = vpop.f32.mrf.mxu0 }
  0xe2   : > { %v5514_v24 = vadd.high.f32.bf16 %v4454_v22, %v4849_v18 }
  0xe3   : > { %v338_v25 = vpop.f32.mrf.mxu0 }
  0xe4   : > { %v5516_v26 = vadd.high.f32.bf16 %v338_v25, %v4854_v20  ;;  %v355_v27 = vpack.c.bf16 %v5514_v24, %v5512_v23 }
  0xe6   : > { %4456 = vmatpush3.bf16.msra.mxu1 %v355_v27  ;;  %v354_v29 = vpack.c.bf16 %v5516_v26, %v5520_v28 }
  0xe7   : > { %4457 = vmatprep.subr.bf16.mxu1 %v5392_v12 }
  0xea   : > { %4458 = vmatpush3.bf16.msra.mxu1 %v354_v29 }
  0xeb   : > { %4469 = vmatprep.subr.bf16.mxu1 %v5392_v12 }
  0xed   : > { %4460 = vmatmul.mubr.msk.bf16.vlgmr.msra.gmra.mxu1 %vm371_vm3, %v350_v13 }
  0xee   : > { %4471 = vmatprep.mubr.msk.bf16.mxu1 %vm5393_vm2, %v5392_v12 }
 0x1ad   : > { %v409_v32 = vpop.f32.mrf.mxu1 }
 0x1ae   : > { %v5251_v34 = vadd.low.f32.bf16 %v409_v32, %v4860_v31 }
 0x1af   : > { %v4461_v33 = vpop.f32.mrf.mxu1 }
 0x1b0   : > { %v416_v39 = vmax.f32 %v5251_v34, 0.0  ;;  %v697_v34 = vld [vmem:[%s6239_s1 + $0x30] sm:$0xff]  }
 0x1b1   : > { %v412_v35 = vpop.f32.mrf.mxu1 }
 0x1b2   : > { %v5252_v36 = vadd.high.f32.bf16 %v412_v35, %v4860_v31  ;;  %v699_v35 = vunpack.c.l.bf16 %v697_v34 }
 0x1b3   : > { %v4462_v37 = vpop.f32.mrf.mxu1 }
 0x1b4   : > { %v417_v40 = vmax.f32 %v5252_v36, 0.0  ;;  %v700_v36 = vunpack.c.h.bf16 %v697_v34 }
 0x1b6   : > { %v439_v43 = vpack.c.bf16 %v417_v40, %v416_v39  ;;  %v4868_v44 = vpack.i.bf16 %v417_v40, %v416_v39  ;;  %v4892_v37 = vpack.i.bf16 %v700_v36, %v699_v35 }
 0x1b8   : > { %4869 = vrot.lane.b32.xlu1 %v4868_v44, %s5397_s25  ;;  %4864 = vrot.lane.b32.xlu0 %v4868_v44, %s5398_s26 }
 0x1b9   : > { %4464 = vmatpush3.bf16.msra.mxu0 %v439_v43 }
 0x1ba   : > { %4475 = vmatprep.subr.bf16.mxu0 %v5392_v12 }
 0x1bc   : > { %537 = vrot.lane.b32.xlu0 %v434_v30, %s5399_s30  ;;  %4466 = vmatmul.mubr.msk.bf16.vlgmr.msra.gmra.mxu0 %vm447_vm4, %v446_v45 }
 0x1bd   : > { %4477 = vmatprep.mubr.msk.bf16.mxu0 %vm5393_vm2, %v5392_v12  ;;  %4875 = vperm.xlu1 %4873, %v4874_v46  }
 0x1c0   : > { %4881 = vperm.xlu0 %4879, %v4880_v8  }
 0x1c1   : > { %4885 = vset.pattern.permute.xlu1 %v5400_v6 }
 0x1c2   : > { %4887 = vperm.xlu1 %4885, %v4886_v9  }
 0x1c4   : > { %4907 = vset.pattern.permute.xlu0 %v5396_v38 }
 0x1c6   : > { %4891 = vset.pattern.permute.xlu1 %v5394_v16 }
 0x1c7   : > { %4893 = vperm.xlu1 %4891, %v4892_v37  }
 0x1cb   : > { %4913 = vset.pattern.permute.xlu1 %v5400_v6 }
 0x22a   : > { %v4870_v49 = vpop.permute.xlu1 %4869  ;;  %v4865_v50 = vpop.permute.xlu0 %4864 }
 0x22b   : > { %v4872_v51 = vunpack.i.h.bf16 %v4870_v49  ;;  %v4871_v52 = vunpack.i.l.bf16 %v4870_v49  ;;  %v4867_v53 = vunpack.i.h.bf16 %v4865_v50  ;;  %v4866_v54 = vunpack.i.l.bf16 %v4865_v50 }
 0x22d   : > { %v4130_v57 = vpack.c.bf16 %v4872_v51, %v4871_v52  ;;  %v4124_v58 = vpack.c.bf16 %v4867_v53, %v4866_v54 }
 0x22e   : > { %v538_v59 = vpop.permute.xlu0 %537 }
 0x22f   : > { %4470 = vmatpush3.bf16.msk.msra.mxu1 %vm5542_vm7, %v4124_v58  ;;  %4476 = vmatpush3.bf16.msk.msra.mxu0 %vm5546_vm8, %v4130_v57 }
 0x230   : > { %4487 = vmatprep.subr.bf16.mxu0 %v5392_v12 }
 0x232   : > { %4472 = vmatmul.mubr.msk.bf16.vlgmr.msra.gmra.mxu1 %vm447_vm4, %v434_v30  ;;  %4478 = vmatmul.mubr.msk.bf16.vlgmr.msra.gmra.mxu0 %vm447_vm4, %v538_v59 }
 0x233   : > { %4491 = vmatprep.mubr.msk.bf16.mxu0 %vm5393_vm2, %v5392_v12  ;;  %4483 = vmatprep.mubr.msk.bf16.mxu1 %vm447_vm4, %v599_v0 }
 0x238   : > { %v4876_v10 = vpop.permute.xlu1 %4875 }
 0x23b   : > { %v4882_v39 = vpop.permute.xlu0 %4881 }
 0x23d   : > { %v4888_v40 = vpop.permute.xlu1 %4887 }
 0x27c   : > { %v485_v60 = vpop.f32.mrf.mxu0 }
 0x27e   : > { %v4467_v61 = vpop.f32.mrf.mxu0 }
 0x280   : > { %v488_v62 = vpop.f32.mrf.mxu0 }
 0x282   : > { %v4468_v63 = vpop.f32.mrf.mxu0 }
 0x2f2   : > { %v529_v11 = vpop.f32.mrf.mxu1  ;;  %v576_v13 = vpop.f32.mrf.mxu0 }
 0x2f3   : > { %v530_v14 = vadd.f32 %v529_v11, %v485_v60 }
 0x2f4   : > { %v4473_v15 = vpop.f32.mrf.mxu1  ;;  %v4479_v17 = vpop.f32.mrf.mxu0 }
 0x2f5   : > { %v583_v18 = vadd.f32 %v576_v13, %v530_v14 }
 0x2f6   : > { %v532_v19 = vpop.f32.mrf.mxu1  ;;  %v579_v20 = vpop.f32.mrf.mxu0 }
 0x2f7   : > { %v533_v21 = vadd.f32 %v532_v19, %v488_v62  ;;  %v5253_v27 = vadd.low.f32.bf16 %v583_v18, %v4876_v10 }
 0x2f8   : > { %v4474_v22 = vpop.f32.mrf.mxu1  ;;  %v4480_v25 = vpop.f32.mrf.mxu0 }
 0x2f9   : > { %v584_v29 = vadd.f32 %v579_v20, %v533_v21  ;;  %v597_v31 = vmax.f32 %v5253_v27, 0.0  ;;  %v940_v25 = vld [vmem:[%s6239_s1 + $0x40] sm:$0xff]   ;;  %v942_v27 = vld [vmem:[%s6239_s1 + $0x48] sm:$0xff]  }
 0x2fb   : > { %v5254_v30 = vadd.high.f32.bf16 %v584_v29, %v4876_v10  ;;  %v946_v29 = vunpack.c.l.bf16 %v942_v27 }
 0x2fd   : > { %v598_v32 = vmax.f32 %v5254_v30, 0.0  ;;  %v947_v30 = vunpack.c.h.bf16 %v942_v27 }
 0x2ff   : > { %v607_v33 = vpack.c.bf16 %v598_v32, %v597_v31  ;;  %v944_v31 = vunpack.c.l.bf16 %v940_v25  ;;  %v945_v32 = vunpack.c.h.bf16 %v940_v25 }
 0x301   : > { %4481 = vmatprep.subr.bf16.mxu1 %v607_v33 }
 0x302   : > { %4482 = vmatpush3.bf16.msra.mxu1 %v607_v33  ;;  %v4914_v33 = vpack.i.bf16 %v947_v30, %v946_v29 }
 0x303   : > { %4495 = vmatprep.subr.bf16.mxu1 %v5392_v12 }
 0x305   : > { %4484 = vmatmul.mubr.msk.bf16.vlgmr.msra.gmra.mxu1 %vm447_vm4, %v601_v1 }
 0x306   : > { %4497 = vmatprep.mubr.msk.bf16.mxu1 %vm5393_vm2, %v5392_v12 }
 0x3c5   : > { %v4485_v41 = vpop.f32.mrf.mxu1 }
 0x3c6   : > { %v5255_v43 = vadd.low.f32.bf16 %v4485_v41, %v4882_v39 }
 0x3c7   : > { %v678_v42 = vpop.f32.mrf.mxu1 }
 0x3c8   : > { %v5579_v48 = vadd.f32 %v5255_v43, %v5512_v23  ;;  %v5257_v49 = vadd.low.f32.bf16 %v678_v42, %v4888_v40 }
 0x3c9   : > { %v4486_v44 = vpop.f32.mrf.mxu1 }
 0x3ca   : > { %v5256_v45 = vadd.high.f32.bf16 %v4486_v44, %v4882_v39  ;;  %v5590_v54 = vadd.f32 %v5257_v49, %v5520_v28 }
 0x3cb   : > { %v681_v46 = vpop.f32.mrf.mxu1 }
 0x3cc   : > { %v5582_v50 = vadd.f32 %v5256_v45, %v5514_v24  ;;  %v5258_v51 = vadd.high.f32.bf16 %v681_v46, %v4888_v40  ;;  %v776_v24 = vld [vmem:[%s6239_s1 + $0x38] sm:$0xff]  }
 0x3cd   : > { %787 = vrot.lane.b32.xlu0 %v776_v24, %s5395_s23  ;;  %v778_v0 = vunpack.c.l.bf16 %v776_v24  ;;  %v779_v1 = vunpack.c.h.bf16 %v776_v24 }
 0x3ce   : > { %v702_v52 = vpack.c.bf16 %v5582_v50, %v5579_v48  ;;  %v5587_v53 = vadd.f32 %v5258_v51, %v5516_v26  ;;  %v4894_v26 = vpop.permute.xlu1 %4893 }
 0x3cf   : > { %v4908_v7 = vpack.i.bf16 %v779_v1, %v778_v0 }
 0x3d0   : > { %4488 = vmatpush3.bf16.msra.mxu0 %v702_v52  ;;  %v701_v23 = vpack.c.bf16 %v5587_v53, %v5590_v54 }
 0x3d1   : > { %4489 = vmatprep.subr.bf16.mxu0 %v5392_v12 }
 0x3d4   : > { %4490 = vmatpush3.bf16.msra.mxu0 %v701_v23 }
 0x3d5   : > { %4501 = vmatprep.subr.bf16.mxu0 %v5392_v12 }
 0x3d7   : > { %4492 = vmatmul.mubr.msk.bf16.vlgmr.msra.gmra.mxu0 %vm371_vm3, %v697_v34  ;;  %v4919_v34 = vpack.i.bf16 %v945_v32, %v944_v31 }
 0x3d8   : > { %4503 = vmatprep.mubr.msk.bf16.mxu0 %vm5393_vm2, %v5392_v12 }
 0x43f   : > { %v788_v5 = vpop.permute.xlu0 %787 }
 0x497   : > { %v755_v28 = vpop.f32.mrf.mxu0 }
 0x498   : > { %v5259_v58 = vadd.low.f32.bf16 %v755_v28, %v4894_v26 }
 0x499   : > { %v4493_v57 = vpop.f32.mrf.mxu0 }
 0x49a   : > { %v762_v62 = vmax.f32 %v5259_v58, 0.0  ;;  %v1038_v57 = vld [vmem:[%s6239_s1 + $0x50] sm:$0xf] }
 0x49b   : > { %v758_v59 = vpop.f32.mrf.mxu0  ;;  %v1039_v58 = vunpack.c.l.bf16 %v1038_v57 }
 0x49c   : > { %v5260_v60 = vadd.high.f32.bf16 %v758_v59, %v4894_v26 }
 0x49d   : > { %v4494_v61 = vpop.f32.mrf.mxu0 }
 0x49e   : > { %v763_v63 = vmax.f32 %v5260_v60, 0.0 }
 0x4a0   : > { %v781_v3 = vpack.c.bf16 %v763_v63, %v762_v62  ;;  %v4902_v4 = vpack.i.bf16 %v763_v63, %v762_v62 }
 0x4a2   : > { %4903 = vrot.lane.b32.xlu0 %v4902_v4, %s5397_s25  ;;  %4898 = vrot.lane.b32.xlu1 %v4902_v4, %s5398_s26 }
 0x4a3   : > { %4496 = vmatpush3.bf16.msra.mxu1 %v781_v3 }
 0x4a4   : > { %4507 = vmatprep.subr.bf16.mxu1 %v5392_v12 }
 0x4a6   : > { %878 = vrot.lane.b32.xlu1 %v776_v24, %s5399_s30  ;;  %4498 = vmatmul.mubr.msk.bf16.vlgmr.msra.gmra.mxu1 %vm447_vm4, %v788_v5 }
 0x4a7   : > { %4509 = vmatprep.mubr.msk.bf16.mxu1 %vm5393_vm2, %v5392_v12  ;;  %4909 = vperm.xlu0 %4907, %v4908_v7  }
 0x4aa   : > { %4915 = vperm.xlu1 %4913, %v4914_v33  }
 0x4ab   : > { %4924 = vset.pattern.permute.xlu0 %v5394_v16 }
 0x4ac   : > { %1044 = vperm.xlu0 %4924, %v1039_v58  }
 0x4ae   : > { %4920 = vperm.xlu1 %4913, %v4919_v34  }
 0x514   : > { %v4904_v8 = vpop.permute.xlu0 %4903  ;;  %v4899_v9 = vpop.permute.xlu1 %4898 }
 0x515   : > { %v4906_v10 = vunpack.i.h.bf16 %v4904_v8  ;;  %v4905_v11 = vunpack.i.l.bf16 %v4904_v8  ;;  %v4901_v13 = vunpack.i.h.bf16 %v4899_v9  ;;  %v4900_v14 = vunpack.i.l.bf16 %v4899_v9 }
 0x517   : > { %v4150_v15 = vpack.c.bf16 %v4906_v10, %v4905_v11  ;;  %v4144_v17 = vpack.c.bf16 %v4901_v13, %v4900_v14 }
 0x518   : > { %v879_v18 = vpop.permute.xlu1 %878 }
 0x519   : > { %4502 = vmatpush3.bf16.msk.msra.mxu0 %vm5542_vm7, %v4144_v17  ;;  %4508 = vmatpush3.bf16.msk.msra.mxu1 %vm5546_vm8, %v4150_v15 }
 0x51a   : > { %4519 = vmatprep.subr.bf16.mxu1 %v5392_v12 }
 0x51c   : > { %4504 = vmatmul.mubr.msk.bf16.vlgmr.msra.gmra.mxu0 %vm447_vm4, %v776_v24  ;;  %4510 = vmatmul.mubr.msk.bf16.vlgmr.msra.gmra.mxu1 %vm447_vm4, %v879_v18 }
 0x51d   : > { %4523 = vmatprep.mubr.msk.bf16.mxu1 %vm5393_vm2, %v5392_v12  ;;  %4515 = vmatprep.mubr.msk.bf16.mxu0 %vm447_vm4, %v940_v25 }
 0x522   : > { %v4910_v35 = vpop.permute.xlu0 %4909 }
 0x525   : > { %v4916_v59 = vpop.permute.xlu1 %4915 }
 0x527   : > { %v1045_v17 = vpop.permute.xlu0 %1044 }
 0x529   : > { %v4921_v60 = vpop.permute.xlu1 %4920 }
 0x566   : > { %v826_v19 = vpop.f32.mrf.mxu1 }
 0x568   : > { %v4499_v20 = vpop.f32.mrf.mxu1 }
 0x56a   : > { %v829_v21 = vpop.f32.mrf.mxu1 }
 0x56c   : > { %v4500_v22 = vpop.f32.mrf.mxu1 }
 0x5dc   : > { %v870_v36 = vpop.f32.mrf.mxu0  ;;  %v917_v37 = vpop.f32.mrf.mxu1 }
 0x5dd   : > { %v871_v39 = vadd.f32 %v870_v36, %v826_v19 }
 0x5de   : > { %v4505_v40 = vpop.f32.mrf.mxu0  ;;  %v4511_v41 = vpop.f32.mrf.mxu1 }
 0x5df   : > { %v924_v42 = vadd.f32 %v917_v37, %v871_v39 }
 0x5e0   : > { %v873_v43 = vpop.f32.mrf.mxu0  ;;  %v920_v44 = vpop.f32.mrf.mxu1 }
 0x5e1   : > { %v874_v45 = vadd.f32 %v873_v43, %v829_v21  ;;  %v5261_v51 = vadd.low.f32.bf16 %v924_v42, %v4910_v35 }
 0x5e2   : > { %v4506_v46 = vpop.f32.mrf.mxu0  ;;  %v4512_v49 = vpop.f32.mrf.mxu1 }
 0x5e3   : > { %v925_v52 = vadd.f32 %v920_v44, %v874_v45  ;;  %v938_v24 = vmax.f32 %v5261_v51, 0.0  ;;  %v1192_v49 = vshrl.u32 %v418_v47, 7 }
 0x5e5   : > { %v5262_v23 = vadd.high.f32.bf16 %v925_v52, %v4910_v35 }
 0x5e7   : > { %v939_v26 = vmax.f32 %v5262_v23, 0.0  ;;  %v1193_v23 = vadd.s32 8, %v1192_v49 }
 0x5e9   : > { %v948_v28 = vpack.c.bf16 %v939_v26, %v938_v24 }
 0x5eb   : > { %4513 = vmatprep.subr.bf16.mxu0 %v948_v28 }
 0x5ec   : > { %4514 = vmatpush3.bf16.msra.mxu0 %v948_v28  ;;  %v5663_v28 = vcvt.s32.f32 %v1192_v49 }
 0x5ef   : > { %4516 = vmatmul.mubr.msk.bf16.vlgmr.msra.gmra.mxu0 %vm447_vm4, %v942_v27 }
 0x6af   : > { %v4517_v61 = vpop.f32.mrf.mxu0 }
 0x6b0   : > { %v5263_v63 = vadd.low.f32.bf16 %v4517_v61, %v4916_v59 }
 0x6b1   : > { %v1019_v62 = vpop.f32.mrf.mxu0 }
 0x6b2   : > { %v1036_v4 = vadd.f32 %v5263_v63, %v5579_v48  ;;  %v5265_v5 = vadd.low.f32.bf16 %v1019_v62, %v4921_v60  ;;  %v238_v48 = vld [vmem:[%s6240_s2] sm:$0xff] }
 0x6b3   : > { %v4518_v0 = vpop.f32.mrf.mxu0  ;;  %4529 = vmatprep.mubr.msk.f32.mxu0 %vm243_vm9, %v238_v48 }
 0x6b4   : > { %v5264_v1 = vadd.high.f32.bf16 %v4518_v0, %v4916_v59  ;;  %v1034_v11 = vadd.f32 %v5265_v5, %v5590_v54  ;;  %v241_v54 = vmul.f32 %v238_v48, %v238_v48  ;;  %v240_v5 = vld [vmem:[%s6241_s3] sm:$0xff] }
 0x6b5   : > { %v1022_v3 = vpop.f32.mrf.mxu0 }
 0x6b6   : > { %v1037_v7 = vadd.f32 %v5264_v1, %v5582_v50  ;;  %v5266_v8 = vadd.high.f32.bf16 %v1022_v3, %v4921_v60  ;;  %v239_v50 = vld [vmem:[%s6240_s2 + $0x8] sm:$0xff]  ;;  %v244_v15 = vsel %vm243_vm9, %v241_v54, 0.0 }
 0x6b7   : > { %245 = vadd.xlane.f32.xlu1 %v244_v15 }
 0x6b8   : > { %v1041_v9 = vpack.c.bf16 %v1037_v7, %v1036_v4  ;;  %v1035_v10 = vadd.f32 %v5266_v8, %v5587_v53  ;;  %v242_v53 = vmul.f32 %v239_v50, %v239_v50  ;;  %v5401_v4 = vmov 1.0   ;;  %v1298_v7 = vld [vmem:[%s6239_s1 + $0x58] sm:$0xff]   ;;  %v1300_v8 = vld [vmem:[%s6239_s1 + $0x60] sm:$0xff]  }
 0x6b9   : > { %v1303_v48 = vunpack.c.h.bf16 %v1298_v7 }
 0x6ba   : > { %4520 = vmatpush3.bf16.msra.mxu1 %v1041_v9  ;;  %v1040_v13 = vpack.c.bf16 %v1035_v10, %v1034_v11  ;;  %v247_v14 = vsel %vm243_vm9, %v242_v53, 0.0  ;;  %v1304_v9 = vunpack.c.l.bf16 %v1300_v8  ;;  %v1305_v10 = vunpack.c.h.bf16 %v1300_v8 }
 0x6bb   : > { %4521 = vmatprep.subr.bf16.mxu1 %v5392_v12  ;;  %248 = vadd.xlane.f32.xlu0 %v247_v14  ;;  %v1302_v11 = vunpack.c.l.bf16 %v1298_v7 }
 0x6bd   : > { %v4932_v53 = vpack.i.bf16 %v1303_v48, %v1302_v11 }
 0x6be   : > { %4522 = vmatpush3.bf16.msra.mxu1 %v1040_v13  ;;  %v5402_v13 = vmov 8  }
 0x6bf   : > { %4925 = vset.pattern.permute.xlu1 %v5402_v13  ;;  %4931 = vset.pattern.permute.xlu0 %v5402_v13 }
 0x6c1   : > { %4524 = vmatmul.mubr.msk.bf16.vlgmr.msra.gmra.mxu1 %vm371_vm3, %v1038_v57  ;;  %v5665_v57 = vcvt.s32.f32 %v1193_v23 }
 0x6c2   : > { %4541 = vmatprep.mubr.msk.bf16.mxu1 %vm243_vm9, %v1298_v7 }
 0x6d1   : > { %4933 = vperm.xlu0 %4931, %v4932_v53   ;;  %v1639_v53 = vld [vmem:[%s6239_s1 + $0x78] sm:$0xff]  }
 0x6d5   : > { %4970 = vset.pattern.permute.xlu0 %v5394_v16 }
 0x740   : > { %v5658_v41 = vpop.xlane.xlu1 %245 }
 0x744   : > { %v5656_v40 = vpop.xlane.xlu0 %248 }
 0x781   : > { %v1084_v18 = vpop.f32.mrf.mxu1 }
 0x782   : > { %v5646_v19 = vadd.f32 %v1084_v18, %v1045_v17  ;;  %v1396_v18 = vld [vmem:[%s6239_s1 + $0x68] sm:$0xff]  }
 0x783   : > { %v4525_v20 = vpop.f32.mrf.mxu1 }
 0x784   : > { %4527 = vmatprep.subr.mxu0 %v5646_v19  ;;  %v1171_v25 = vmul.f32 %v5646_v19, %v5646_v19  ;;  %v1398_v20 = vunpack.c.l.bf16 %v1396_v18 }
 0x785   : > { %v1087_v21 = vpop.f32.mrf.mxu1  ;;  %4528 = vmatpush3.msra.mxu0 %v5646_v19 }
 0x786   : > { %4530 = vmatmul.mubr.msk.f32.vlgmr.msra.gmra.mxu0 %vm243_vm9, %v239_v50  ;;  %4532 = vmatprep.subr.mxu0 %v5392_v12  ;;  %v1172_v27 = vrot.slane %v1171_v25, 4  ;;  %v4926_v50 = vpack.i.bf16 %v1305_v10, %v1304_v9  ;;  %v1399_v21 = vunpack.c.h.bf16 %v1396_v18 }
 0x787   : > { %v4526_v22 = vpop.f32.mrf.mxu1  ;;  %4536 = vmatprep.mubr.msk.f32.mxu0 %vm5393_vm2, %v5392_v12 }
 0x788   : > { %v1173_v29 = vadd.f32 %v1172_v27, %v1171_v25  ;;  %4927 = vperm.xlu1 %4925, %v4926_v50   ;;  %v4938_v22 = vpack.i.bf16 %v1399_v21, %v1398_v20  ;;  %v1644_v20 = vunpack.c.h.bf16 %v1639_v53 }
 0x78a   : > { %v1174_v30 = vrot.slane %v1173_v29, 2 }
 0x78c   : > { %v1175_v31 = vadd.f32 %v1174_v30, %v1173_v29  ;;  %4937 = vset.pattern.permute.xlu1 %v5394_v16  ;;  %v4934_v29 = vpop.permute.xlu0 %4933 }
 0x78d   : > { %4939 = vperm.xlu1 %4937, %v4938_v22  }
 0x78e   : > { %v1176_v32 = vrot.slane %v1175_v31, 1 }
 0x790   : > { %v1177_v34 = vadd.f32 %v1176_v32, %v1175_v31 }
 0x791   : > { %4953 = vset.pattern.permute.xlu1 %v5396_v38 }
 0x803   : > { %v4928_v25 = vpop.permute.xlu1 %4927 }
 0x846   : > { %v4531_v33 = vpop.f32.mrf.mxu0 }
 0x847   : > { %v1179_v35 = vmul.f32 2.0, %v4531_v33 }
 0x848   : > { %v1162_v36 = vpop.f32.mrf.mxu0 }
 0x849   : > { %v1181_v37 = vsub.f32 %v1177_v34, %v1179_v35  ;;  %v1178_v39 = vmul.f32 2.0, %v1162_v36 }
 0x84b   : > { %v1180_v42 = vsub.f32 %v1177_v34, %v1178_v39  ;;  %v1183_v43 = vadd.f32 %v1181_v37, %v5656_v40 }
 0x84d   : > { %v1182_v44 = vadd.f32 %v1180_v42, %v5658_v41  ;;  %v1475_v42 = vld [vmem:[%s6239_s1 + $0x70] sm:$0xff]  }
 0x84e   : > { %1486 = vrot.lane.b32.xlu1 %v1475_v42, %s5395_s23 }
 0x84f   : > { %v1184_v45 = vmin.f32 %v1182_v44, %v1183_v43 }
 0x851   : > { %v1185_v46 = vrot.slane %v1184_v45, 4 }
 0x853   : > { %v1186_v51 = vmin.f32 %v1184_v45, %v1185_v46 }
 0x855   : > { %v1187_v52 = vrot.slane %v1186_v51, 2 }
 0x857   : > { %v1188_v24 = vmin.f32 %v1186_v51, %v1187_v52 }
 0x859   : > { %v1189_v26 = vrot.slane %v1188_v24, 1 }
 0x85b   : > { %v1190_v58 = vmin.f32 %v1188_v24, %v1189_v26 }
 0x85d   : > { %vm1196_vm10 = vcmp.le.f32.partialorder %v1182_v44, %v1190_v58  ;;  %vm1197_vm11 = vcmp.le.f32.partialorder %v1183_v43, %v1190_v58  ;;  %v4940_v43 = vpop.permute.xlu1 %4939 }
 0x85e   : > { %v1198_v59 = vsel %vm1196_vm10, %v5663_v28, 16.0  ;;  %v1199_v60 = vsel %vm1197_vm11, %v5665_v57, 16.0 }
 0x85f   : > { %v1200_v61 = vmin.f32 %v1198_v59, %v1199_v60  ;;  %v1477_v60 = vunpack.c.l.bf16 %v1475_v42 }
 0x861   : > { %v1201_v62 = vrot.slane %v1200_v61, 4 }
 0x863   : > { %v1202_v63 = vmin.f32 %v1200_v61, %v1201_v62  ;;  %v1478_v61 = vunpack.c.h.bf16 %v1475_v42 }
 0x865   : > { %v1203_v47 = vrot.slane %v1202_v63, 2  ;;  %v4954_v62 = vpack.i.bf16 %v1478_v61, %v1477_v60 }
 0x867   : > { %v1204_v0 = vmin.f32 %v1202_v63, %v1203_v47 }
 0x869   : > { %v1205_v1 = vrot.slane %v1204_v0, 1 }
 0x86b   : > { %v1206_v3 = vmin.f32 %v1204_v0, %v1205_v1 }
 0x86d   : > { %vm1208_vm12 = vcmp.eq.f32.partialorder %v5665_v57, %v1206_v3  ;;  %vm1207_vm13 = vcmp.eq.f32.partialorder %v5663_v28, %v1206_v3 }
 0x86e   : > { %4533 = vmatpush3.msk.msra.mxu0 %vm1208_vm12, %v5401_v4 }
 0x86f   : > { %4534 = vmatprep.subr.mxu0 %v5392_v12 }
 0x870   : > { %4535 = vmatpush3.msk.msra.mxu0 %vm1207_vm13, %v5401_v4 }
 0x871   : > { %4537 = vmatmul.mubr.msk.f32.vlgmr.msra.gmra.mxu0 %vm447_vm4, %v240_v5  ;;  %4545 = vmatprep.subr.bf16.mxu0 %v5392_v12 }
 0x872   : > { %4549 = vmatprep.mubr.msk.bf16.mxu0 %vm5393_vm2, %v5392_v12 }
 0x8c0   : > { %v1487_v59 = vpop.permute.xlu1 %1486 }
 0x931   : > { %v5692_v54 = vpop.f32.mrf.mxu0 }
 0x932   : > { %v1306_v14 = vpack.c.bf16 %v5692_v54, %v5692_v54 }
 0x933   : > { %v4538_v15 = vpop.f32.mrf.mxu0 }
 0x934   : > { %4786 = vmatprep.subr.msk.bf16.mxu1 %vm1343_vm14, %v1306_v14  ;;  %v1345_v17 = vsel %vm1343_vm14, %v1306_v14, 0  ;;  %v1641_v14 = vld [vmem:[%s6239_s1 + $0x80] sm:$0xff]  }
 0x935   : > { %4540 = vmatpush3.bf16.msra.mxu1 %v1345_v17  ;;  %v1645_v15 = vunpack.c.l.bf16 %v1641_v14  ;;  %v1646_v17 = vunpack.c.h.bf16 %v1641_v14 }
 0x936   : > { %4553 = vmatprep.subr.bf16.mxu1 %v5392_v12 }
 0x937   : > { %v4960_v21 = vpack.i.bf16 %v1646_v17, %v1645_v15 }
 0x938   : > { %4542 = vmatmul.mubr.msk.bf16.vlgmr.msra.gmra.mxu1 %vm243_vm9, %v1300_v8 }
 0x939   : > { %4555 = vmatprep.mubr.msk.bf16.mxu1 %vm5393_vm2, %v5392_v12 }
 0x9f8   : > { %v4543_v27 = vpop.f32.mrf.mxu1 }
 0x9f9   : > { %v5706_v32 = vadd.low.f32.bf16 %v4543_v27, %v4928_v25 }
 0x9fa   : > { %v1381_v30 = vpop.f32.mrf.mxu1 }
 0x9fb   : > { %v5714_v37 = vadd.low.f32.bf16 %v1381_v30, %v4934_v29 }
 0x9fc   : > { %v4544_v31 = vpop.f32.mrf.mxu1 }
 0x9fd   : > { %v5708_v33 = vadd.high.f32.bf16 %v4544_v31, %v4928_v25 }
 0x9fe   : > { %v1384_v34 = vpop.f32.mrf.mxu1 }
 0x9ff   : > { %v1401_v35 = vpack.c.bf16 %v5708_v33, %v5706_v32  ;;  %v5712_v36 = vadd.high.f32.bf16 %v1384_v34, %v4934_v29 }
 0xa01   : > { %4546 = vmatpush3.bf16.msra.mxu0 %v1401_v35  ;;  %v1400_v39 = vpack.c.bf16 %v5712_v36, %v5714_v37 }
 0xa02   : > { %4547 = vmatprep.subr.bf16.mxu0 %v5392_v12 }
 0xa05   : > { %4548 = vmatpush3.bf16.msra.mxu0 %v1400_v39 }
 0xa06   : > { %4559 = vmatprep.subr.bf16.mxu0 %v5392_v12 }
 0xa08   : > { %4550 = vmatmul.mubr.msk.bf16.vlgmr.msra.gmra.mxu0 %vm371_vm3, %v1396_v18  ;;  %v1643_v18 = vunpack.c.l.bf16 %v1639_v53 }
 0xa09   : > { %4561 = vmatprep.mubr.msk.bf16.mxu0 %vm5393_vm2, %v5392_v12 }
 0xa0a   : > { %v4965_v22 = vpack.i.bf16 %v1644_v20, %v1643_v18 }
 0xac8   : > { %v1454_v44 = vpop.f32.mrf.mxu0 }
 0xac9   : > { %v5271_v46 = vadd.low.f32.bf16 %v1454_v44, %v4940_v43 }
 0xaca   : > { %v4551_v45 = vpop.f32.mrf.mxu0 }
 0xacb   : > { %v1461_v23 = vmax.f32 %v5271_v46, 0.0 }
 0xacc   : > { %v1457_v49 = vpop.f32.mrf.mxu0 }
 0xacd   : > { %v5272_v51 = vadd.high.f32.bf16 %v1457_v49, %v4940_v43 }
 0xace   : > { %v4552_v52 = vpop.f32.mrf.mxu0 }
 0xacf   : > { %v1462_v24 = vmax.f32 %v5272_v51, 0.0 }
 0xad1   : > { %v1480_v26 = vpack.c.bf16 %v1462_v24, %v1461_v23  ;;  %v4943_v58 = vpack.i.bf16 %v1462_v24, %v1461_v23 }
 0xad3   : > { %4944 = vrot.lane.b32.xlu1 %v4943_v58, %s5398_s26  ;;  %4554 = vmatpush3.bf16.msra.mxu1 %v1480_v26  ;;  %v1737_v26 = vld [vmem:[%s6239_s1 + $0x88] sm:$0xff]  }
 0xad4   : > { %4565 = vmatprep.subr.bf16.mxu1 %v5392_v12 }
 0xad6   : > { %4556 = vmatmul.mubr.msk.bf16.vlgmr.msra.gmra.mxu1 %vm447_vm4, %v1487_v59  ;;  %v1740_v59 = vunpack.c.h.bf16 %v1737_v26 }
 0xad7   : > { %4949 = vrot.lane.b32.xlu1 %v4943_v58, %s5397_s25  ;;  %4567 = vmatprep.mubr.msk.bf16.mxu1 %vm5393_vm2, %v5392_v12  ;;  %v1739_v58 = vunpack.c.l.bf16 %v1737_v26 }
 0xad9   : > { %v4971_v60 = vpack.i.bf16 %v1740_v59, %v1739_v58 }
 0xadb   : > { %1577 = vrot.lane.b32.xlu1 %v1475_v42, %s5399_s30  ;;  %4972 = vperm.xlu0 %4970, %v4971_v60  }
 0xadf   : > { %4955 = vperm.xlu1 %4953, %v4954_v62   ;;  %4986 = vset.pattern.permute.xlu0 %v5396_v38 }
 0xae3   : > { %4959 = vset.pattern.permute.xlu1 %v5400_v6 }
 0xae4   : > { %4961 = vperm.xlu1 %4959, %v4960_v21  }
 0xae8   : > { %4966 = vperm.xlu1 %4959, %v4965_v22   ;;  %v5787_v22 = vld [vmem:[%s6239_s1 + $0xa0] sm:$0xff]  }
 0xb45   : > { %v4945_v63 = vpop.permute.xlu1 %4944 }
 0xb46   : > { %v4947_v47 = vunpack.i.h.bf16 %v4945_v63  ;;  %v4946_v0 = vunpack.i.l.bf16 %v4945_v63 }
 0xb48   : > { %v4176_v1 = vpack.c.bf16 %v4947_v47, %v4946_v0 }
 0xb49   : > { %v4950_v3 = vpop.permute.xlu1 %4949 }
 0xb4a   : > { %v4952_v5 = vunpack.i.h.bf16 %v4950_v3  ;;  %v4951_v7 = vunpack.i.l.bf16 %v4950_v3  ;;  %4560 = vmatpush3.bf16.msk.msra.mxu0 %vm5542_vm7, %v4176_v1 }
 0xb4c   : > { %v4182_v8 = vpack.c.bf16 %v4952_v5, %v4951_v7 }
 0xb4d   : > { %4562 = vmatmul.mubr.msk.bf16.vlgmr.msra.gmra.mxu0 %vm447_vm4, %v1475_v42  ;;  %v1578_v9 = vpop.permute.xlu1 %1577 }
 0xb4e   : > { %4566 = vmatpush3.bf16.msk.msra.mxu1 %vm5546_vm8, %v4182_v8  ;;  %4573 = vmatprep.mubr.msk.bf16.mxu0 %vm447_vm4, %v1639_v53 }
 0xb4f   : > { %4577 = vmatprep.subr.bf16.mxu1 %v5392_v12 }
 0xb51   : > { %4568 = vmatmul.mubr.msk.bf16.vlgmr.msra.gmra.mxu1 %vm447_vm4, %v1578_v9 }
 0xb52   : > { %4581 = vmatprep.mubr.msk.bf16.mxu1 %vm5393_vm2, %v5392_v12 }
 0xb5a   : > { %v4956_v29 = vpop.permute.xlu1 %4955 }
 0xb5f   : > { %v4962_v61 = vpop.permute.xlu1 %4961 }
 0xb63   : > { %v4967_v62 = vpop.permute.xlu1 %4966 }
 0xb96   : > { %v1525_v10 = vpop.f32.mrf.mxu1 }
 0xb98   : > { %v4557_v11 = vpop.f32.mrf.mxu1 }
 0xb9a   : > { %v1528_v48 = vpop.f32.mrf.mxu1 }
 0xb9c   : > { %v4558_v50 = vpop.f32.mrf.mxu1 }
 0xc0d   : > { %v1569_v25 = vpop.f32.mrf.mxu0 }
 0xc0e   : > { %v1570_v30 = vadd.f32 %v1569_v25, %v1525_v10 }
 0xc0f   : > { %v4563_v27 = vpop.f32.mrf.mxu0 }
 0xc11   : > { %v1572_v31 = vpop.f32.mrf.mxu0  ;;  %v1616_v34 = vpop.f32.mrf.mxu1 }
 0xc12   : > { %v1623_v35 = vadd.f32 %v1616_v34, %v1570_v30  ;;  %v1573_v43 = vadd.f32 %v1572_v31, %v1528_v48  ;;  %v1987_v30 = vunpack.c.h.bf16 %v5787_v22  ;;  %v1980_v31 = vld [vmem:[%s6239_s1 + $0x98] sm:$0xff]  }
 0xc13   : > { %v4564_v39 = vpop.f32.mrf.mxu0  ;;  %v4569_v42 = vpop.f32.mrf.mxu1 }
 0xc14   : > { %v5273_v45 = vadd.low.f32.bf16 %v1623_v35, %v4956_v29  ;;  %v1984_v39 = vunpack.c.l.bf16 %v1980_v31  ;;  %v1985_v42 = vunpack.c.h.bf16 %v1980_v31 }
 0xc15   : > { %v1619_v44 = vpop.f32.mrf.mxu1 }
 0xc16   : > { %v1624_v46 = vadd.f32 %v1619_v44, %v1573_v43  ;;  %v1637_v52 = vmax.f32 %v5273_v45, 0.0  ;;  %v4997_v43 = vpack.i.bf16 %v1985_v42, %v1984_v39 }
 0xc17   : > { %v4570_v49 = vpop.f32.mrf.mxu1 }
 0xc18   : > { %v5274_v51 = vadd.high.f32.bf16 %v1624_v46, %v4956_v29  ;;  %v1986_v29 = vunpack.c.l.bf16 %v5787_v22 }
 0xc1a   : > { %v1638_v23 = vmax.f32 %v5274_v51, 0.0  ;;  %v4992_v35 = vpack.i.bf16 %v1987_v30, %v1986_v29 }
 0xc1c   : > { %v1647_v24 = vpack.c.bf16 %v1638_v23, %v1637_v52 }
 0xc1e   : > { %4571 = vmatprep.subr.bf16.mxu0 %v1647_v24 }
 0xc1f   : > { %4572 = vmatpush3.bf16.msra.mxu0 %v1647_v24 }
 0xc20   : > { %4585 = vmatprep.subr.bf16.mxu0 %v5392_v12 }
 0xc22   : > { %4574 = vmatmul.mubr.msk.bf16.vlgmr.msra.gmra.mxu0 %vm447_vm4, %v1641_v14 }
 0xc23   : > { %4587 = vmatprep.mubr.msk.bf16.mxu0 %vm5393_vm2, %v5392_v12 }
 0xce2   : > { %v4575_v63 = vpop.f32.mrf.mxu0 }
 0xce3   : > { %v5275_v0 = vadd.low.f32.bf16 %v4575_v63, %v4962_v61 }
 0xce4   : > { %v1718_v47 = vpop.f32.mrf.mxu0 }
 0xce5   : > { %v5760_v7 = vadd.f32 %v5275_v0, %v5706_v32  ;;  %v5277_v8 = vadd.low.f32.bf16 %v1718_v47, %v4967_v62  ;;  %v2133_v47 = vld [vmem:[%s6239_s1] sm:$0xff]   ;;  %v2135_v0 = vld [vmem:[%s6239_s1 + $0x8] sm:$0xff]  }
 0xce6   : > { %v4576_v1 = vpop.f32.mrf.mxu0 }
 0xce7   : > { %v5276_v3 = vadd.high.f32.bf16 %v4576_v1, %v4962_v61  ;;  %v5771_v50 = vadd.f32 %v5277_v8, %v5714_v37  ;;  %v2139_v1 = vunpack.c.l.bf16 %v2135_v0  ;;  %v2138_v8 = vunpack.c.h.bf16 %v2133_v47 }
 0xce8   : > { %v1721_v5 = vpop.f32.mrf.mxu0 }
 0xce9   : > { %v5763_v9 = vadd.f32 %v5276_v3, %v5708_v33  ;;  %v5278_v10 = vadd.high.f32.bf16 %v1721_v5, %v4967_v62  ;;  %v1816_v33 = vld [vmem:[%s6239_s1 + $0x90] sm:$0xff]   ;;  %v2140_v3 = vunpack.c.h.bf16 %v2135_v0  ;;  %v2137_v5 = vunpack.c.l.bf16 %v2133_v47 }
 0xcea   : > { %1827 = vrot.lane.b32.xlu1 %v1816_v33, %s5395_s23  ;;  %v1818_v44 = vunpack.c.l.bf16 %v1816_v33  ;;  %v1819_v45 = vunpack.c.h.bf16 %v1816_v33 }
 0xceb   : > { %v1742_v11 = vpack.c.bf16 %v5763_v9, %v5760_v7  ;;  %v5768_v48 = vadd.f32 %v5278_v10, %v5712_v36  ;;  %v4973_v36 = vpop.permute.xlu0 %4972  ;;  %v5003_v10 = vpack.i.bf16 %v2140_v3, %v2139_v1 }
 0xcec   : > { %v4987_v46 = vpack.i.bf16 %v1819_v45, %v1818_v44  ;;  %v2230_v44 = vld [vmem:[%s6239_s1 + $0x10] sm:$0xff]  }
 0xced   : > { %4578 = vmatpush3.bf16.msra.mxu1 %v1742_v11  ;;  %v1741_v32 = vpack.c.bf16 %v5768_v48, %v5771_v50  ;;  %v5009_v11 = vpack.i.bf16 %v2138_v8, %v2137_v5  ;;  %v2232_v45 = vunpack.c.l.bf16 %v2230_v44 }
 0xcee   : > { %4579 = vmatprep.subr.bf16.mxu1 %v5392_v12 }
 0xcf1   : > { %4580 = vmatpush3.bf16.msra.mxu1 %v1741_v32 }
 0xcf2   : > { %4591 = vmatprep.subr.bf16.mxu1 %v5392_v12 }
 0xcf4   : > { %4582 = vmatmul.mubr.msk.bf16.vlgmr.msra.gmra.mxu1 %vm371_vm3, %v1737_v26 }
 0xcf5   : > { %4593 = vmatprep.mubr.msk.bf16.mxu1 %vm5393_vm2, %v5392_v12 }
 0xd5c   : > { %v1828_v34 = vpop.permute.xlu1 %1827 }
 0xdb4   : > { %v1795_v37 = vpop.f32.mrf.mxu1 }
 0xdb5   : > { %v5279_v14 = vadd.low.f32.bf16 %v1795_v37, %v4973_v36 }
 0xdb6   : > { %v4583_v53 = vpop.f32.mrf.mxu1 }
 0xdb7   : > { %v1802_v20 = vmax.f32 %v5279_v14, 0.0 }
 0xdb8   : > { %v1798_v15 = vpop.f32.mrf.mxu1 }
 0xdb9   : > { %v5280_v17 = vadd.high.f32.bf16 %v1798_v15, %v4973_v36 }
 0xdba   : > { %v4584_v18 = vpop.f32.mrf.mxu1 }
 0xdbb   : > { %v1803_v21 = vmax.f32 %v5280_v17, 0.0 }
 0xdbd   : > { %v1821_v25 = vpack.c.bf16 %v1803_v21, %v1802_v20  ;;  %v4981_v27 = vpack.i.bf16 %v1803_v21, %v1802_v20 }
 0xdbf   : > { %4982 = vrot.lane.b32.xlu0 %v4981_v27, %s5397_s25  ;;  %4977 = vrot.lane.b32.xlu1 %v4981_v27, %s5398_s26 }
 0xdc0   : > { %4586 = vmatpush3.bf16.msra.mxu0 %v1821_v25 }
 0xdc1   : > { %4597 = vmatprep.subr.bf16.mxu0 %v5392_v12 }
 0xdc3   : > { %1918 = vrot.lane.b32.xlu1 %v1816_v33, %s5399_s30  ;;  %4588 = vmatmul.mubr.msk.bf16.vlgmr.msra.gmra.mxu0 %vm447_vm4, %v1828_v34 }
 0xdc4   : > { %4599 = vmatprep.mubr.msk.bf16.mxu0 %vm5393_vm2, %v5392_v12  ;;  %4988 = vperm.xlu0 %4986, %v4987_v46   ;;  %v2233_v46 = vunpack.c.h.bf16 %v2230_v44 }
 0xdc7   : > { %4993 = vperm.xlu1 %4959, %v4992_v35  }
 0xdc8   : > { %5002 = vset.pattern.permute.xlu0 %v5391_v2 }
 0xdc9   : > { %5004 = vperm.xlu0 %5002, %v5003_v10  }
 0xdcb   : > { %4998 = vperm.xlu1 %4959, %v4997_v43  }
 0xdcd   : > { %5030 = vset.pattern.permute.xlu0 %v5396_v38 }
 0xdcf   : > { %5008 = vset.pattern.permute.xlu1 %v5391_v2 }
 0xdd0   : > { %5010 = vperm.xlu1 %5008, %v5009_v11  }
 0xdd4   : > { %5014 = vset.pattern.permute.xlu1 %v5394_v16 }
 0xe31   : > { %v4983_v49 = vpop.permute.xlu0 %4982  ;;  %v4978_v51 = vpop.permute.xlu1 %4977 }
 0xe32   : > { %v4985_v52 = vunpack.i.h.bf16 %v4983_v49  ;;  %v4984_v23 = vunpack.i.l.bf16 %v4983_v49  ;;  %v4980_v24 = vunpack.i.h.bf16 %v4978_v51  ;;  %v4979_v26 = vunpack.i.l.bf16 %v4978_v51 }
 0xe33   : > { %v5015_v49 = vpack.i.bf16 %v2233_v46, %v2232_v45 }
 0xe34   : > { %v4202_v58 = vpack.c.bf16 %v4985_v52, %v4984_v23  ;;  %v4196_v59 = vpack.c.bf16 %v4980_v24, %v4979_v26 }
 0xe35   : > { %v1919_v60 = vpop.permute.xlu1 %1918  ;;  %5016 = vperm.xlu1 %5014, %v5015_v49  }
 0xe36   : > { %4592 = vmatpush3.bf16.msk.msra.mxu1 %vm5542_vm7, %v4196_v59  ;;  %4598 = vmatpush3.bf16.msk.msra.mxu0 %vm5546_vm8, %v4202_v58 }
 0xe37   : > { %4609 = vmatprep.subr.bf16.mxu0 %v5392_v12 }
 0xe39   : > { %4594 = vmatmul.mubr.msk.bf16.vlgmr.msra.gmra.mxu1 %vm447_vm4, %v1816_v33  ;;  %4600 = vmatmul.mubr.msk.bf16.vlgmr.msra.gmra.mxu0 %vm447_vm4, %v1919_v60 }
 0xe3a   : > { %4613 = vmatprep.mubr.msk.bf16.mxu0 %vm5393_vm2, %v5392_v12  ;;  %4605 = vmatprep.mubr.msk.bf16.mxu1 %vm447_vm4, %v1980_v31  ;;  %v4210_v31 = vld [vmem:[%s5496_s13 + $0x4] sm:$0xf]  ;;  %s6162_s13 = scalar_lea.vmem [#allocation2], %s4109_s17 }
 0xe3b   : > { %v2141_v39 = vpack.c.bf16 %v4210_v31, %v4210_v31  ;;  %5036 = vset.pattern.permute.xlu1 %v5400_v6 }
 0xe3d   : > { %v2179_v43 = vsel %vm297_vm1, %v2141_v39, 0 }
 0xe3f   : > { %v4989_v32 = vpop.permute.xlu0 %4988 }
 0xe83   : > { %v1866_v2 = vpop.f32.mrf.mxu0 }
 0xe85   : > { %v4589_v61 = vpop.f32.mrf.mxu0 }
 0xe87   : > { %v1869_v62 = vpop.f32.mrf.mxu0 }
 0xe89   : > { %v4590_v63 = vpop.f32.mrf.mxu0 }
 0xe8a   : > { %v5005_v63 = vpop.permute.xlu0 %5004 }
 0xef9   : > { %v1910_v33 = vpop.f32.mrf.mxu1  ;;  %v1957_v36 = vpop.f32.mrf.mxu0 }
 0xefa   : > { %v1911_v37 = vadd.f32 %v1910_v33, %v1866_v2 }
 0xefb   : > { %v4595_v53 = vpop.f32.mrf.mxu1  ;;  %v4601_v14 = vpop.f32.mrf.mxu0 }
 0xefc   : > { %v1964_v15 = vadd.f32 %v1957_v36, %v1911_v37  ;;  %v2309_v53 = vld [vmem:[%s6239_s1 + $0x18] sm:$0xff]  }
 0xefd   : > { %v1913_v17 = vpop.f32.mrf.mxu1  ;;  %v1960_v18 = vpop.f32.mrf.mxu0  ;;  %2320 = vrot.lane.b32.xlu0 %v2309_v53, %s5395_s23 }
 0xefe   : > { %v1914_v20 = vadd.f32 %v1913_v17, %v1869_v62  ;;  %v5281_v27 = vadd.low.f32.bf16 %v1964_v15, %v4989_v32 }
 0xeff   : > { %v4596_v21 = vpop.f32.mrf.mxu1  ;;  %v4602_v25 = vpop.f32.mrf.mxu0 }
 0xf00   : > { %v1965_v29 = vadd.f32 %v1960_v18, %v1914_v20  ;;  %v1978_v34 = vmax.f32 %v5281_v27, 0.0 }
 0xf02   : > { %v5282_v30 = vadd.high.f32.bf16 %v1965_v29, %v4989_v32 }
 0xf04   : > { %v1979_v35 = vmax.f32 %v5282_v30, 0.0 }
 0xf06   : > { %v1988_v42 = vpack.c.bf16 %v1979_v35, %v1978_v34 }
 0xf08   : > { %4603 = vmatprep.subr.bf16.mxu1 %v1988_v42 }
 0xf09   : > { %4604 = vmatpush3.bf16.msra.mxu1 %v1988_v42  ;;  %v2312_v42 = vunpack.c.h.bf16 %v2309_v53 }
 0xf0a   : > { %4787 = vmatprep.subr.msk.bf16.mxu1 %vm297_vm1, %v2141_v39  ;;  %v2311_v39 = vunpack.c.l.bf16 %v2309_v53 }
 0xf0c   : > { %4606 = vmatmul.mubr.msk.bf16.vlgmr.msra.gmra.mxu1 %vm447_vm4, %v5787_v22  ;;  %v4994_v22 = vpop.permute.xlu1 %4993  ;;  %v5031_v46 = vpack.i.bf16 %v2312_v42, %v2311_v39  ;;  %v2571_v39 = vld [vmem:[%s6239_s1 + $0x30] sm:$0xff]  }
 0xf0d   : > { %4618 = vmatpush3.bf16.msra.mxu1 %v2179_v43  ;;  %4619 = vmatprep.mubr.msk.bf16.mxu1 %vm290_vm0, %v2133_v47  ;;  %v2573_v42 = vunpack.c.l.bf16 %v2571_v39 }
 0xf0e   : > { %4631 = vmatprep.subr.bf16.mxu1 %v5392_v12 }
 0xf10   : > { %v4999_v52 = vpop.permute.xlu1 %4998 }
 0xf14   : > { %4620 = vmatmul.mubr.msk.bf16.vlgmr.msra.gmra.mxu1 %vm290_vm0, %v2135_v0  ;;  %v5011_v8 = vpop.permute.xlu1 %5010 }
 0xf15   : > { %4633 = vmatprep.mubr.msk.bf16.mxu1 %vm5393_vm2, %v5392_v12 }
 0xf18   : > { %v5017_v18 = vpop.permute.xlu1 %5016 }
 0xf6f   : > { %v2321_v45 = vpop.permute.xlu0 %2320 }
 0xfcc   : > { %v4607_v51 = vpop.f32.mrf.mxu1 }
 0xfcd   : > { %v5283_v24 = vadd.low.f32.bf16 %v4607_v51, %v4994_v22 }
 0xfce   : > { %v2059_v23 = vpop.f32.mrf.mxu1 }
 0xfcf   : > { %v2076_v60 = vadd.f32 %v5283_v24, %v5760_v7  ;;  %v5285_v2 = vadd.low.f32.bf16 %v2059_v23, %v4999_v52 }
 0xfd0   : > { %v4608_v26 = vpop.f32.mrf.mxu1 }
 0xfd1   : > { %v5284_v58 = vadd.high.f32.bf16 %v4608_v26, %v4994_v22  ;;  %v2074_v5 = vadd.f32 %v5285_v2, %v5771_v50 }
 0xfd2   : > { %v2062_v59 = vpop.f32.mrf.mxu1 }
 0xfd3   : > { %v2077_v61 = vadd.f32 %v5284_v58, %v5763_v9  ;;  %v5286_v62 = vadd.high.f32.bf16 %v2062_v59, %v4999_v52  ;;  %v2078_v9 = vld [vmem:[%s6239_s1 + $0xa8] sm:$0x3] }
 0xfd4   : > { %v4621_v47 = vpop.f32.mrf.mxu1 }
 0xfd5   : > { %v2081_v0 = vpack.c.bf16 %v2077_v61, %v2076_v60  ;;  %v2075_v1 = vadd.f32 %v5286_v62, %v5768_v48  ;;  %v5842_v33 = vadd.low.f32.bf16 %v4621_v47, %v5005_v63  ;;  %v2475_v47 = vld [vmem:[%s6239_s1 + $0x28] sm:$0xff]  }
 0xfd6   : > { %v2215_v3 = vpop.f32.mrf.mxu1 }
 0xfd7   : > { %4610 = vmatpush3.bf16.msra.mxu0 %v2081_v0  ;;  %v2080_v11 = vpack.c.bf16 %v2075_v1, %v2074_v5  ;;  %v5853_v36 = vadd.low.f32.bf16 %v2215_v3, %v5011_v8  ;;  %v2479_v0 = vunpack.c.l.bf16 %v2475_v47  ;;  %v2480_v1 = vunpack.c.h.bf16 %v2475_v47 }
 0xfd8   : > { %v4622_v10 = vpop.f32.mrf.mxu1  ;;  %4611 = vmatprep.subr.bf16.mxu0 %v5392_v12 }
 0xfd9   : > { %v5840_v32 = vadd.high.f32.bf16 %v4622_v10, %v5005_v63  ;;  %v2473_v63 = vld [vmem:[%s6239_s1 + $0x20] sm:$0xff]  }
 0xfda   : > { %v2218_v7 = vpop.f32.mrf.mxu1  ;;  %v2477_v3 = vunpack.c.l.bf16 %v2473_v63  ;;  %v2478_v5 = vunpack.c.h.bf16 %v2473_v63 }
 0xfdb   : > { %4612 = vmatpush3.bf16.msra.mxu0 %v2080_v11  ;;  %v2235_v48 = vpack.c.bf16 %v5840_v32, %v5842_v33  ;;  %v5850_v50 = vadd.high.f32.bf16 %v2218_v7, %v5011_v8  ;;  %v5037_v8 = vpack.i.bf16 %v2480_v1, %v2479_v0 }
 0xfdc   : > { %4623 = vmatprep.subr.bf16.mxu0 %v5392_v12  ;;  %v5042_v10 = vpack.i.bf16 %v2478_v5, %v2477_v3 }
 0xfdd   : > { %v2234_v37 = vpack.c.bf16 %v5850_v50, %v5853_v36 }
 0xfde   : > { %4614 = vmatmul.mubr.msk.bf16.vlgmr.msra.gmra.mxu0 %vm371_vm3, %v2078_v9 }
 0xfdf   : > { %4624 = vmatpush3.bf16.msra.mxu0 %v2235_v48  ;;  %4627 = vmatprep.mubr.msk.bf16.mxu0 %vm5393_vm2, %v5392_v12 }
 0xfe0   : > { %4625 = vmatprep.subr.bf16.mxu0 %v5392_v12 }
 0xfe3   : > { %4626 = vmatpush3.bf16.msra.mxu0 %v2234_v37 }
 0xfe4   : > { %4637 = vmatprep.subr.bf16.mxu0 %v5392_v12 }
 0xfe6   : > { %4628 = vmatmul.mubr.msk.bf16.vlgmr.msra.gmra.mxu0 %vm371_vm3, %v2230_v44 }
 0xfe7   : > { %4639 = vmatprep.mubr.msk.bf16.mxu0 %vm5393_vm2, %v5392_v12 }
0x109e   : > { %v5868_v14 = vpop.f32.mrf.mxu0 }
0x10a0   : > { %v4615_v15 = vpop.f32.mrf.mxu0 }
0x10a2   : > { %v2127_v17 = vpop.f32.mrf.mxu0 }
0x10a4   : > { %v4616_v20 = vpop.f32.mrf.mxu0 }
0x10a6   : > { %v2288_v21 = vpop.f32.mrf.mxu0 }
0x10a7   : > { %v5291_v27 = vadd.low.f32.bf16 %v2288_v21, %v5017_v18 }
0x10a8   : > { %v4629_v25 = vpop.f32.mrf.mxu0 }
0x10a9   : > { %v2295_v34 = vmax.f32 %v5291_v27, 0.0 }
0x10aa   : > { %v2291_v29 = vpop.f32.mrf.mxu0 }
0x10ab   : > { %v5292_v30 = vadd.high.f32.bf16 %v2291_v29, %v5017_v18 }
0x10ac   : > { %v4630_v31 = vpop.f32.mrf.mxu0 }
0x10ad   : > { %v2296_v35 = vmax.f32 %v5292_v30, 0.0 }
0x10af   : > { %v2314_v43 = vpack.c.bf16 %v2296_v35, %v2295_v34  ;;  %v5025_v44 = vpack.i.bf16 %v2296_v35, %v2295_v34 }
0x10b1   : > { %5026 = vrot.lane.b32.xlu0 %v5025_v44, %s5397_s25  ;;  %5021 = vrot.lane.b32.xlu1 %v5025_v44, %s5398_s26 }
0x10b2   : > { %4632 = vmatpush3.bf16.msra.mxu1 %v2314_v43  ;;  %v2574_v43 = vunpack.c.h.bf16 %v2571_v39 }
0x10b3   : > { %4643 = vmatprep.subr.bf16.mxu1 %v5392_v12 }
0x10b4   : > { %v5048_v44 = vpack.i.bf16 %v2574_v43, %v2573_v42 }
0x10b5   : > { %2411 = vrot.lane.b32.xlu1 %v2309_v53, %s5399_s30  ;;  %4634 = vmatmul.mubr.msk.bf16.vlgmr.msra.gmra.mxu1 %vm447_vm4, %v2321_v45 }
0x10b6   : > { %4645 = vmatprep.mubr.msk.bf16.mxu1 %vm5393_vm2, %v5392_v12  ;;  %5032 = vperm.xlu0 %5030, %v5031_v46  }
0x10b9   : > { %5038 = vperm.xlu1 %5036, %v5037_v8  }
0x10ba   : > { %5047 = vset.pattern.permute.xlu0 %v5394_v16 }
0x10bb   : > { %5049 = vperm.xlu0 %5047, %v5048_v44  }
0x10bd   : > { %5043 = vperm.xlu1 %5036, %v5042_v10   ;;  %v5930_v10 = vld [vmem:[%s6239_s1 + $0x48] sm:$0xff]  }
0x10bf   : > { %5063 = vset.pattern.permute.xlu0 %v5396_v38 }
0x1123   : > { %v5027_v49 = vpop.permute.xlu0 %5026  ;;  %v5022_v22 = vpop.permute.xlu1 %5021 }
0x1124   : > { %v5029_v51 = vunpack.i.h.bf16 %v5027_v49  ;;  %v5028_v52 = vunpack.i.l.bf16 %v5027_v49  ;;  %v5024_v23 = vunpack.i.h.bf16 %v5022_v22  ;;  %v5023_v24 = vunpack.i.l.bf16 %v5022_v22 }
0x1126   : > { %v4228_v26 = vpack.c.bf16 %v5029_v51, %v5028_v52  ;;  %v4222_v58 = vpack.c.bf16 %v5024_v23, %v5023_v24 }
0x1127   : > { %v2412_v59 = vpop.permute.xlu1 %2411 }
0x1128   : > { %4638 = vmatpush3.bf16.msk.msra.mxu0 %vm5542_vm7, %v4222_v58  ;;  %4644 = vmatpush3.bf16.msk.msra.mxu1 %vm5546_vm8, %v4228_v26 }
0x1129   : > { %4655 = vmatprep.subr.bf16.mxu1 %v5392_v12 }
0x112b   : > { %4640 = vmatmul.mubr.msk.bf16.vlgmr.msra.gmra.mxu0 %vm447_vm4, %v2309_v53  ;;  %4646 = vmatmul.mubr.msk.bf16.vlgmr.msra.gmra.mxu1 %vm447_vm4, %v2412_v59 }
0x112c   : > { %4659 = vmatprep.mubr.msk.bf16.mxu1 %vm5393_vm2, %v5392_v12  ;;  %4651 = vmatprep.mubr.msk.bf16.mxu0 %vm447_vm4, %v2473_v63 }
0x1131   : > { %v5033_v11 = vpop.permute.xlu0 %5032 }
0x1134   : > { %v5039_v45 = vpop.permute.xlu1 %5038 }
0x1138   : > { %v5044_v46 = vpop.permute.xlu1 %5043 }
0x1175   : > { %v2359_v60 = vpop.f32.mrf.mxu1 }
0x1177   : > { %v4635_v2 = vpop.f32.mrf.mxu1 }
0x1179   : > { %v2362_v61 = vpop.f32.mrf.mxu1 }
0x117b   : > { %v4636_v62 = vpop.f32.mrf.mxu1 }
0x11eb   : > { %v2403_v7 = vpop.f32.mrf.mxu0  ;;  %v2450_v9 = vpop.f32.mrf.mxu1 }
0x11ec   : > { %v2404_v48 = vadd.f32 %v2403_v7, %v2359_v60 }
0x11ed   : > { %v4641_v37 = vpop.f32.mrf.mxu0  ;;  %v4647_v53 = vpop.f32.mrf.mxu1 }
0x11ee   : > { %v2457_v15 = vadd.f32 %v2450_v9, %v2404_v48  ;;  %v2820_v9 = vunpack.c.l.bf16 %v5930_v10  ;;  %v2821_v48 = vunpack.c.h.bf16 %v5930_v10  ;;  %v2814_v37 = vld [vmem:[%s6239_s1 + $0x40] sm:$0xff]  }
0x11ef   : > { %v2406_v17 = vpop.f32.mrf.mxu0  ;;  %v2453_v18 = vpop.f32.mrf.mxu1 }
0x11f0   : > { %v2407_v20 = vadd.f32 %v2406_v17, %v2362_v61  ;;  %v5293_v27 = vadd.low.f32.bf16 %v2457_v15, %v5033_v11  ;;  %v5069_v15 = vpack.i.bf16 %v2821_v48, %v2820_v9  ;;  %v2818_v17 = vunpack.c.l.bf16 %v2814_v37  ;;  %v5968_v9 = vld [vmem:[%s6239_s1 + $0x68] sm:$0xff]  }
0x11f1   : > { %v4642_v21 = vpop.f32.mrf.mxu0  ;;  %v4648_v25 = vpop.f32.mrf.mxu1  ;;  %v3257_v48 = vunpack.c.l.bf16 %v5968_v9 }
0x11f2   : > { %v2458_v29 = vadd.f32 %v2453_v18, %v2407_v20  ;;  %v2471_v31 = vmax.f32 %v5293_v27, 0.0  ;;  %v2819_v18 = vunpack.c.h.bf16 %v2814_v37 }
0x11f4   : > { %v5294_v30 = vadd.high.f32.bf16 %v2458_v29, %v5033_v11  ;;  %v5074_v20 = vpack.i.bf16 %v2819_v18, %v2818_v17 }
0x11f6   : > { %v2472_v34 = vmax.f32 %v5294_v30, 0.0 }
0x11f8   : > { %v2481_v35 = vpack.c.bf16 %v2472_v34, %v2471_v31 }
0x11fa   : > { %4649 = vmatprep.subr.bf16.mxu0 %v2481_v35 }
0x11fb   : > { %4650 = vmatpush3.bf16.msra.mxu0 %v2481_v35 }
0x11fc   : > { %4663 = vmatprep.subr.bf16.mxu0 %v5392_v12 }
0x11fe   : > { %4652 = vmatmul.mubr.msk.bf16.vlgmr.msra.gmra.mxu0 %vm447_vm4, %v2475_v47 }
0x11ff   : > { %4665 = vmatprep.mubr.msk.bf16.mxu0 %vm5393_vm2, %v5392_v12 }
0x12be   : > { %v4653_v49 = vpop.f32.mrf.mxu0 }
0x12bf   : > { %v5295_v51 = vadd.low.f32.bf16 %v4653_v49, %v5039_v45 }
0x12c0   : > { %v2552_v22 = vpop.f32.mrf.mxu0 }
0x12c1   : > { %v5903_v26 = vadd.f32 %v5295_v51, %v5842_v33  ;;  %v5297_v58 = vadd.low.f32.bf16 %v2552_v22, %v5044_v46 }
0x12c2   : > { %v4654_v52 = vpop.f32.mrf.mxu0 }
0x12c3   : > { %v5296_v23 = vadd.high.f32.bf16 %v4654_v52, %v5039_v45  ;;  %v5914_v62 = vadd.f32 %v5297_v58, %v5853_v36 }
0x12c4   : > { %v2555_v24 = vpop.f32.mrf.mxu0 }
0x12c5   : > { %v5906_v59 = vadd.f32 %v5296_v23, %v5840_v32  ;;  %v5298_v60 = vadd.high.f32.bf16 %v2555_v24, %v5044_v46  ;;  %v2650_v32 = vld [vmem:[%s6239_s1 + $0x38] sm:$0xff]  }
0x12c6   : > { %2661 = vrot.lane.b32.xlu1 %v2650_v32, %s5395_s23  ;;  %v2652_v21 = vunpack.c.l.bf16 %v2650_v32  ;;  %v2653_v25 = vunpack.c.h.bf16 %v2650_v32 }
0x12c7   : > { %v2576_v2 = vpack.c.bf16 %v5906_v59, %v5903_v26  ;;  %v5911_v61 = vadd.f32 %v5298_v60, %v5850_v50  ;;  %v5050_v50 = vpop.permute.xlu0 %5049 }
0x12c8   : > { %v5064_v27 = vpack.i.bf16 %v2653_v25, %v2652_v21 }
0x12c9   : > { %4656 = vmatpush3.bf16.msra.mxu1 %v2576_v2  ;;  %v2575_v33 = vpack.c.bf16 %v5911_v61, %v5914_v62 }
0x12ca   : > { %4657 = vmatprep.subr.bf16.mxu1 %v5392_v12 }
0x12cd   : > { %4658 = vmatpush3.bf16.msra.mxu1 %v2575_v33 }
0x12ce   : > { %4669 = vmatprep.subr.bf16.mxu1 %v5392_v12 }
0x12d0   : > { %4660 = vmatmul.mubr.msk.bf16.vlgmr.msra.gmra.mxu1 %vm371_vm3, %v2571_v39 }
0x12d1   : > { %4671 = vmatprep.mubr.msk.bf16.mxu1 %vm5393_vm2, %v5392_v12 }
0x1338   : > { %v2662_v53 = vpop.permute.xlu1 %2661 }
0x1390   : > { %v2629_v36 = vpop.f32.mrf.mxu1 }
0x1391   : > { %v5299_v47 = vadd.low.f32.bf16 %v2629_v36, %v5050_v50 }
0x1392   : > { %v4661_v63 = vpop.f32.mrf.mxu1 }
0x1393   : > { %v2636_v5 = vmax.f32 %v5299_v47, 0.0 }
0x1394   : > { %v2632_v0 = vpop.f32.mrf.mxu1 }
0x1395   : > { %v5300_v1 = vadd.high.f32.bf16 %v2632_v0, %v5050_v50 }
0x1396   : > { %v4662_v3 = vpop.f32.mrf.mxu1 }
0x1397   : > { %v2637_v8 = vmax.f32 %v5300_v1, 0.0 }
0x1399   : > { %v2655_v11 = vpack.c.bf16 %v2637_v8, %v2636_v5  ;;  %v5058_v7 = vpack.i.bf16 %v2637_v8, %v2636_v5  ;;  %v5243_v8 = vld [vmem:[%s6240_s2] sm:$0xff] }
0x139b   : > { %5059 = vrot.lane.b32.xlu0 %v5058_v7, %s5397_s25  ;;  %5054 = vrot.lane.b32.xlu1 %v5058_v7, %s5398_s26 }
0x139c   : > { %4664 = vmatpush3.bf16.msra.mxu0 %v2655_v11  ;;  %v2912_v11 = vld [vmem:[%s6239_s1 + $0x50] sm:$0xf] }
0x139d   : > { %4675 = vmatprep.subr.bf16.mxu0 %v5392_v12  ;;  %v2913_v7 = vunpack.c.l.bf16 %v2912_v11 }
0x139f   : > { %2752 = vrot.lane.b32.xlu1 %v2650_v32, %s5399_s30  ;;  %4666 = vmatmul.mubr.msk.bf16.vlgmr.msra.gmra.mxu0 %vm447_vm4, %v2662_v53 }
0x13a0   : > { %4677 = vmatprep.mubr.msk.bf16.mxu0 %vm5393_vm2, %v5392_v12  ;;  %5065 = vperm.xlu0 %5063, %v5064_v27  }
0x13a3   : > { %5070 = vperm.xlu1 %5036, %v5069_v15  }
0x13a4   : > { %5079 = vset.pattern.permute.xlu0 %v5394_v16 }
0x13a5   : > { %2918 = vperm.xlu0 %5079, %v2913_v7  }
0x13a7   : > { %5075 = vperm.xlu1 %5036, %v5074_v20  }
0x13ab   : > { %5080 = vset.pattern.permute.xlu1 %v5402_v13 }
0x140d   : > { %v5060_v29 = vpop.permute.xlu0 %5059  ;;  %v5055_v30 = vpop.permute.xlu1 %5054 }
0x140e   : > { %v5062_v31 = vunpack.i.h.bf16 %v5060_v29  ;;  %v5061_v34 = vunpack.i.l.bf16 %v5060_v29  ;;  %v5057_v35 = vunpack.i.h.bf16 %v5055_v30  ;;  %v5056_v39 = vunpack.i.l.bf16 %v5055_v30 }
0x1410   : > { %v4248_v42 = vpack.c.bf16 %v5062_v31, %v5061_v34  ;;  %v4242_v43 = vpack.c.bf16 %v5057_v35, %v5056_v39 }
0x1411   : > { %v2753_v44 = vpop.permute.xlu1 %2752 }
0x1412   : > { %4670 = vmatpush3.bf16.msk.msra.mxu1 %vm5542_vm7, %v4242_v43  ;;  %4676 = vmatpush3.bf16.msk.msra.mxu0 %vm5546_vm8, %v4248_v42 }
0x1413   : > { %4687 = vmatprep.subr.bf16.mxu0 %v5392_v12 }
0x1415   : > { %4672 = vmatmul.mubr.msk.bf16.vlgmr.msra.gmra.mxu1 %vm447_vm4, %v2650_v32  ;;  %4678 = vmatmul.mubr.msk.bf16.vlgmr.msra.gmra.mxu0 %vm447_vm4, %v2753_v44 }
0x1416   : > { %4691 = vmatprep.mubr.msk.bf16.mxu0 %vm5393_vm2, %v5392_v12  ;;  %4683 = vmatprep.mubr.msk.bf16.mxu1 %vm447_vm4, %v2814_v37 }
0x141b   : > { %v5066_v22 = vpop.permute.xlu0 %5065 }
0x141e   : > { %v5071_v53 = vpop.permute.xlu1 %5070 }
0x1420   : > { %v2919_v44 = vpop.permute.xlu0 %2918 }
0x1422   : > { %v5076_v17 = vpop.permute.xlu1 %5075 }
0x145f   : > { %v2700_v13 = vpop.f32.mrf.mxu0 }
0x1461   : > { %v4667_v45 = vpop.f32.mrf.mxu0 }
0x1463   : > { %v2703_v46 = vpop.f32.mrf.mxu0 }
0x1465   : > { %v4668_v49 = vpop.f32.mrf.mxu0 }
0x14d5   : > { %v2744_v51 = vpop.f32.mrf.mxu1  ;;  %v2791_v52 = vpop.f32.mrf.mxu0 }
0x14d6   : > { %v2745_v23 = vadd.f32 %v2744_v51, %v2700_v13 }
0x14d7   : > { %v4673_v24 = vpop.f32.mrf.mxu1  ;;  %v4679_v58 = vpop.f32.mrf.mxu0 }
0x14d8   : > { %v2798_v60 = vadd.f32 %v2791_v52, %v2745_v23 }
0x14d9   : > { %v2747_v2 = vpop.f32.mrf.mxu1  ;;  %v2794_v33 = vpop.f32.mrf.mxu0 }
0x14da   : > { %v2748_v32 = vadd.f32 %v2747_v2, %v2703_v46  ;;  %v5301_v63 = vadd.low.f32.bf16 %v2798_v60, %v5066_v22 }
0x14db   : > { %v4674_v50 = vpop.f32.mrf.mxu1  ;;  %v4680_v36 = vpop.f32.mrf.mxu0 }
0x14dc   : > { %v2799_v47 = vadd.f32 %v2794_v33, %v2748_v32  ;;  %v2812_v1 = vmax.f32 %v5301_v63, 0.0 }
0x14de   : > { %v5302_v0 = vadd.high.f32.bf16 %v2799_v47, %v5066_v22 }
0x14e0   : > { %v2813_v3 = vmax.f32 %v5302_v0, 0.0 }
0x14e2   : > { %v2822_v5 = vpack.c.bf16 %v2813_v3, %v2812_v1 }
0x14e4   : > { %4681 = vmatprep.subr.bf16.mxu1 %v2822_v5 }
0x14e5   : > { %4682 = vmatpush3.bf16.msra.mxu1 %v2822_v5 }
0x14e8   : > { %4684 = vmatmul.mubr.msk.bf16.vlgmr.msra.gmra.mxu1 %vm447_vm4, %v5930_v10  ;;  %v3258_v10 = vunpack.c.h.bf16 %v5968_v9 }
0x14e9   : > { %4697 = vmatprep.mubr.msk.f32.mxu1 %vm243_vm9, %v5243_v8 }
0x14ea   : > { %v5091_v37 = vpack.i.bf16 %v3258_v10, %v3257_v48 }
0x14ec   : > { %5092 = vperm.xlu0 %5079, %v5091_v37  }
0x14f0   : > { %5112 = vset.pattern.permute.xlu0 %v5400_v6 }
0x15a8   : > { %v4685_v15 = vpop.f32.mrf.mxu1 }
0x15a9   : > { %v5303_v20 = vadd.low.f32.bf16 %v4685_v15, %v5071_v53 }
0x15aa   : > { %v2893_v18 = vpop.f32.mrf.mxu1 }
0x15ab   : > { %v2910_v29 = vadd.f32 %v5303_v20, %v5903_v26  ;;  %v5305_v30 = vadd.low.f32.bf16 %v2893_v18, %v5076_v17  ;;  %v5245_v18 = vld [vmem:[%s6241_s3] sm:$0xff] }
0x15ac   : > { %v4686_v21 = vpop.f32.mrf.mxu1 }
0x15ad   : > { %v5304_v25 = vadd.high.f32.bf16 %v4686_v21, %v5071_v53  ;;  %v2908_v42 = vadd.f32 %v5305_v30, %v5914_v62 }
0x15ae   : > { %v2896_v27 = vpop.f32.mrf.mxu1 }
0x15af   : > { %v2911_v31 = vadd.f32 %v5304_v25, %v5906_v59  ;;  %v5306_v34 = vadd.high.f32.bf16 %v2896_v27, %v5076_v17 }
0x15b1   : > { %v2915_v35 = vpack.c.bf16 %v2911_v31, %v2910_v29  ;;  %v2909_v39 = vadd.f32 %v5306_v34, %v5911_v61  ;;  %v5244_v61 = vld [vmem:[%s6240_s2 + $0x8] sm:$0xff] }
0x15b3   : > { %4688 = vmatpush3.bf16.msra.mxu0 %v2915_v35  ;;  %v2914_v43 = vpack.c.bf16 %v2909_v39, %v2908_v42 }
0x15b4   : > { %4689 = vmatprep.subr.bf16.mxu0 %v5392_v12 }
0x15b7   : > { %4690 = vmatpush3.bf16.msra.mxu0 %v2914_v43 }
0x15ba   : > { %4692 = vmatmul.mubr.msk.bf16.vlgmr.msra.gmra.mxu0 %vm371_vm3, %v2912_v11 }
0x167a   : > { %v2958_v13 = vpop.f32.mrf.mxu0 }
0x167b   : > { %v5979_v45 = vadd.f32 %v2958_v13, %v2919_v44 }
0x167c   : > { %v4693_v26 = vpop.f32.mrf.mxu0 }
0x167d   : > { %4695 = vmatprep.subr.mxu1 %v5979_v45  ;;  %v3039_v46 = vmul.f32 %v5979_v45, %v5979_v45 }
0x167e   : > { %v2961_v59 = vpop.f32.mrf.mxu0  ;;  %4696 = vmatpush3.msra.mxu1 %v5979_v45 }
0x167f   : > { %4698 = vmatmul.mubr.msk.f32.vlgmr.msra.gmra.mxu1 %vm243_vm9, %v5244_v61  ;;  %4700 = vmatprep.subr.mxu1 %v5392_v12  ;;  %v3040_v49 = vrot.slane %v3039_v46, 4 }
0x1680   : > { %v4694_v62 = vpop.f32.mrf.mxu0  ;;  %4704 = vmatprep.mubr.msk.f32.mxu1 %vm5393_vm2, %v5392_v12 }
0x1681   : > { %v3041_v22 = vadd.f32 %v3040_v49, %v3039_v46 }
0x1683   : > { %v3042_v51 = vrot.slane %v3041_v22, 2 }
0x1685   : > { %v3043_v52 = vadd.f32 %v3042_v51, %v3041_v22  ;;  %v3334_v51 = vld [vmem:[%s6239_s1 + $0x70] sm:$0xff]  }
0x1687   : > { %v3044_v23 = vrot.slane %v3043_v52, 1 }
0x1689   : > { %v3045_v58 = vadd.f32 %v3044_v23, %v3043_v52  ;;  %v5093_v52 = vpop.permute.xlu0 %5092 }
0x173f   : > { %v4699_v24 = vpop.f32.mrf.mxu1 }
0x1740   : > { %v3047_v60 = vmul.f32 2.0, %v4699_v24 }
0x1741   : > { %v3030_v2 = vpop.f32.mrf.mxu1 }
0x1742   : > { %v3049_v33 = vsub.f32 %v3045_v58, %v3047_v60  ;;  %v3046_v32 = vmul.f32 2.0, %v3030_v2 }
0x1744   : > { %v3048_v50 = vsub.f32 %v3045_v58, %v3046_v32  ;;  %v3051_v36 = vadd.f32 %v3049_v33, %v5656_v40 }
0x1746   : > { %v3050_v63 = vadd.f32 %v3048_v50, %v5658_v41 }
0x1748   : > { %v3052_v47 = vmin.f32 %v3050_v63, %v3051_v36 }
0x174a   : > { %v3053_v0 = vrot.slane %v3052_v47, 4 }
0x174c   : > { %v3054_v1 = vmin.f32 %v3052_v47, %v3053_v0 }
0x174e   : > { %v3055_v3 = vrot.slane %v3054_v1, 2 }
0x1750   : > { %v3056_v5 = vmin.f32 %v3054_v1, %v3055_v3 }
0x1752   : > { %v3057_v8 = vrot.slane %v3056_v5, 1 }
0x1754   : > { %v3058_v11 = vmin.f32 %v3056_v5, %v3057_v8 }
0x1756   : > { %vm3059_vm15 = vcmp.le.f32.partialorder %v3050_v63, %v3058_v11  ;;  %vm3060_vm0 = vcmp.le.f32.partialorder %v3051_v36, %v3058_v11  ;;  %v3336_v36 = vunpack.c.l.bf16 %v3334_v51 }
0x1757   : > { %v3061_v7 = vsel %vm3059_vm15, %v5663_v28, 16.0  ;;  %v3062_v48 = vsel %vm3060_vm0, %v5665_v57, 16.0 }
0x1758   : > { %v3063_v10 = vmin.f32 %v3061_v7, %v3062_v48 }
0x175a   : > { %v3064_v37 = vrot.slane %v3063_v10, 4 }
0x175c   : > { %v3065_v53 = vmin.f32 %v3063_v10, %v3064_v37 }
0x175e   : > { %v3066_v15 = vrot.slane %v3065_v53, 2 }
0x1760   : > { %v3067_v40 = vmin.f32 %v3065_v53, %v3066_v15 }
0x1762   : > { %v3068_v17 = vrot.slane %v3067_v40, 1 }
0x1764   : > { %v3069_v41 = vmin.f32 %v3067_v40, %v3068_v17 }
0x1766   : > { %vm3071_vm1 = vcmp.eq.f32.partialorder %v5665_v57, %v3069_v41  ;;  %vm3070_vm5 = vcmp.eq.f32.partialorder %v5663_v28, %v3069_v41  ;;  %v3158_v57 = vld [vmem:[%s6239_s1 + $0x58] sm:$0xff]   ;;  %v3160_v28 = vld [vmem:[%s6239_s1 + $0x60] sm:$0xff]  }
0x1767   : > { %4701 = vmatpush3.msk.msra.mxu1 %vm3071_vm1, %v5401_v4  ;;  %4709 = vmatprep.mubr.msk.bf16.mxu0 %vm243_vm9, %v3158_v57  ;;  %v3165_v20 = vunpack.c.h.bf16 %v3160_v28  ;;  %v3162_v21 = vunpack.c.l.bf16 %v3158_v57  ;;  %v3163_v25 = vunpack.c.h.bf16 %v3158_v57  ;;  %v3500_v57 = vld [vmem:[%s6239_s1 + $0x80] sm:$0xff]  }
0x1768   : > { %4702 = vmatprep.subr.mxu1 %v5392_v12 }
0x1769   : > { %4703 = vmatpush3.msk.msra.mxu1 %vm3070_vm5, %v5401_v4  ;;  %v3164_v4 = vunpack.c.l.bf16 %v3160_v28  ;;  %v5086_v29 = vpack.i.bf16 %v3163_v25, %v3162_v21 }
0x176a   : > { %4705 = vmatmul.mubr.msk.f32.vlgmr.msra.gmra.mxu1 %vm447_vm4, %v5245_v18  ;;  %4713 = vmatprep.subr.bf16.mxu1 %v5392_v12  ;;  %v3498_v18 = vld [vmem:[%s6239_s1 + $0x78] sm:$0xff]  }
0x176b   : > { %4717 = vmatprep.mubr.msk.bf16.mxu1 %vm5393_vm2, %v5392_v12  ;;  %v5081_v27 = vpack.i.bf16 %v3165_v20, %v3164_v4  ;;  %v3505_v4 = vunpack.c.h.bf16 %v3500_v57  ;;  %v3502_v20 = vunpack.c.l.bf16 %v3498_v18  ;;  %v3503_v21 = vunpack.c.h.bf16 %v3498_v18 }
0x176d   : > { %5082 = vperm.xlu1 %5080, %v5081_v27   ;;  %v5119_v27 = vpack.i.bf16 %v3503_v21, %v3502_v20 }
0x1771   : > { %5087 = vperm.xlu1 %5080, %v5086_v29  }
0x1775   : > { %5106 = vset.pattern.permute.xlu1 %v5396_v38 }
0x1776   : > { %3345 = vrot.lane.b32.xlu1 %v3334_v51, %s5395_s23 }
0x17e8   : > { %v5083_v39 = vpop.permute.xlu1 %5082 }
0x17ec   : > { %v5088_v43 = vpop.permute.xlu1 %5087 }
0x17f0   : > { %v3346_v0 = vpop.permute.xlu1 %3345 }
0x182a   : > { %v6016_v30 = vpop.f32.mrf.mxu1 }
0x182b   : > { %v3166_v31 = vpack.c.bf16 %v6016_v30, %v6016_v30 }
0x182c   : > { %v4706_v34 = vpop.f32.mrf.mxu1 }
0x182d   : > { %4788 = vmatprep.subr.msk.bf16.mxu0 %vm1343_vm14, %v3166_v31  ;;  %v3204_v35 = vsel %vm1343_vm14, %v3166_v31, 0 }
0x182e   : > { %4708 = vmatpush3.bf16.msra.mxu0 %v3204_v35 }
0x182f   : > { %4721 = vmatprep.subr.bf16.mxu0 %v5392_v12 }
0x1831   : > { %4710 = vmatmul.mubr.msk.bf16.vlgmr.msra.gmra.mxu0 %vm243_vm9, %v3160_v28  ;;  %v3504_v28 = vunpack.c.l.bf16 %v3500_v57 }
0x1832   : > { %4723 = vmatprep.mubr.msk.bf16.mxu0 %vm5393_vm2, %v5392_v12 }
0x1833   : > { %v5113_v25 = vpack.i.bf16 %v3505_v4, %v3504_v28  ;;  %v6110_v4 = vld [vmem:[%s6239_s1 + $0xa0] sm:$0xff]  }
0x18f1   : > { %v4711_v42 = vpop.f32.mrf.mxu0 }
0x18f2   : > { %v6026_v26 = vadd.low.f32.bf16 %v4711_v42, %v5083_v39 }
0x18f3   : > { %v3240_v44 = vpop.f32.mrf.mxu0 }
0x18f4   : > { %v6034_v49 = vadd.low.f32.bf16 %v3240_v44, %v5088_v43 }
0x18f5   : > { %v4712_v13 = vpop.f32.mrf.mxu0 }
0x18f6   : > { %v6028_v59 = vadd.high.f32.bf16 %v4712_v13, %v5083_v39 }
0x18f7   : > { %v3243_v61 = vpop.f32.mrf.mxu0 }
0x18f8   : > { %v3260_v62 = vpack.c.bf16 %v6028_v59, %v6026_v26  ;;  %v6032_v46 = vadd.high.f32.bf16 %v3243_v61, %v5088_v43 }
0x18fa   : > { %4714 = vmatpush3.bf16.msra.mxu1 %v3260_v62  ;;  %v3259_v22 = vpack.c.bf16 %v6032_v46, %v6034_v49 }
0x18fb   : > { %4715 = vmatprep.subr.bf16.mxu1 %v5392_v12 }
0x18fe   : > { %4716 = vmatpush3.bf16.msra.mxu1 %v3259_v22 }
0x18ff   : > { %4727 = vmatprep.subr.bf16.mxu1 %v5392_v12 }
0x1901   : > { %4718 = vmatmul.mubr.msk.bf16.vlgmr.msra.gmra.mxu1 %vm371_vm3, %v5968_v9  ;;  %v3337_v9 = vunpack.c.h.bf16 %v3334_v51 }
0x1902   : > { %4729 = vmatprep.mubr.msk.bf16.mxu1 %vm5393_vm2, %v5392_v12 }
0x1903   : > { %v5107_v1 = vpack.i.bf16 %v3337_v9, %v3336_v36 }
0x19c1   : > { %v3313_v23 = vpop.f32.mrf.mxu1 }
0x19c2   : > { %v5311_v58 = vadd.low.f32.bf16 %v3313_v23, %v5093_v52 }
0x19c3   : > { %v4719_v24 = vpop.f32.mrf.mxu1 }
0x19c4   : > { %v3320_v32 = vmax.f32 %v5311_v58, 0.0 }
0x19c5   : > { %v3316_v60 = vpop.f32.mrf.mxu1 }
0x19c6   : > { %v5312_v2 = vadd.high.f32.bf16 %v3316_v60, %v5093_v52 }
0x19c7   : > { %v4720_v33 = vpop.f32.mrf.mxu1 }
0x19c8   : > { %v3321_v50 = vmax.f32 %v5312_v2, 0.0 }
0x19ca   : > { %v3339_v63 = vpack.c.bf16 %v3321_v50, %v3320_v32  ;;  %v5101_v47 = vpack.i.bf16 %v3321_v50, %v3320_v32 }
0x19cc   : > { %5102 = vrot.lane.b32.xlu1 %v5101_v47, %s5397_s25  ;;  %5097 = vrot.lane.b32.xlu0 %v5101_v47, %s5398_s26 }
0x19cd   : > { %4722 = vmatpush3.bf16.msra.mxu0 %v3339_v63 }
0x19ce   : > { %4733 = vmatprep.subr.bf16.mxu0 %v5392_v12 }
0x19d0   : > { %3436 = vrot.lane.b32.xlu0 %v3334_v51, %s5399_s30  ;;  %4724 = vmatmul.mubr.msk.bf16.vlgmr.msra.gmra.mxu0 %vm447_vm4, %v3346_v0 }
0x19d1   : > { %4735 = vmatprep.mubr.msk.bf16.mxu0 %vm5393_vm2, %v5392_v12  ;;  %5108 = vperm.xlu1 %5106, %v5107_v1  }
0x19d4   : > { %5114 = vperm.xlu0 %5112, %v5113_v25  }
0x19d5   : > { %5118 = vset.pattern.permute.xlu1 %v5400_v6 }
0x19d6   : > { %5120 = vperm.xlu1 %5118, %v5119_v27   ;;  %v3845_v27 = vunpack.c.l.bf16 %v6110_v4 }
0x19d8   : > { %5140 = vset.pattern.permute.xlu0 %v5396_v38  ;;  %v3596_v38 = vld [vmem:[%s6239_s1 + $0x88] sm:$0xff]  }
0x19d9   : > { %v3598_v2 = vunpack.c.l.bf16 %v3596_v38  ;;  %v3599_v33 = vunpack.c.h.bf16 %v3596_v38 }
0x19da   : > { %5124 = vset.pattern.permute.xlu1 %v5394_v16 }
0x19db   : > { %v5125_v32 = vpack.i.bf16 %v3599_v33, %v3598_v2 }
0x19dd   : > { %5126 = vperm.xlu1 %5124, %v5125_v32  }
0x19e1   : > { %5146 = vset.pattern.permute.xlu1 %v5400_v6 }
0x1a3e   : > { %v5103_v3 = vpop.permute.xlu1 %5102  ;;  %v5098_v5 = vpop.permute.xlu0 %5097 }
0x1a3f   : > { %v5105_v8 = vunpack.i.h.bf16 %v5103_v3  ;;  %v5104_v11 = vunpack.i.l.bf16 %v5103_v3  ;;  %v5100_v7 = vunpack.i.h.bf16 %v5098_v5  ;;  %v5099_v48 = vunpack.i.l.bf16 %v5098_v5 }
0x1a41   : > { %v4280_v10 = vpack.c.bf16 %v5105_v8, %v5104_v11  ;;  %v4274_v37 = vpack.c.bf16 %v5100_v7, %v5099_v48 }
0x1a42   : > { %v3437_v53 = vpop.permute.xlu0 %3436 }
0x1a43   : > { %4728 = vmatpush3.bf16.msk.msra.mxu1 %vm5542_vm7, %v4274_v37  ;;  %4734 = vmatpush3.bf16.msk.msra.mxu0 %vm5546_vm8, %v4280_v10 }
0x1a44   : > { %4745 = vmatprep.subr.bf16.mxu0 %v5392_v12 }
0x1a46   : > { %4730 = vmatmul.mubr.msk.bf16.vlgmr.msra.gmra.mxu1 %vm447_vm4, %v3334_v51  ;;  %4736 = vmatmul.mubr.msk.bf16.vlgmr.msra.gmra.mxu0 %vm447_vm4, %v3437_v53 }
0x1a47   : > { %4749 = vmatprep.mubr.msk.bf16.mxu0 %vm5393_vm2, %v5392_v12  ;;  %4741 = vmatprep.mubr.msk.bf16.mxu1 %vm447_vm4, %v3498_v18 }
0x1a4c   : > { %v5109_v29 = vpop.permute.xlu1 %5108 }
0x1a4f   : > { %v5115_v50 = vpop.permute.xlu0 %5114 }
0x1a51   : > { %v5121_v36 = vpop.permute.xlu1 %5120 }
0x1a90   : > { %v3384_v15 = vpop.f32.mrf.mxu0 }
0x1a92   : > { %v4725_v40 = vpop.f32.mrf.mxu0 }
0x1a94   : > { %v3387_v17 = vpop.f32.mrf.mxu0 }
0x1a96   : > { %v4726_v41 = vpop.f32.mrf.mxu0 }
0x1b06   : > { %v3428_v31 = vpop.f32.mrf.mxu1  ;;  %v3475_v34 = vpop.f32.mrf.mxu0 }
0x1b07   : > { %v3429_v35 = vadd.f32 %v3428_v31, %v3384_v15  ;;  %v6119_v31 = vld [vmem:[%s6239_s1 + $0x98] sm:$0xff]  }
0x1b08   : > { %v4731_v39 = vpop.f32.mrf.mxu1  ;;  %v4737_v42 = vpop.f32.mrf.mxu0 }
0x1b09   : > { %v3482_v43 = vadd.f32 %v3475_v34, %v3429_v35  ;;  %v3843_v39 = vunpack.c.l.bf16 %v6119_v31  ;;  %v3844_v42 = vunpack.c.h.bf16 %v6119_v31 }
0x1b0a   : > { %v3431_v44 = vpop.f32.mrf.mxu1  ;;  %v3478_v13 = vpop.f32.mrf.mxu0 }
0x1b0b   : > { %v3432_v61 = vadd.f32 %v3431_v44, %v3387_v17  ;;  %v5313_v51 = vadd.low.f32.bf16 %v3482_v43, %v5109_v29  ;;  %v5152_v43 = vpack.i.bf16 %v3844_v42, %v3843_v39  ;;  %v1286_v44 = vsub.f32 %v5646_v19, %v5692_v54 }
0x1b0c   : > { %v4732_v62 = vpop.f32.mrf.mxu1  ;;  %v4738_v22 = vpop.f32.mrf.mxu0 }
0x1b0d   : > { %v3483_v52 = vadd.f32 %v3478_v13, %v3432_v61  ;;  %v3496_v24 = vmax.f32 %v5313_v51, 0.0  ;;  %v1287_v13 = vmul.f32 %v1286_v44, %v1286_v44  ;;  %v3146_v61 = vsub.f32 %v5979_v45, %v6016_v30  ;;  %v6136_v22 = vld [vmem:[%s6239_s1 + $0xa8] sm:$0x3] }
0x1b0f   : > { %v5314_v23 = vadd.high.f32.bf16 %v3483_v52, %v5109_v29  ;;  %v3846_v29 = vunpack.c.h.bf16 %v6110_v4  ;;  %v3147_v62 = vmul.f32 %v3146_v61, %v3146_v61  ;;  %v3938_v52 = vunpack.c.l.bf16 %v6136_v22 }
0x1b11   : > { %v3497_v58 = vmax.f32 %v5314_v23, 0.0  ;;  %v5147_v35 = vpack.i.bf16 %v3846_v29, %v3845_v27 }
0x1b13   : > { %v3506_v60 = vpack.c.bf16 %v3497_v58, %v3496_v24 }
0x1b15   : > { %4739 = vmatprep.subr.bf16.mxu1 %v3506_v60 }
0x1b16   : > { %4740 = vmatpush3.bf16.msra.mxu1 %v3506_v60 }
0x1b17   : > { %4753 = vmatprep.subr.bf16.mxu1 %v5392_v12 }
0x1b19   : > { %4742 = vmatmul.mubr.msk.bf16.vlgmr.msra.gmra.mxu1 %vm447_vm4, %v3500_v57 }
0x1b1a   : > { %4755 = vmatprep.mubr.msk.bf16.mxu1 %vm5393_vm2, %v5392_v12 }
0x1bd9   : > { %v4743_v9 = vpop.f32.mrf.mxu1 }
0x1bda   : > { %v5315_v47 = vadd.low.f32.bf16 %v4743_v9, %v5115_v50 }
0x1bdb   : > { %v3577_v63 = vpop.f32.mrf.mxu1 }
0x1bdc   : > { %v6083_v5 = vadd.f32 %v5315_v47, %v6026_v26  ;;  %v5317_v8 = vadd.low.f32.bf16 %v3577_v63, %v5121_v36 }
0x1bdd   : > { %v4744_v0 = vpop.f32.mrf.mxu1 }
0x1bde   : > { %v5316_v1 = vadd.high.f32.bf16 %v4744_v0, %v5115_v50  ;;  %v6094_v10 = vadd.f32 %v5317_v8, %v6034_v49 }
0x1bdf   : > { %v3580_v3 = vpop.f32.mrf.mxu1 }
0x1be0   : > { %v6086_v11 = vadd.f32 %v5316_v1, %v6028_v59  ;;  %v5318_v7 = vadd.high.f32.bf16 %v3580_v3, %v5121_v36  ;;  %v3675_v59 = vld [vmem:[%s6239_s1 + $0x90] sm:$0xff]  }
0x1be1   : > { %3686 = vrot.lane.b32.xlu0 %v3675_v59, %s5395_s23  ;;  %v3677_v57 = vunpack.c.l.bf16 %v3675_v59  ;;  %v3678_v28 = vunpack.c.h.bf16 %v3675_v59 }
0x1be2   : > { %v3601_v48 = vpack.c.bf16 %v6086_v11, %v6083_v5  ;;  %v6091_v6 = vadd.f32 %v5318_v7, %v6032_v46  ;;  %v5127_v46 = vpop.permute.xlu1 %5126 }
0x1be3   : > { %v5141_v25 = vpack.i.bf16 %v3678_v28, %v3677_v57 }
0x1be4   : > { %4746 = vmatpush3.bf16.msra.mxu0 %v3601_v48  ;;  %v3600_v26 = vpack.c.bf16 %v6091_v6, %v6094_v10 }
0x1be5   : > { %4747 = vmatprep.subr.bf16.mxu0 %v5392_v12 }
0x1be8   : > { %4748 = vmatpush3.bf16.msra.mxu0 %v3600_v26 }
0x1be9   : > { %4759 = vmatprep.subr.bf16.mxu0 %v5392_v12 }
0x1beb   : > { %4750 = vmatmul.mubr.msk.bf16.vlgmr.msra.gmra.mxu0 %vm371_vm3, %v3596_v38 }
0x1bec   : > { %4761 = vmatprep.mubr.msk.bf16.mxu0 %vm5393_vm2, %v5392_v12 }
0x1c53   : > { %v3687_v34 = vpop.permute.xlu0 %3686 }
0x1cab   : > { %v3654_v49 = vpop.f32.mrf.mxu0 }
0x1cac   : > { %v5319_v53 = vadd.low.f32.bf16 %v3654_v49, %v5127_v46 }
0x1cad   : > { %v4751_v37 = vpop.f32.mrf.mxu0 }
0x1cae   : > { %v3661_v41 = vmax.f32 %v5319_v53, 0.0 }
0x1caf   : > { %v3657_v15 = vpop.f32.mrf.mxu0 }
0x1cb0   : > { %v5320_v40 = vadd.high.f32.bf16 %v3657_v15, %v5127_v46 }
0x1cb1   : > { %v4752_v17 = vpop.f32.mrf.mxu0 }
0x1cb2   : > { %v3662_v18 = vmax.f32 %v5320_v40, 0.0 }
0x1cb4   : > { %v3680_v20 = vpack.c.bf16 %v3662_v18, %v3661_v41  ;;  %v5135_v21 = vpack.i.bf16 %v3662_v18, %v3661_v41 }
0x1cb6   : > { %5136 = vrot.lane.b32.xlu0 %v5135_v21, %s5397_s25  ;;  %5131 = vrot.lane.b32.xlu1 %v5135_v21, %s5398_s26  ;;  %s4016_s26 = sshll.u32 %s6162_s13, 4  ;;  %s6187_s26 = int_to_ptr.vmem [resolvable:$true] %s4016_s26 }
0x1cb7   : > { %4754 = vmatpush3.bf16.msra.mxu1 %v3680_v20 }
0x1cb8   : > { %4765 = vmatprep.subr.bf16.mxu1 %v5392_v12 }
0x1cba   : > { %5142 = vperm.xlu0 %5140, %v5141_v25   ;;  %3777 = vrot.lane.b32.xlu1 %v3675_v59, %s5399_s30  ;;  %s4314_s30 = sshll.u32 %s5457_s22, 7  ;;  %s5329_s22 = scalar_lea.vmem %s6187_s26, 128 }
0x1cbb   : > { %4756 = vmatmul.mubr.msk.bf16.vlgmr.msra.gmra.mxu1 %vm447_vm4, %v3687_v34  ;;  %s6192_s6 = scalar_lea.hbm %s6242_s4, %s4314_s30  ;;  %p5330_p12 = scmp.ne.s32.totalorder %s6187_s26, %s5329_s22 }
0x1cbc   : > { %4767 = vmatprep.mubr.msk.bf16.mxu1 %vm5393_vm2, %v5392_v12 }
0x1cbd   : > { %p5331_p13 = pnand %p5330_p12, %p5474_p5 }
0x1cbe   : > { %5148 = vperm.xlu1 %5146, %v5147_v35   ;;  %5157 = vset.pattern.permute.xlu0 %v5394_v16  ;;  %v5246_v16 = vld [vmem:[%s6239_s1 + $0xa8] sm:$0x3] }
0x1cbf   : > { %v2079_v51 = vunpack.c.l.bf16 %v5246_v16  ;;  %p5332_p0 = pneg %p5331_p13 }
0x1cc1   : > { %v5158_v19 = vpack.i.bf16 %v3938_v52, %v2079_v51 }
0x1cc2   : > { %5153 = vperm.xlu1 %5146, %v5152_v43  }
0x1cd9   : > { %1288 = vadd.xlane.f32.xlu0 %v1287_v13 }
0x1ce6   : > { %3148 = vadd.xlane.f32.xlu1 %v3147_v62 }
0x1cef   : > { %5159 = vperm.xlu0 %5157, %v5158_v19  }
0x1d28   : > { %v5137_v54 = vpop.permute.xlu0 %5136  ;;  %v5132_v23 = vpop.permute.xlu1 %5131 }
0x1d29   : > { %v5139_v24 = vunpack.i.h.bf16 %v5137_v54  ;;  %v5138_v45 = vunpack.i.l.bf16 %v5137_v54  ;;  %v5134_v30 = vunpack.i.h.bf16 %v5132_v23  ;;  %v5133_v58 = vunpack.i.l.bf16 %v5132_v23 }
0x1d2b   : > { %v4300_v60 = vpack.c.bf16 %v5139_v24, %v5138_v45  ;;  %v4294_v38 = vpack.c.bf16 %v5134_v30, %v5133_v58 }
0x1d2c   : > { %v3778_v2 = vpop.permute.xlu1 %3777 }
0x1d2d   : > { %4760 = vmatpush3.bf16.msk.msra.mxu0 %vm5542_vm7, %v4294_v38  ;;  %4766 = vmatpush3.bf16.msk.msra.mxu1 %vm5546_vm8, %v4300_v60 }
0x1d2e   : > { %4777 = vmatprep.subr.bf16.mxu1 %v5392_v12 }
0x1d30   : > { %4762 = vmatmul.mubr.msk.bf16.vlgmr.msra.gmra.mxu0 %vm447_vm4, %v3675_v59  ;;  %4768 = vmatmul.mubr.msk.bf16.vlgmr.msra.gmra.mxu1 %vm447_vm4, %v3778_v2 }
0x1d31   : > { %4781 = vmatprep.mubr.msk.bf16.mxu1 %vm5393_vm2, %v5392_v12  ;;  %4773 = vmatprep.mubr.msk.bf16.mxu0 %vm447_vm4, %v6119_v31 }
0x1d35   : > { %v5143_v33 = vpop.permute.xlu0 %5142 }
0x1d39   : > { %v6151_v36 = vpop.permute.xlu1 %5148 }
0x1d3d   : > { %v6156_v56 = vpop.permute.xlu1 %5153 }
0x1d62   : > { %v1289_v32 = vpop.xlane.xlu0 %1288 }
0x1d63   : > { %v1290_v50 = vrot.slane %v1289_v32, 4 }
0x1d65   : > { %v1291_v55 = vadd.f32 %v1290_v50, %v1289_v32 }
0x1d67   : > { %v1292_v9 = vrot.slane %v1291_v55, 2 }
0x1d69   : > { %v1293_v63 = vadd.f32 %v1292_v9, %v1291_v55 }
0x1d6a   : > { %v6158_v47 = vpop.permute.xlu0 %5159 }
0x1d6b   : > { %v1294_v0 = vrot.slane %v1293_v63, 1  ;;  %v5321_v1 = vadd.low.f32.bf16 %v5868_v14, %v6158_v47 }
0x1d6d   : > { %v1295_v3 = vadd.f32 %v1294_v0, %v1293_v63  ;;  %2130 = vst [vmem:[%s6162_s13] sm:$0xf] %v5321_v1 }
0x1d6f   : > { %4789 = vpush %v1295_v3  ;;  %v3149_v8 = vpop.xlane.xlu1 %3148 }
0x1d70   : > { %v3150_v7 = vrot.slane %v3149_v8, 4 }
0x1d72   : > { %v3151_v48 = vadd.f32 %v3150_v7, %v3149_v8 }
0x1d74   : > { %v3152_v26 = vrot.slane %v3151_v48, 2 }
0x1d76   : > { %v3153_v59 = vadd.f32 %v3152_v26, %v3151_v48 }
0x1d78   : > { %v3154_v46 = vrot.slane %v3153_v59, 1 }
0x1d7a   : > { %v3155_v49 = vadd.f32 %v3154_v46, %v3153_v59 }
0x1d7b   : > { %v3725_v37 = vpop.f32.mrf.mxu1 }
0x1d7c   : > { %4791 = vpush %v3155_v49 }
0x1d7d   : > { %v4757_v53 = vpop.f32.mrf.mxu1 }
0x1d7f   : > { %v3728_v15 = vpop.f32.mrf.mxu1 }
0x1d81   : > { %v4758_v14 = vpop.f32.mrf.mxu1 }
0x1da0   : > { %s4790_s7 = spop %4789 }
0x1dad   : > { %s4792_s8 = spop %4791 }
0x1dae   : > { %s3157_s9 = sadd.f32 %s4792_s8, %s4790_s7  ;;  %s6198_s7 = scalar_lea.sflag [#allocation3], %s217_s16 }
0x1daf   : > { %s5403_s8 = smov [#allocation2]  }
0x1db0   : > { %s3991_s11 = smul.f32 1.25, %s3157_s9  ;;  %s5333_s9 = sshll.u32 %s5403_s8, 4  ;;  %s5334_s9 = int_to_ptr.vmem [resolvable:$false] %s5333_s9 }
0x1db1   : > { %s5335_s10 = scalar_lea.vmem %s5334_s9, 256  ;;  %p5336_p1 = scmp.lt.s32.totalorder %s6187_s26, %s5334_s9 }
0x1db2   : > { %s3994_s25 = smul.f32 0.00048828125, %s3991_s11  ;;  %p5337_p2 = scmp.lt.s32.totalorder %s5335_s10, %s5329_s22 }
0x1db4   : > { %v3995_v40 = vstv %s3994_s25  ;;  %p5338_p3 = por %p5337_p2, %p5336_p1 }
0x1db5   : > { %3997 = vst [vmem:[%s236_s14] sm:$0xff] %v3995_v40 }
0x1db6   : > { %p5339_p4 = pnand %p5338_p3, %p5332_p0 }
0x1df0   : > { %v3769_v17 = vpop.f32.mrf.mxu0  ;;  %v3816_v41 = vpop.f32.mrf.mxu1 }
0x1df1   : > { %v3770_v18 = vadd.f32 %v3769_v17, %v3725_v37 }
0x1df2   : > { %v4763_v57 = vpop.f32.mrf.mxu0  ;;  %v4769_v28 = vpop.f32.mrf.mxu1 }
0x1df3   : > { %v3823_v20 = vadd.f32 %v3816_v41, %v3770_v18 }
0x1df4   : > { %v3772_v21 = vpop.f32.mrf.mxu0  ;;  %v3819_v25 = vpop.f32.mrf.mxu1 }
0x1df5   : > { %v3773_v27 = vadd.f32 %v3772_v21, %v3728_v15  ;;  %v5322_v34 = vadd.low.f32.bf16 %v3823_v20, %v5143_v33 }
0x1df6   : > { %v4764_v29 = vpop.f32.mrf.mxu0  ;;  %v4770_v31 = vpop.f32.mrf.mxu1 }
0x1df7   : > { %v3824_v35 = vadd.f32 %v3819_v25, %v3773_v27  ;;  %v3837_v42 = vmax.f32 %v5322_v34, 0.0 }
0x1df9   : > { %v5323_v39 = vadd.high.f32.bf16 %v3824_v35, %v5143_v33 }
0x1dfb   : > { %v3838_v43 = vmax.f32 %v5323_v39, 0.0 }
0x1dfd   : > { %v3847_v44 = vpack.c.bf16 %v3838_v43, %v3837_v42 }
0x1dff   : > { %4771 = vmatprep.subr.bf16.mxu0 %v3847_v44 }
0x1e00   : > { %4772 = vmatpush3.bf16.msra.mxu0 %v3847_v44 }
0x1e03   : > { %4774 = vmatmul.mubr.msk.bf16.vlgmr.msra.gmra.mxu0 %vm447_vm4, %v6110_v4 }
0x1ec3   : > { %v4775_v13 = vpop.f32.mrf.mxu0 }
0x1ec4   : > { %v5324_v62 = vadd.low.f32.bf16 %v4775_v13, %v6151_v36 }
0x1ec5   : > { %v3918_v61 = vpop.f32.mrf.mxu0 }
0x1ec6   : > { %v3935_v19 = vadd.f32 %v5324_v62, %v6083_v5  ;;  %v5326_v54 = vadd.low.f32.bf16 %v3918_v61, %v6156_v56 }
0x1ec7   : > { %v4776_v16 = vpop.f32.mrf.mxu0 }
0x1ec8   : > { %v5325_v51 = vadd.high.f32.bf16 %v4776_v16, %v6151_v36  ;;  %v3933_v30 = vadd.f32 %v5326_v54, %v6094_v10 }
0x1ec9   : > { %v3921_v52 = vpop.f32.mrf.mxu0 }
0x1eca   : > { %v3936_v23 = vadd.f32 %v5325_v51, %v6086_v11  ;;  %v5327_v24 = vadd.high.f32.bf16 %v3921_v52, %v6156_v56 }
0x1ecc   : > { %v3940_v4 = vpack.c.bf16 %v3936_v23, %v3935_v19  ;;  %v3934_v45 = vadd.f32 %v5327_v24, %v6091_v6 }
0x1ece   : > { %4778 = vmatpush3.bf16.msra.mxu1 %v3940_v4  ;;  %v3939_v58 = vpack.c.bf16 %v3934_v45, %v3933_v30 }
0x1ecf   : > { %4779 = vmatprep.subr.bf16.mxu1 %v5392_v12 }
0x1ed2   : > { %4780 = vmatpush3.bf16.msra.mxu1 %v3939_v58 }
0x1ed5   : > { %4782 = vmatmul.mubr.msk.bf16.vlgmr.msra.gmra.mxu1 %vm371_vm3, %v6136_v22 }
0x1f95   : > { %v3983_v5 = vpop.f32.mrf.mxu1 }
0x1f96   : > { %v5328_v12 = vadd.high.f32.bf16 %v3983_v5, %v6158_v47 }
0x1f97   : > { %v4783_v11 = vpop.f32.mrf.mxu1 }
0x1f98   : > { %4308 = vst [vmem:[%s6162_s13 + $0x4] sm:$0xf] %v5328_v12 }
0x1f99   : > { %v3986_v6 = vpop.f32.mrf.mxu1 }
0x1f9a   : > { %5342 = shalt.err (!%p5339_p4)
}
0x1f9b   : > { %s5343_s16 = scalar_lea.hbm %s6192_s6, 128  ;;  %s5347_s12 = scalar_lea.hbm %s6242_s4, 256 }
0x1f9c   : > { %p5344_p7 = scmp.ne.s32.totalorder %s6192_s6, %s5343_s16  ;;  %p5348_p10 = scmp.lt.s32.totalorder %s6192_s6, %s6242_s4 }
0x1f9d   : > { %p5349_p11 = scmp.lt.s32.totalorder %s5347_s12, %s5343_s16 }
0x1f9e   : > { %p5345_p8 = pnand %p5344_p7, %p5474_p5 }
0x1f9f   : > { %p5350_p12 = por %p5349_p11, %p5348_p10 }
0x1fa0   : > { %p5346_p9 = pneg %p5345_p8 }
0x1fa2   : > { %p5351_p13 = pnand %p5350_p12, %p5346_p9 }
0x1fa4   : > { %5354 = shalt.err (!%p5351_p13)
}
0x1fa5   : > { %s5404_s25 = smov 64   ;;  %s5405_s30 = smov 4   ;;  %v4784_v10 = vpop.f32.mrf.mxu1 }
0x1fa6   : > { %4793 = dma.vmem_to_hbm [thread:$0]  (%p5474_p5), %s6187_s26, 128, %s6192_s6, %s6198_s7, %s5404_s25, %s5404_s25, %s5405_s30  }
0x1fa7 PF: > { %p4799_p0 = scmp.ge.s32.totalorder %s5389_s21, 2  ;;  %s4034_s15 = sand.u32 1, %s5377_s18  }
0x1fa8   : > { %s4035_s17 = scalar_lea.sflag [#allocation3], %s4034_s15 }
0x1fa9   : > { %p4796_p1 = pnand %p4799_p0, %p5478_p6 }
0x1fab   : > { %p4797_p2 = pneg %p4796_p1 }
0x1fad   : > { %5372 = dma.done.wait (%p4797_p2), %s4035_s17, 128  }
0x1fae   : > { %5374 = vsyncadd (%p4797_p2), %s4035_s17, 4294967168  ;;  %p16_p3 = scmp.ge.s32.totalorder %s5461_s24, 4   ;;  %s6250_s18 = smov %s5381_s19 }
0x1faf   : > { %s6251_s19 = smov %s5385_s20  ;;  %s6252_s20 = smov %s5472_s27 }
0x1fb0   : > { %s6253_s21 = smov %s5461_s24  ;;  %18 = sbr.rel (!%p16_p3) target bundleno = 3 (0x3), region = 85 }
0x1fb5   :  { %4047 = vsyncpa [#allocation3], 1 }
0x1fb6   :  { %4049 = vsyncpa [#allocation3 + $0x1], 1 }

</bundles_post_ra>
